<compile_context>
chip_gen: v6e
topology: v6e:2x2x1
jax: 0.10.0
libtpu: 0.0.40
codegen_flags: <defaults>
</compile_context>

<pallas_src>
import functools
import math

import jax
import jax.numpy as jnp
import numpy as np
from jax.experimental import pallas as pl
from jax.experimental.pallas import tpu as pltpu

LATENT_DIM = 32      # config['recdim']
HEADS = 8
D_HEAD = LATENT_DIM // HEADS
NUM_LAYERS = 2       # config['layer']


def _split_heads(a):
    """[rows, H*dh] -> [H, rows, dh] via static lane slices + leading-axis stack."""
    return jnp.stack([a[:, h * D_HEAD:(h + 1) * D_HEAD] for h in range(HEADS)], axis=0)


# ---------------------------------------------------------------------------
# One TransformerConv + w_linear layer; grid axis = destination-row tiles.
# ---------------------------------------------------------------------------
def _tgrec2_layer_kernel(x_ref, mask_ref, wq_ref, bq_ref, wkv_ref, bkv_ref,
                         wwa_ref, wwx_ref, bw_ref, out_ref, *, apply_relu):
    tile = out_ref.shape[0]                                     # static dst-tile rows
    row0 = pl.multiple_of(pl.program_id(0) * tile, 8)

    x_all = x_ref[...].astype(jnp.bfloat16)                     # [n, D]   K/V source rows
    x_dst = x_ref[pl.ds(row0, tile), :].astype(jnp.bfloat16)    # [T, D]   dst rows only

    # Lane-packed projections (single MXU calls). Q weights/bias carry 1/sqrt(d_head).
    q = jnp.dot(x_dst, wq_ref[...], preferred_element_type=jnp.float32) + bq_ref[...]   # [T, D]
    kv = jnp.dot(x_all, wkv_ref[...], preferred_element_type=jnp.float32) + bkv_ref[...]  # [n, 2D]
    k = kv[:, :LATENT_DIM]
    v = kv[:, LATENT_DIM:]

    qh = _split_heads(q.astype(jnp.bfloat16))                   # [H, T, dh]
    kh = _split_heads(k.astype(jnp.bfloat16))                   # [H, n, dh]
    vh = _split_heads(v.astype(jnp.bfloat16))                   # [H, n, dh]

    # Masked softmax over source nodes (f32 path; add-bias + multiply, no selects).
    maskf = mask_ref[...].astype(jnp.float32)                   # [T, n] in {0, 1}
    neg_bias = (maskf - 1.0) * 1e30                             # 0 on edges, -1e30 elsewhere
    s = jnp.einsum("htd,hnd->htn", qh, kh,
                   preferred_element_type=jnp.float32)          # [H, T, n]
    s = s + neg_bias[None, :, :]
    m = jnp.max(s, axis=-1, keepdims=True)
    p = jnp.exp(s - m) * maskf[None, :, :]                      # rows w/o in-edges -> all zeros (PyG)
    denom = jnp.sum(p, axis=-1, keepdims=True) + 1e-16

    # Aggregate; normalize AFTER the P@V matmul (EUP approx reciprocal).
    o = jnp.einsum("htn,hnd->htd", p.astype(jnp.bfloat16), vh,
                   preferred_element_type=jnp.float32)          # [H, T, dh]
    o = o * pl.reciprocal(denom, approx=True)
    aggr = jnp.concatenate([o[h] for h in range(HEADS)], axis=-1)        # [T, H*dh] = [T, D]

    # w_linears[i](cat([aggr, x])) == aggr @ Wa + x @ Wx + b.
    out = (jnp.dot(aggr.astype(jnp.bfloat16), wwa_ref[...],
                   preferred_element_type=jnp.float32)
           + jnp.dot(x_dst, wwx_ref[...], preferred_element_type=jnp.float32)
           + bw_ref[...])
    if apply_relu:
        out = jnp.maximum(out, 0.0)
    # TODO(synk): nn.Dropout(0.2) treated as identity (eval mode); training-mode RNG dropout omitted.
    out_ref[...] = out.astype(out_ref.dtype)


def _choose_tile(n_src, n_dst, tile_cap):
    """Largest multiple-of-8 tile <= tile_cap that divides n_dst (or the full n_dst)."""
    tile = n_dst
    if n_dst > tile_cap and n_dst % 8 == 0:
        t = (min(tile_cap, n_dst) // 8) * 8
        while t >= 8:
            if n_dst % t == 0:
                tile = t
                break
            t -= 8
    # Mosaic block constraint: second-minor block dim must be a multiple of 8 or span
    # the full array dim for every tiled operand (mask rows span n_src).
    assert tile % 8 == 0 or (tile == n_dst == n_src), (
        f"n_dst must be a multiple of 8 (or equal n_src); got n_src={n_src}, n_dst={n_dst}")
    return tile


def _layer_forward(x, mask_bf16, packed, *, n_dst, tile, apply_relu):
    n, d = x.shape
    wq, bq, wkv, bkv, wwa, wwx, bw = packed
    kernel = functools.partial(_tgrec2_layer_kernel, apply_relu=apply_relu)
    return pl.pallas_call(
        kernel,
        out_shape=jax.ShapeDtypeStruct((n_dst, d), jnp.float32),
        grid=(n_dst // tile,),
        in_specs=[
            pl.BlockSpec((n, d), lambda i: (0, 0)),           # x: full (K/V source; dst rows sliced in-kernel)
            pl.BlockSpec((tile, n), lambda i: (i, 0)),        # adjacency mask rows for this dst tile (bf16)
            pl.BlockSpec((d, d), lambda i: (0, 0)),           # Wq (pre-scaled, bf16)
            pl.BlockSpec((1, d), lambda i: (0, 0)),           # bq (pre-scaled, f32)
            pl.BlockSpec((d, 2 * d), lambda i: (0, 0)),       # [Wk | Wv] (bf16)
            pl.BlockSpec((1, 2 * d), lambda i: (0, 0)),       # [bk | bv] (f32)
            pl.BlockSpec((d, d), lambda i: (0, 0)),           # W_linear aggr half (bf16)
            pl.BlockSpec((d, d), lambda i: (0, 0)),           # W_linear skip half (bf16)
            pl.BlockSpec((1, d), lambda i: (0, 0)),           # b_linear (f32)
        ],
        out_specs=pl.BlockSpec((tile, d), lambda i: (i, 0)),
        compiler_params=pltpu.CompilerParams(
            dimension_semantics=("parallel",),
            vmem_limit_bytes=64 * 1024 * 1024),
    )(x, mask_bf16, wq, bq, wkv, bkv, wwa, wwx, bw)


def _pack_layer_params(params, scale):
    """Host-side repacking: fold 1/sqrt(dh) into Q, pack K|V along lanes, split w_linear."""
    wq, bq, wk, bk, wv, bv, ww, bw = params
    d = wq.shape[0]
    wq_s = (wq * scale).astype(jnp.bfloat16)
    bq_s = (bq * scale).astype(jnp.float32)
    wkv = jnp.concatenate([wk, wv], axis=1).astype(jnp.bfloat16)   # [d, 2d]
    bkv = jnp.concatenate([bk, bv], axis=1).astype(jnp.float32)    # [1, 2d]
    wwa = ww[:d].astype(jnp.bfloat16)                              # aggr half of w_linear
    wwx = ww[d:].astype(jnp.bfloat16)                              # skip (x) half of w_linear
    return wq_s, bq_s, wkv, bkv, wwa, wwx, bw.astype(jnp.float32)


@functools.partial(jax.jit, static_argnames=("sizes", "tile_cap"))
def _tgrec2_forward_impl(x, adj_mats, layer_params, *, sizes, tile_cap):
    scale = 1.0 / math.sqrt(D_HEAD)
    num_layers = len(sizes)
    x = x.astype(jnp.float32)
    for i in range(num_layers):                        # static unroll over layers
        n_src, n_dst = sizes[i]
        mask = (adj_mats[i] != 0).astype(jnp.bfloat16)
        packed = _pack_layer_params(layer_params[i], scale)
        tile = _choose_tile(n_src, n_dst, tile_cap)
        x = _layer_forward(x[:n_src], mask, packed, n_dst=n_dst, tile=tile,
                           apply_relu=(i != num_layers - 1))
    return x


def tgrec2_forward(x, adjs, layer_params, *, tile_dst=128):
    """Mirror of TGRec2.forward(x, adjs).

    adjs: list of (dense_adj, (n_src, n_dst)); adj[dst, src] != 0 <=> edge src -> dst.
    """
    # TODO(synk): for production graphs, replace the dense [N,N] mask with a
    # gathered-neighbor / block-sparse formulation (PrefetchScalarGridSpec with
    # per-dst neighbor offset/count tables) so scores only cover sampled neighbors.
    sizes = tuple((int(s[0]), int(s[1])) for _, s in adjs)
    for i in range(len(sizes) - 1):
        assert sizes[i][1] == sizes[i + 1][0]
    adj_mats = tuple(a for a, _ in adjs)
    params = tuple(tuple(p) for p in layer_params)
    return _tgrec2_forward_impl(x, adj_mats, params, sizes=sizes, tile_cap=int(tile_dst))


# ------------------------- pure-JAX reference (sanity check) -------------------------
def _reference_layer(x, adj, params, apply_relu):
    wq, bq, wk, bk, wv, bv, ww, bw = params
    mask = adj != 0
    q, k, v = x @ wq + bq, x @ wk + bk, x @ wv + bv
    outs = []
    for h in range(HEADS):
        lo, hi = h * D_HEAD, (h + 1) * D_HEAD
        s = (q[:, lo:hi] @ k[:, lo:hi].T) / math.sqrt(D_HEAD)
        s = jnp.where(mask, s, -1e30)
        p = jnp.where(mask, jnp.exp(s - s.max(axis=1, keepdims=True)), 0.0)
        a = p / (p.sum(axis=1, keepdims=True) + 1e-16)
        outs.append(a @ v[:, lo:hi])
    out = jnp.concatenate([jnp.concatenate(outs, axis=1), x], axis=1) @ ww + bw
    return jnp.maximum(out, 0.0) if apply_relu else out


if __name__ == "__main__":
    key = jax.random.PRNGKey(0)
    # Neighbor-sampled node counts per hop: 64 -> 32 -> 16 (16 seed nodes).
    N0, N1, N2 = 64, 32, 16
    D = LATENT_DIM

    k_x, k_a0, k_a1, k_p = jax.random.split(key, 4)
    x = jax.random.normal(k_x, (N0, D), dtype=jnp.float32)

    def make_adj(k, n_in, n_out):
        m = jax.random.bernoulli(k, 0.3, (n_in, n_in))
        m = jnp.logical_and(m, (jnp.arange(n_in) < n_out)[:, None])   # only targets receive edges
        m = m.at[jnp.arange(n_out), jnp.arange(n_out)].set(True)      # guarantee >= 1 neighbor
        return m.astype(jnp.int8)

    adj0 = make_adj(k_a0, N0, N1)
    adj1 = make_adj(k_a1, N1, N2)
    adjs = [(adj0, (N0, N1)), (adj1, (N1, N2))]

    def xavier(k, shape, gain=1.0):
        bound = gain * math.sqrt(6.0 / (shape[0] + shape[1]))
        return jax.random.uniform(k, shape, jnp.float32, -bound, bound)

    layer_params = []
    pkeys = jax.random.split(k_p, NUM_LAYERS)
    for i in range(NUM_LAYERS):
        ks = jax.random.split(pkeys[i], 7)
        wq = xavier(ks[0], (D, D)); bq = 0.02 * jax.random.normal(ks[1], (1, D), jnp.float32)
        wk = xavier(ks[2], (D, D)); bk = 0.02 * jax.random.normal(ks[3], (1, D), jnp.float32)
        wv = xavier(ks[4], (D, D)); bv = 0.02 * jax.random.normal(ks[5], (1, D), jnp.float32)
        w_gain = 1.0 if i == NUM_LAYERS - 1 else 0.1   # matches init_parameters
        ww = xavier(ks[6], (2 * D, D), gain=w_gain)
        bw = jnp.zeros((1, D), jnp.float32)
        layer_params.append((wq, bq, wk, bk, wv, bv, ww, bw))

    # tile_dst=16 -> layer 0 runs a 2-step "parallel" dst grid; layer 1 a single block.
    out = tgrec2_forward(x, adjs, layer_params, tile_dst=16)
    out = jax.block_until_ready(out)
    assert out.shape == (N2, D)
    assert bool(jnp.all(jnp.isfinite(out)))

    # sanity: compare with a pure-JAX f32 reference of the same math
    # (tolerance accommodates bf16 MXU inputs and the approximate reciprocal).
    ref = x
    for i, (adj, size) in enumerate(adjs):
        ref = _reference_layer(ref, adj, layer_params[i], i != NUM_LAYERS - 1)
        ref = ref[:size[1]]
    np.testing.assert_allclose(np.asarray(out), np.asarray(ref), rtol=5e-2, atol=2e-2)

    print("KERNEL_OK")
</pallas_src>

<mosaic_0001>
module attributes {stable_mosaic.version = 11 : i64} {
  func.func @_tgrec2_layer_kernel(%arg0: i32, %arg1: memref<32x32xf32, #tpu.memory_space<vmem>>, %arg2: memref<16x32xbf16, #tpu.memory_space<vmem>>, %arg3: memref<32x32xbf16, #tpu.memory_space<vmem>>, %arg4: memref<1x32xf32, #tpu.memory_space<vmem>>, %arg5: memref<32x64xbf16, #tpu.memory_space<vmem>>, %arg6: memref<1x64xf32, #tpu.memory_space<vmem>>, %arg7: memref<32x32xbf16, #tpu.memory_space<vmem>>, %arg8: memref<32x32xbf16, #tpu.memory_space<vmem>>, %arg9: memref<1x32xf32, #tpu.memory_space<vmem>>, %arg10: memref<16x32xf32, #tpu.memory_space<vmem>>) attributes {dimension_semantics = [#tpu.dimension_semantics<parallel>], iteration_bounds = array<i64: 1>, scalar_prefetch = 0 : i64, scratch_operands = 0 : i64, tpu.core_type = #tpu.core_type<tc>, window_params = [{pipeline_mode = #tpu.pipeline_mode<synchronous>, transform_indices = @transform_0, window_bounds = array<i64: 32, 32>}, {transform_indices = @transform_1, window_bounds = array<i64: 16, 32>}, {pipeline_mode = #tpu.pipeline_mode<synchronous>, transform_indices = @transform_2, window_bounds = array<i64: 32, 32>}, {pipeline_mode = #tpu.pipeline_mode<synchronous>, transform_indices = @transform_3, window_bounds = array<i64: 1, 32>}, {pipeline_mode = #tpu.pipeline_mode<synchronous>, transform_indices = @transform_4, window_bounds = array<i64: 32, 64>}, {pipeline_mode = #tpu.pipeline_mode<synchronous>, transform_indices = @transform_5, window_bounds = array<i64: 1, 64>}, {pipeline_mode = #tpu.pipeline_mode<synchronous>, transform_indices = @transform_6, window_bounds = array<i64: 32, 32>}, {pipeline_mode = #tpu.pipeline_mode<synchronous>, transform_indices = @transform_7, window_bounds = array<i64: 32, 32>}, {pipeline_mode = #tpu.pipeline_mode<synchronous>, transform_indices = @transform_8, window_bounds = array<i64: 1, 32>}, {transform_indices = @transform_9, window_bounds = array<i64: 16, 32>}]} {
    %c16_i32 = arith.constant 16 : i32
    %0 = arith.muli %arg0, %c16_i32 : i32
    %1 = tpu.assume_multiple %0, 8 : i32
    %c0 = arith.constant 0 : index
    %c0_0 = arith.constant 0 : index
    %2 = vector.load %arg1[%c0, %c0_0] : memref<32x32xf32, #tpu.memory_space<vmem>>, vector<32x32xf32>
    %3 = arith.truncf %2 : vector<32x32xf32> to vector<32x32xbf16>
    %4 = arith.index_cast %1 : i32 to index
    %c0_1 = arith.constant 0 : index
    %5 = vector.load %arg1[%4, %c0_1] : memref<32x32xf32, #tpu.memory_space<vmem>>, vector<16x32xf32>
    %6 = arith.truncf %5 : vector<16x32xf32> to vector<16x32xbf16>
    %c0_2 = arith.constant 0 : index
    %c0_3 = arith.constant 0 : index
    %7 = vector.load %arg3[%c0_2, %c0_3] : memref<32x32xbf16, #tpu.memory_space<vmem>>, vector<32x32xbf16>
    %cst = arith.constant dense<0.000000e+00> : vector<16x32xf32>
    %8 = tpu.matmul %6, %7, %cst {dimension_numbers = #tpu.dot_dimension_numbers<[1], [0], [0], [1], [0, 0, 1, 1], [], []>} : vector<16x32xbf16>, vector<32x32xbf16>, vector<16x32xf32> -> vector<16x32xf32>
    %c0_4 = arith.constant 0 : index
    %c0_5 = arith.constant 0 : index
    %9 = vector.load %arg4[%c0_4, %c0_5] : memref<1x32xf32, #tpu.memory_space<vmem>>, vector<1x32xf32>
    %10 = vector.broadcast %9 : vector<1x32xf32> to vector<16x32xf32>
    %11 = arith.addf %8, %10 : vector<16x32xf32>
    %c0_6 = arith.constant 0 : index
    %c0_7 = arith.constant 0 : index
    %12 = vector.load %arg5[%c0_6, %c0_7] : memref<32x64xbf16, #tpu.memory_space<vmem>>, vector<32x64xbf16>
    %cst_8 = arith.constant dense<0.000000e+00> : vector<32x64xf32>
    %13 = tpu.matmul %3, %12, %cst_8 {dimension_numbers = #tpu.dot_dimension_numbers<[1], [0], [0], [1], [0, 0, 1, 1], [], []>} : vector<32x32xbf16>, vector<32x64xbf16>, vector<32x64xf32> -> vector<32x64xf32>
    %c0_9 = arith.constant 0 : index
    %c0_10 = arith.constant 0 : index
    %14 = vector.load %arg6[%c0_9, %c0_10] : memref<1x64xf32, #tpu.memory_space<vmem>>, vector<1x64xf32>
    %15 = vector.broadcast %14 : vector<1x64xf32> to vector<32x64xf32>
    %16 = arith.addf %13, %15 : vector<32x64xf32>
    %17 = vector.extract_strided_slice %16 {offsets = [0, 0], sizes = [32, 32], strides = [1, 1]} : vector<32x64xf32> to vector<32x32xf32>
    %18 = vector.extract_strided_slice %16 {offsets = [0, 32], sizes = [32, 32], strides = [1, 1]} : vector<32x64xf32> to vector<32x32xf32>
    %19 = arith.truncf %11 : vector<16x32xf32> to vector<16x32xbf16>
    %20 = vector.extract_strided_slice %19 {offsets = [0, 0], sizes = [16, 4], strides = [1, 1]} : vector<16x32xbf16> to vector<16x4xbf16>
    %21 = vector.extract_strided_slice %19 {offsets = [0, 4], sizes = [16, 4], strides = [1, 1]} : vector<16x32xbf16> to vector<16x4xbf16>
    %22 = vector.extract_strided_slice %19 {offsets = [0, 8], sizes = [16, 4], strides = [1, 1]} : vector<16x32xbf16> to vector<16x4xbf16>
    %23 = vector.extract_strided_slice %19 {offsets = [0, 12], sizes = [16, 4], strides = [1, 1]} : vector<16x32xbf16> to vector<16x4xbf16>
    %24 = vector.extract_strided_slice %19 {offsets = [0, 16], sizes = [16, 4], strides = [1, 1]} : vector<16x32xbf16> to vector<16x4xbf16>
    %25 = vector.extract_strided_slice %19 {offsets = [0, 20], sizes = [16, 4], strides = [1, 1]} : vector<16x32xbf16> to vector<16x4xbf16>
    %26 = vector.extract_strided_slice %19 {offsets = [0, 24], sizes = [16, 4], strides = [1, 1]} : vector<16x32xbf16> to vector<16x4xbf16>
    %27 = vector.extract_strided_slice %19 {offsets = [0, 28], sizes = [16, 4], strides = [1, 1]} : vector<16x32xbf16> to vector<16x4xbf16>
    %28 = vector.shape_cast %20 : vector<16x4xbf16> to vector<1x16x4xbf16>
    %29 = vector.shape_cast %21 : vector<16x4xbf16> to vector<1x16x4xbf16>
    %30 = vector.shape_cast %22 : vector<16x4xbf16> to vector<1x16x4xbf16>
    %31 = vector.shape_cast %23 : vector<16x4xbf16> to vector<1x16x4xbf16>
    %32 = vector.shape_cast %24 : vector<16x4xbf16> to vector<1x16x4xbf16>
    %33 = vector.shape_cast %25 : vector<16x4xbf16> to vector<1x16x4xbf16>
    %34 = vector.shape_cast %26 : vector<16x4xbf16> to vector<1x16x4xbf16>
    %35 = vector.shape_cast %27 : vector<16x4xbf16> to vector<1x16x4xbf16>
    %36 = tpu.concatenate %28, %29, %30, %31, %32, %33, %34, %35 in 0 : vector<1x16x4xbf16>, vector<1x16x4xbf16>, vector<1x16x4xbf16>, vector<1x16x4xbf16>, vector<1x16x4xbf16>, vector<1x16x4xbf16>, vector<1x16x4xbf16>, vector<1x16x4xbf16> -> vector<8x16x4xbf16>
    %37 = arith.truncf %17 : vector<32x32xf32> to vector<32x32xbf16>
    %38 = vector.extract_strided_slice %37 {offsets = [0, 0], sizes = [32, 4], strides = [1, 1]} : vector<32x32xbf16> to vector<32x4xbf16>
    %39 = vector.extract_strided_slice %37 {offsets = [0, 4], sizes = [32, 4], strides = [1, 1]} : vector<32x32xbf16> to vector<32x4xbf16>
    %40 = vector.extract_strided_slice %37 {offsets = [0, 8], sizes = [32, 4], strides = [1, 1]} : vector<32x32xbf16> to vector<32x4xbf16>
    %41 = vector.extract_strided_slice %37 {offsets = [0, 12], sizes = [32, 4], strides = [1, 1]} : vector<32x32xbf16> to vector<32x4xbf16>
    %42 = vector.extract_strided_slice %37 {offsets = [0, 16], sizes = [32, 4], strides = [1, 1]} : vector<32x32xbf16> to vector<32x4xbf16>
    %43 = vector.extract_strided_slice %37 {offsets = [0, 20], sizes = [32, 4], strides = [1, 1]} : vector<32x32xbf16> to vector<32x4xbf16>
    %44 = vector.extract_strided_slice %37 {offsets = [0, 24], sizes = [32, 4], strides = [1, 1]} : vector<32x32xbf16> to vector<32x4xbf16>
    %45 = vector.extract_strided_slice %37 {offsets = [0, 28], sizes = [32, 4], strides = [1, 1]} : vector<32x32xbf16> to vector<32x4xbf16>
    %46 = vector.shape_cast %38 : vector<32x4xbf16> to vector<1x32x4xbf16>
    %47 = vector.shape_cast %39 : vector<32x4xbf16> to vector<1x32x4xbf16>
    %48 = vector.shape_cast %40 : vector<32x4xbf16> to vector<1x32x4xbf16>
    %49 = vector.shape_cast %41 : vector<32x4xbf16> to vector<1x32x4xbf16>
    %50 = vector.shape_cast %42 : vector<32x4xbf16> to vector<1x32x4xbf16>
    %51 = vector.shape_cast %43 : vector<32x4xbf16> to vector<1x32x4xbf16>
    %52 = vector.shape_cast %44 : vector<32x4xbf16> to vector<1x32x4xbf16>
    %53 = vector.shape_cast %45 : vector<32x4xbf16> to vector<1x32x4xbf16>
    %54 = tpu.concatenate %46, %47, %48, %49, %50, %51, %52, %53 in 0 : vector<1x32x4xbf16>, vector<1x32x4xbf16>, vector<1x32x4xbf16>, vector<1x32x4xbf16>, vector<1x32x4xbf16>, vector<1x32x4xbf16>, vector<1x32x4xbf16>, vector<1x32x4xbf16> -> vector<8x32x4xbf16>
    %55 = arith.truncf %18 : vector<32x32xf32> to vector<32x32xbf16>
    %56 = vector.extract_strided_slice %55 {offsets = [0, 0], sizes = [32, 4], strides = [1, 1]} : vector<32x32xbf16> to vector<32x4xbf16>
    %57 = vector.extract_strided_slice %55 {offsets = [0, 4], sizes = [32, 4], strides = [1, 1]} : vector<32x32xbf16> to vector<32x4xbf16>
    %58 = vector.extract_strided_slice %55 {offsets = [0, 8], sizes = [32, 4], strides = [1, 1]} : vector<32x32xbf16> to vector<32x4xbf16>
    %59 = vector.extract_strided_slice %55 {offsets = [0, 12], sizes = [32, 4], strides = [1, 1]} : vector<32x32xbf16> to vector<32x4xbf16>
    %60 = vector.extract_strided_slice %55 {offsets = [0, 16], sizes = [32, 4], strides = [1, 1]} : vector<32x32xbf16> to vector<32x4xbf16>
    %61 = vector.extract_strided_slice %55 {offsets = [0, 20], sizes = [32, 4], strides = [1, 1]} : vector<32x32xbf16> to vector<32x4xbf16>
    %62 = vector.extract_strided_slice %55 {offsets = [0, 24], sizes = [32, 4], strides = [1, 1]} : vector<32x32xbf16> to vector<32x4xbf16>
    %63 = vector.extract_strided_slice %55 {offsets = [0, 28], sizes = [32, 4], strides = [1, 1]} : vector<32x32xbf16> to vector<32x4xbf16>
    %64 = vector.shape_cast %56 : vector<32x4xbf16> to vector<1x32x4xbf16>
    %65 = vector.shape_cast %57 : vector<32x4xbf16> to vector<1x32x4xbf16>
    %66 = vector.shape_cast %58 : vector<32x4xbf16> to vector<1x32x4xbf16>
    %67 = vector.shape_cast %59 : vector<32x4xbf16> to vector<1x32x4xbf16>
    %68 = vector.shape_cast %60 : vector<32x4xbf16> to vector<1x32x4xbf16>
    %69 = vector.shape_cast %61 : vector<32x4xbf16> to vector<1x32x4xbf16>
    %70 = vector.shape_cast %62 : vector<32x4xbf16> to vector<1x32x4xbf16>
    %71 = vector.shape_cast %63 : vector<32x4xbf16> to vector<1x32x4xbf16>
    %72 = tpu.concatenate %64, %65, %66, %67, %68, %69, %70, %71 in 0 : vector<1x32x4xbf16>, vector<1x32x4xbf16>, vector<1x32x4xbf16>, vector<1x32x4xbf16>, vector<1x32x4xbf16>, vector<1x32x4xbf16>, vector<1x32x4xbf16>, vector<1x32x4xbf16> -> vector<8x32x4xbf16>
    %c0_11 = arith.constant 0 : index
    %c0_12 = arith.constant 0 : index
    %73 = vector.load %arg2[%c0_11, %c0_12] : memref<16x32xbf16, #tpu.memory_space<vmem>>, vector<16x32xbf16>
    %74 = arith.extf %73 : vector<16x32xbf16> to vector<16x32xf32>
    %cst_13 = arith.constant 1.000000e+00 : f32
    %75 = vector.broadcast %cst_13 : f32 to vector<16x32xf32>
    %76 = arith.subf %74, %75 : vector<16x32xf32>
    %cst_14 = arith.constant 1.000000e+30 : f32
    %77 = vector.broadcast %cst_14 : f32 to vector<16x32xf32>
    %78 = arith.mulf %76, %77 : vector<16x32xf32>
    "tpu.trace_start"() <{level = 10 : i32, message = "htd,hnd->htn"}> : () -> ()
    %cst_15 = arith.constant dense<0.000000e+00> : vector<8x16x32xf32>
    %79 = tpu.matmul %36, %54, %cst_15 {dimension_numbers = #tpu.dot_dimension_numbers<[2], [2], [1], [1], [0, 0, 0, 1, 1, 1], [0], [0]>} : vector<8x16x4xbf16>, vector<8x32x4xbf16>, vector<8x16x32xf32> -> vector<8x16x32xf32>
    "tpu.trace_stop"() : () -> ()
    %80 = vector.shape_cast %78 : vector<16x32xf32> to vector<1x16x32xf32>
    %81 = vector.broadcast %80 : vector<1x16x32xf32> to vector<8x16x32xf32>
    %82 = arith.addf %79, %81 : vector<8x16x32xf32>
    %cst_16 = arith.constant dense<0xFF800000> : vector<8x16xf32>
    %83 = vector.multi_reduction <maximumf>, %82, %cst_16 [2] : vector<8x16x32xf32> to vector<8x16xf32>
    %84 = vector.shape_cast %83 : vector<8x16xf32> to vector<8x16x1xf32>
    %85 = vector.broadcast %84 : vector<8x16x1xf32> to vector<8x16x32xf32>
    %86 = arith.subf %82, %85 : vector<8x16x32xf32>
    %87 = math.exp %86 : vector<8x16x32xf32>
    %88 = vector.shape_cast %74 : vector<16x32xf32> to vector<1x16x32xf32>
    %89 = vector.broadcast %88 : vector<1x16x32xf32> to vector<8x16x32xf32>
    %90 = arith.mulf %87, %89 : vector<8x16x32xf32>
    %cst_17 = arith.constant dense<0.000000e+00> : vector<8x16xf32>
    %91 = vector.multi_reduction <add>, %90, %cst_17 [2] : vector<8x16x32xf32> to vector<8x16xf32>
    %92 = vector.shape_cast %91 : vector<8x16xf32> to vector<8x16x1xf32>
    %cst_18 = arith.constant 1.000000e-16 : f32
    %93 = vector.broadcast %cst_18 : f32 to vector<8x16x1xf32>
    %94 = arith.addf %92, %93 : vector<8x16x1xf32>
    %95 = arith.truncf %90 : vector<8x16x32xf32> to vector<8x16x32xbf16>
    "tpu.trace_start"() <{level = 10 : i32, message = "htn,hnd->htd"}> : () -> ()
    %cst_19 = arith.constant dense<0.000000e+00> : vector<8x16x4xf32>
    %96 = tpu.matmul %95, %72, %cst_19 {dimension_numbers = #tpu.dot_dimension_numbers<[2], [1], [1], [2], [0, 0, 0, 1, 1, 2], [0], [0]>} : vector<8x16x32xbf16>, vector<8x32x4xbf16>, vector<8x16x4xf32> -> vector<8x16x4xf32>
    "tpu.trace_stop"() : () -> ()
    %97 = tpu.reciprocal %94 {approx = true} : vector<8x16x1xf32> -> vector<8x16x1xf32>
    %98 = vector.broadcast %97 : vector<8x16x1xf32> to vector<8x16x4xf32>
    %99 = arith.mulf %96, %98 : vector<8x16x4xf32>
    %100 = vector.extract_strided_slice %99 {offsets = [0, 0, 0], sizes = [1, 16, 4], strides = [1, 1, 1]} : vector<8x16x4xf32> to vector<1x16x4xf32>
    %101 = vector.shape_cast %100 : vector<1x16x4xf32> to vector<16x4xf32>
    %102 = vector.extract_strided_slice %99 {offsets = [1, 0, 0], sizes = [1, 16, 4], strides = [1, 1, 1]} : vector<8x16x4xf32> to vector<1x16x4xf32>
    %103 = vector.shape_cast %102 : vector<1x16x4xf32> to vector<16x4xf32>
    %104 = vector.extract_strided_slice %99 {offsets = [2, 0, 0], sizes = [1, 16, 4], strides = [1, 1, 1]} : vector<8x16x4xf32> to vector<1x16x4xf32>
    %105 = vector.shape_cast %104 : vector<1x16x4xf32> to vector<16x4xf32>
    %106 = vector.extract_strided_slice %99 {offsets = [3, 0, 0], sizes = [1, 16, 4], strides = [1, 1, 1]} : vector<8x16x4xf32> to vector<1x16x4xf32>
    %107 = vector.shape_cast %106 : vector<1x16x4xf32> to vector<16x4xf32>
    %108 = vector.extract_strided_slice %99 {offsets = [4, 0, 0], sizes = [1, 16, 4], strides = [1, 1, 1]} : vector<8x16x4xf32> to vector<1x16x4xf32>
    %109 = vector.shape_cast %108 : vector<1x16x4xf32> to vector<16x4xf32>
    %110 = vector.extract_strided_slice %99 {offsets = [5, 0, 0], sizes = [1, 16, 4], strides = [1, 1, 1]} : vector<8x16x4xf32> to vector<1x16x4xf32>
    %111 = vector.shape_cast %110 : vector<1x16x4xf32> to vector<16x4xf32>
    %112 = vector.extract_strided_slice %99 {offsets = [6, 0, 0], sizes = [1, 16, 4], strides = [1, 1, 1]} : vector<8x16x4xf32> to vector<1x16x4xf32>
    %113 = vector.shape_cast %112 : vector<1x16x4xf32> to vector<16x4xf32>
    %114 = vector.extract_strided_slice %99 {offsets = [7, 0, 0], sizes = [1, 16, 4], strides = [1, 1, 1]} : vector<8x16x4xf32> to vector<1x16x4xf32>
    %115 = vector.shape_cast %114 : vector<1x16x4xf32> to vector<16x4xf32>
    %116 = tpu.concatenate %101, %103, %105, %107, %109, %111, %113, %115 in 1 : vector<16x4xf32>, vector<16x4xf32>, vector<16x4xf32>, vector<16x4xf32>, vector<16x4xf32>, vector<16x4xf32>, vector<16x4xf32>, vector<16x4xf32> -> vector<16x32xf32>
    %117 = arith.truncf %116 : vector<16x32xf32> to vector<16x32xbf16>
    %c0_20 = arith.constant 0 : index
    %c0_21 = arith.constant 0 : index
    %118 = vector.load %arg7[%c0_20, %c0_21] : memref<32x32xbf16, #tpu.memory_space<vmem>>, vector<32x32xbf16>
    %cst_22 = arith.constant dense<0.000000e+00> : vector<16x32xf32>
    %119 = tpu.matmul %117, %118, %cst_22 {dimension_numbers = #tpu.dot_dimension_numbers<[1], [0], [0], [1], [0, 0, 1, 1], [], []>} : vector<16x32xbf16>, vector<32x32xbf16>, vector<16x32xf32> -> vector<16x32xf32>
    %c0_23 = arith.constant 0 : index
    %c0_24 = arith.constant 0 : index
    %120 = vector.load %arg8[%c0_23, %c0_24] : memref<32x32xbf16, #tpu.memory_space<vmem>>, vector<32x32xbf16>
    %cst_25 = arith.constant dense<0.000000e+00> : vector<16x32xf32>
    %121 = tpu.matmul %6, %120, %cst_25 {dimension_numbers = #tpu.dot_dimension_numbers<[1], [0], [0], [1], [0, 0, 1, 1], [], []>} : vector<16x32xbf16>, vector<32x32xbf16>, vector<16x32xf32> -> vector<16x32xf32>
    %122 = arith.addf %119, %121 : vector<16x32xf32>
    %c0_26 = arith.constant 0 : index
    %c0_27 = arith.constant 0 : index
    %123 = vector.load %arg9[%c0_26, %c0_27] : memref<1x32xf32, #tpu.memory_space<vmem>>, vector<1x32xf32>
    %124 = vector.broadcast %123 : vector<1x32xf32> to vector<16x32xf32>
    %125 = arith.addf %122, %124 : vector<16x32xf32>
    %c0_28 = arith.constant 0 : index
    %c0_29 = arith.constant 0 : index
    %126 = vector.load %arg10[%c0_28, %c0_29] : memref<16x32xf32, #tpu.memory_space<vmem>>, vector<16x32xf32>
    tpu.vector_store %arg10[%c0_28, %c0_29], %125 {strides = array<i32>} : memref<16x32xf32, #tpu.memory_space<vmem>>, vector<16x32xf32>,
    return
  }
  func.func @transform_0(%arg0: i32) -> (i32, i32) {
    %c0_i32 = arith.constant 0 : i32
    %c0_i32_0 = arith.constant 0 : i32
    %c0_i32_1 = arith.constant 0 : i32
    return %c0_i32, %c0_i32_0 : i32, i32
  }
  func.func @transform_1(%arg0: i32) -> (i32, i32) {
    %c0_i32 = arith.constant 0 : i32
    %c0_i32_0 = arith.constant 0 : i32
    return %arg0, %c0_i32 : i32, i32
  }
  func.func @transform_2(%arg0: i32) -> (i32, i32) {
    %c0_i32 = arith.constant 0 : i32
    %c0_i32_0 = arith.constant 0 : i32
    %c0_i32_1 = arith.constant 0 : i32
    return %c0_i32, %c0_i32_0 : i32, i32
  }
  func.func @transform_3(%arg0: i32) -> (i32, i32) {
    %c0_i32 = arith.constant 0 : i32
    %c0_i32_0 = arith.constant 0 : i32
    %c0_i32_1 = arith.constant 0 : i32
    return %c0_i32, %c0_i32_0 : i32, i32
  }
  func.func @transform_4(%arg0: i32) -> (i32, i32) {
    %c0_i32 = arith.constant 0 : i32
    %c0_i32_0 = arith.constant 0 : i32
    %c0_i32_1 = arith.constant 0 : i32
    return %c0_i32, %c0_i32_0 : i32, i32
  }
  func.func @transform_5(%arg0: i32) -> (i32, i32) {
    %c0_i32 = arith.constant 0 : i32
    %c0_i32_0 = arith.constant 0 : i32
    %c0_i32_1 = arith.constant 0 : i32
    return %c0_i32, %c0_i32_0 : i32, i32
  }
  func.func @transform_6(%arg0: i32) -> (i32, i32) {
    %c0_i32 = arith.constant 0 : i32
    %c0_i32_0 = arith.constant 0 : i32
    %c0_i32_1 = arith.constant 0 : i32
    return %c0_i32, %c0_i32_0 : i32, i32
  }
  func.func @transform_7(%arg0: i32) -> (i32, i32) {
    %c0_i32 = arith.constant 0 : i32
    %c0_i32_0 = arith.constant 0 : i32
    %c0_i32_1 = arith.constant 0 : i32
    return %c0_i32, %c0_i32_0 : i32, i32
  }
  func.func @transform_8(%arg0: i32) -> (i32, i32) {
    %c0_i32 = arith.constant 0 : i32
    %c0_i32_0 = arith.constant 0 : i32
    %c0_i32_1 = arith.constant 0 : i32
    return %c0_i32, %c0_i32_0 : i32, i32
  }
  func.func @transform_9(%arg0: i32) -> (i32, i32) {
    %c0_i32 = arith.constant 0 : i32
    %c0_i32_0 = arith.constant 0 : i32
    return %arg0, %c0_i32 : i32, i32
  }
}

module attributes {stable_mosaic.version = 11 : i64} {
  func.func @_tgrec2_layer_kernel(%arg0: i32, %arg1: memref<64x32xf32, #tpu.memory_space<vmem>>, %arg2: memref<16x64xbf16, #tpu.memory_space<vmem>>, %arg3: memref<32x32xbf16, #tpu.memory_space<vmem>>, %arg4: memref<1x32xf32, #tpu.memory_space<vmem>>, %arg5: memref<32x64xbf16, #tpu.memory_space<vmem>>, %arg6: memref<1x64xf32, #tpu.memory_space<vmem>>, %arg7: memref<32x32xbf16, #tpu.memory_space<vmem>>, %arg8: memref<32x32xbf16, #tpu.memory_space<vmem>>, %arg9: memref<1x32xf32, #tpu.memory_space<vmem>>, %arg10: memref<16x32xf32, #tpu.memory_space<vmem>>) attributes {dimension_semantics = [#tpu.dimension_semantics<parallel>], iteration_bounds = array<i64: 2>, scalar_prefetch = 0 : i64, scratch_operands = 0 : i64, tpu.core_type = #tpu.core_type<tc>, window_params = [{pipeline_mode = #tpu.pipeline_mode<synchronous>, transform_indices = @transform_0, window_bounds = array<i64: 64, 32>}, {transform_indices = @transform_1, window_bounds = array<i64: 16, 64>}, {pipeline_mode = #tpu.pipeline_mode<synchronous>, transform_indices = @transform_2, window_bounds = array<i64: 32, 32>}, {pipeline_mode = #tpu.pipeline_mode<synchronous>, transform_indices = @transform_3, window_bounds = array<i64: 1, 32>}, {pipeline_mode = #tpu.pipeline_mode<synchronous>, transform_indices = @transform_4, window_bounds = array<i64: 32, 64>}, {pipeline_mode = #tpu.pipeline_mode<synchronous>, transform_indices = @transform_5, window_bounds = array<i64: 1, 64>}, {pipeline_mode = #tpu.pipeline_mode<synchronous>, transform_indices = @transform_6, window_bounds = array<i64: 32, 32>}, {pipeline_mode = #tpu.pipeline_mode<synchronous>, transform_indices = @transform_7, window_bounds = array<i64: 32, 32>}, {pipeline_mode = #tpu.pipeline_mode<synchronous>, transform_indices = @transform_8, window_bounds = array<i64: 1, 32>}, {transform_indices = @transform_9, window_bounds = array<i64: 16, 32>}]} {
    %c16_i32 = arith.constant 16 : i32
    %0 = arith.muli %arg0, %c16_i32 : i32
    %1 = tpu.assume_multiple %0, 8 : i32
    %c0 = arith.constant 0 : index
    %c0_0 = arith.constant 0 : index
    %2 = vector.load %arg1[%c0, %c0_0] : memref<64x32xf32, #tpu.memory_space<vmem>>, vector<64x32xf32>
    %3 = arith.truncf %2 : vector<64x32xf32> to vector<64x32xbf16>
    %4 = arith.index_cast %1 : i32 to index
    %c0_1 = arith.constant 0 : index
    %5 = vector.load %arg1[%4, %c0_1] : memref<64x32xf32, #tpu.memory_space<vmem>>, vector<16x32xf32>
    %6 = arith.truncf %5 : vector<16x32xf32> to vector<16x32xbf16>
    %c0_2 = arith.constant 0 : index
    %c0_3 = arith.constant 0 : index
    %7 = vector.load %arg3[%c0_2, %c0_3] : memref<32x32xbf16, #tpu.memory_space<vmem>>, vector<32x32xbf16>
    %cst = arith.constant dense<0.000000e+00> : vector<16x32xf32>
    %8 = tpu.matmul %6, %7, %cst {dimension_numbers = #tpu.dot_dimension_numbers<[1], [0], [0], [1], [0, 0, 1, 1], [], []>} : vector<16x32xbf16>, vector<32x32xbf16>, vector<16x32xf32> -> vector<16x32xf32>
    %c0_4 = arith.constant 0 : index
    %c0_5 = arith.constant 0 : index
    %9 = vector.load %arg4[%c0_4, %c0_5] : memref<1x32xf32, #tpu.memory_space<vmem>>, vector<1x32xf32>
    %10 = vector.broadcast %9 : vector<1x32xf32> to vector<16x32xf32>
    %11 = arith.addf %8, %10 : vector<16x32xf32>
    %c0_6 = arith.constant 0 : index
    %c0_7 = arith.constant 0 : index
    %12 = vector.load %arg5[%c0_6, %c0_7] : memref<32x64xbf16, #tpu.memory_space<vmem>>, vector<32x64xbf16>
    %cst_8 = arith.constant dense<0.000000e+00> : vector<64x64xf32>
    %13 = tpu.matmul %3, %12, %cst_8 {dimension_numbers = #tpu.dot_dimension_numbers<[1], [0], [0], [1], [0, 0, 1, 1], [], []>} : vector<64x32xbf16>, vector<32x64xbf16>, vector<64x64xf32> -> vector<64x64xf32>
    %c0_9 = arith.constant 0 : index
    %c0_10 = arith.constant 0 : index
    %14 = vector.load %arg6[%c0_9, %c0_10] : memref<1x64xf32, #tpu.memory_space<vmem>>, vector<1x64xf32>
    %15 = vector.broadcast %14 : vector<1x64xf32> to vector<64x64xf32>
    %16 = arith.addf %13, %15 : vector<64x64xf32>
    %17 = vector.extract_strided_slice %16 {offsets = [0, 0], sizes = [64, 32], strides = [1, 1]} : vector<64x64xf32> to vector<64x32xf32>
    %18 = vector.extract_strided_slice %16 {offsets = [0, 32], sizes = [64, 32], strides = [1, 1]} : vector<64x64xf32> to vector<64x32xf32>
    %19 = arith.truncf %11 : vector<16x32xf32> to vector<16x32xbf16>
    %20 = vector.extract_strided_slice %19 {offsets = [0, 0], sizes = [16, 4], strides = [1, 1]} : vector<16x32xbf16> to vector<16x4xbf16>
    %21 = vector.extract_strided_slice %19 {offsets = [0, 4], sizes = [16, 4], strides = [1, 1]} : vector<16x32xbf16> to vector<16x4xbf16>
    %22 = vector.extract_strided_slice %19 {offsets = [0, 8], sizes = [16, 4], strides = [1, 1]} : vector<16x32xbf16> to vector<16x4xbf16>
    %23 = vector.extract_strided_slice %19 {offsets = [0, 12], sizes = [16, 4], strides = [1, 1]} : vector<16x32xbf16> to vector<16x4xbf16>
    %24 = vector.extract_strided_slice %19 {offsets = [0, 16], sizes = [16, 4], strides = [1, 1]} : vector<16x32xbf16> to vector<16x4xbf16>
    %25 = vector.extract_strided_slice %19 {offsets = [0, 20], sizes = [16, 4], strides = [1, 1]} : vector<16x32xbf16> to vector<16x4xbf16>
    %26 = vector.extract_strided_slice %19 {offsets = [0, 24], sizes = [16, 4], strides = [1, 1]} : vector<16x32xbf16> to vector<16x4xbf16>
    %27 = vector.extract_strided_slice %19 {offsets = [0, 28], sizes = [16, 4], strides = [1, 1]} : vector<16x32xbf16> to vector<16x4xbf16>
    %28 = vector.shape_cast %20 : vector<16x4xbf16> to vector<1x16x4xbf16>
    %29 = vector.shape_cast %21 : vector<16x4xbf16> to vector<1x16x4xbf16>
    %30 = vector.shape_cast %22 : vector<16x4xbf16> to vector<1x16x4xbf16>
    %31 = vector.shape_cast %23 : vector<16x4xbf16> to vector<1x16x4xbf16>
    %32 = vector.shape_cast %24 : vector<16x4xbf16> to vector<1x16x4xbf16>
    %33 = vector.shape_cast %25 : vector<16x4xbf16> to vector<1x16x4xbf16>
    %34 = vector.shape_cast %26 : vector<16x4xbf16> to vector<1x16x4xbf16>
    %35 = vector.shape_cast %27 : vector<16x4xbf16> to vector<1x16x4xbf16>
    %36 = tpu.concatenate %28, %29, %30, %31, %32, %33, %34, %35 in 0 : vector<1x16x4xbf16>, vector<1x16x4xbf16>, vector<1x16x4xbf16>, vector<1x16x4xbf16>, vector<1x16x4xbf16>, vector<1x16x4xbf16>, vector<1x16x4xbf16>, vector<1x16x4xbf16> -> vector<8x16x4xbf16>
    %37 = arith.truncf %17 : vector<64x32xf32> to vector<64x32xbf16>
    %38 = vector.extract_strided_slice %37 {offsets = [0, 0], sizes = [64, 4], strides = [1, 1]} : vector<64x32xbf16> to vector<64x4xbf16>
    %39 = vector.extract_strided_slice %37 {offsets = [0, 4], sizes = [64, 4], strides = [1, 1]} : vector<64x32xbf16> to vector<64x4xbf16>
    %40 = vector.extract_strided_slice %37 {offsets = [0, 8], sizes = [64, 4], strides = [1, 1]} : vector<64x32xbf16> to vector<64x4xbf16>
    %41 = vector.extract_strided_slice %37 {offsets = [0, 12], sizes = [64, 4], strides = [1, 1]} : vector<64x32xbf16> to vector<64x4xbf16>
    %42 = vector.extract_strided_slice %37 {offsets = [0, 16], sizes = [64, 4], strides = [1, 1]} : vector<64x32xbf16> to vector<64x4xbf16>
    %43 = vector.extract_strided_slice %37 {offsets = [0, 20], sizes = [64, 4], strides = [1, 1]} : vector<64x32xbf16> to vector<64x4xbf16>
    %44 = vector.extract_strided_slice %37 {offsets = [0, 24], sizes = [64, 4], strides = [1, 1]} : vector<64x32xbf16> to vector<64x4xbf16>
    %45 = vector.extract_strided_slice %37 {offsets = [0, 28], sizes = [64, 4], strides = [1, 1]} : vector<64x32xbf16> to vector<64x4xbf16>
    %46 = vector.shape_cast %38 : vector<64x4xbf16> to vector<1x64x4xbf16>
    %47 = vector.shape_cast %39 : vector<64x4xbf16> to vector<1x64x4xbf16>
    %48 = vector.shape_cast %40 : vector<64x4xbf16> to vector<1x64x4xbf16>
    %49 = vector.shape_cast %41 : vector<64x4xbf16> to vector<1x64x4xbf16>
    %50 = vector.shape_cast %42 : vector<64x4xbf16> to vector<1x64x4xbf16>
    %51 = vector.shape_cast %43 : vector<64x4xbf16> to vector<1x64x4xbf16>
    %52 = vector.shape_cast %44 : vector<64x4xbf16> to vector<1x64x4xbf16>
    %53 = vector.shape_cast %45 : vector<64x4xbf16> to vector<1x64x4xbf16>
    %54 = tpu.concatenate %46, %47, %48, %49, %50, %51, %52, %53 in 0 : vector<1x64x4xbf16>, vector<1x64x4xbf16>, vector<1x64x4xbf16>, vector<1x64x4xbf16>, vector<1x64x4xbf16>, vector<1x64x4xbf16>, vector<1x64x4xbf16>, vector<1x64x4xbf16> -> vector<8x64x4xbf16>
    %55 = arith.truncf %18 : vector<64x32xf32> to vector<64x32xbf16>
    %56 = vector.extract_strided_slice %55 {offsets = [0, 0], sizes = [64, 4], strides = [1, 1]} : vector<64x32xbf16> to vector<64x4xbf16>
    %57 = vector.extract_strided_slice %55 {offsets = [0, 4], sizes = [64, 4], strides = [1, 1]} : vector<64x32xbf16> to vector<64x4xbf16>
    %58 = vector.extract_strided_slice %55 {offsets = [0, 8], sizes = [64, 4], strides = [1, 1]} : vector<64x32xbf16> to vector<64x4xbf16>
    %59 = vector.extract_strided_slice %55 {offsets = [0, 12], sizes = [64, 4], strides = [1, 1]} : vector<64x32xbf16> to vector<64x4xbf16>
    %60 = vector.extract_strided_slice %55 {offsets = [0, 16], sizes = [64, 4], strides = [1, 1]} : vector<64x32xbf16> to vector<64x4xbf16>
    %61 = vector.extract_strided_slice %55 {offsets = [0, 20], sizes = [64, 4], strides = [1, 1]} : vector<64x32xbf16> to vector<64x4xbf16>
    %62 = vector.extract_strided_slice %55 {offsets = [0, 24], sizes = [64, 4], strides = [1, 1]} : vector<64x32xbf16> to vector<64x4xbf16>
    %63 = vector.extract_strided_slice %55 {offsets = [0, 28], sizes = [64, 4], strides = [1, 1]} : vector<64x32xbf16> to vector<64x4xbf16>
    %64 = vector.shape_cast %56 : vector<64x4xbf16> to vector<1x64x4xbf16>
    %65 = vector.shape_cast %57 : vector<64x4xbf16> to vector<1x64x4xbf16>
    %66 = vector.shape_cast %58 : vector<64x4xbf16> to vector<1x64x4xbf16>
    %67 = vector.shape_cast %59 : vector<64x4xbf16> to vector<1x64x4xbf16>
    %68 = vector.shape_cast %60 : vector<64x4xbf16> to vector<1x64x4xbf16>
    %69 = vector.shape_cast %61 : vector<64x4xbf16> to vector<1x64x4xbf16>
    %70 = vector.shape_cast %62 : vector<64x4xbf16> to vector<1x64x4xbf16>
    %71 = vector.shape_cast %63 : vector<64x4xbf16> to vector<1x64x4xbf16>
    %72 = tpu.concatenate %64, %65, %66, %67, %68, %69, %70, %71 in 0 : vector<1x64x4xbf16>, vector<1x64x4xbf16>, vector<1x64x4xbf16>, vector<1x64x4xbf16>, vector<1x64x4xbf16>, vector<1x64x4xbf16>, vector<1x64x4xbf16>, vector<1x64x4xbf16> -> vector<8x64x4xbf16>
    %c0_11 = arith.constant 0 : index
    %c0_12 = arith.constant 0 : index
    %73 = vector.load %arg2[%c0_11, %c0_12] : memref<16x64xbf16, #tpu.memory_space<vmem>>, vector<16x64xbf16>
    %74 = arith.extf %73 : vector<16x64xbf16> to vector<16x64xf32>
    %cst_13 = arith.constant 1.000000e+00 : f32
    %75 = vector.broadcast %cst_13 : f32 to vector<16x64xf32>
    %76 = arith.subf %74, %75 : vector<16x64xf32>
    %cst_14 = arith.constant 1.000000e+30 : f32
    %77 = vector.broadcast %cst_14 : f32 to vector<16x64xf32>
    %78 = arith.mulf %76, %77 : vector<16x64xf32>
    "tpu.trace_start"() <{level = 10 : i32, message = "htd,hnd->htn"}> : () -> ()
    %cst_15 = arith.constant dense<0.000000e+00> : vector<8x16x64xf32>
    %79 = tpu.matmul %36, %54, %cst_15 {dimension_numbers = #tpu.dot_dimension_numbers<[2], [2], [1], [1], [0, 0, 0, 1, 1, 1], [0], [0]>} : vector<8x16x4xbf16>, vector<8x64x4xbf16>, vector<8x16x64xf32> -> vector<8x16x64xf32>
    "tpu.trace_stop"() : () -> ()
    %80 = vector.shape_cast %78 : vector<16x64xf32> to vector<1x16x64xf32>
    %81 = vector.broadcast %80 : vector<1x16x64xf32> to vector<8x16x64xf32>
    %82 = arith.addf %79, %81 : vector<8x16x64xf32>
    %cst_16 = arith.constant dense<0xFF800000> : vector<8x16xf32>
    %83 = vector.multi_reduction <maximumf>, %82, %cst_16 [2] : vector<8x16x64xf32> to vector<8x16xf32>
    %84 = vector.shape_cast %83 : vector<8x16xf32> to vector<8x16x1xf32>
    %85 = vector.broadcast %84 : vector<8x16x1xf32> to vector<8x16x64xf32>
    %86 = arith.subf %82, %85 : vector<8x16x64xf32>
    %87 = math.exp %86 : vector<8x16x64xf32>
    %88 = vector.shape_cast %74 : vector<16x64xf32> to vector<1x16x64xf32>
    %89 = vector.broadcast %88 : vector<1x16x64xf32> to vector<8x16x64xf32>
    %90 = arith.mulf %87, %89 : vector<8x16x64xf32>
    %cst_17 = arith.constant dense<0.000000e+00> : vector<8x16xf32>
    %91 = vector.multi_reduction <add>, %90, %cst_17 [2] : vector<8x16x64xf32> to vector<8x16xf32>
    %92 = vector.shape_cast %91 : vector<8x16xf32> to vector<8x16x1xf32>
    %cst_18 = arith.constant 1.000000e-16 : f32
    %93 = vector.broadcast %cst_18 : f32 to vector<8x16x1xf32>
    %94 = arith.addf %92, %93 : vector<8x16x1xf32>
    %95 = arith.truncf %90 : vector<8x16x64xf32> to vector<8x16x64xbf16>
    "tpu.trace_start"() <{level = 10 : i32, message = "htn,hnd->htd"}> : () -> ()
    %cst_19 = arith.constant dense<0.000000e+00> : vector<8x16x4xf32>
    %96 = tpu.matmul %95, %72, %cst_19 {dimension_numbers = #tpu.dot_dimension_numbers<[2], [1], [1], [2], [0, 0, 0, 1, 1, 2], [0], [0]>} : vector<8x16x64xbf16>, vector<8x64x4xbf16>, vector<8x16x4xf32> -> vector<8x16x4xf32>
    "tpu.trace_stop"() : () -> ()
    %97 = tpu.reciprocal %94 {approx = true} : vector<8x16x1xf32> -> vector<8x16x1xf32>
    %98 = vector.broadcast %97 : vector<8x16x1xf32> to vector<8x16x4xf32>
    %99 = arith.mulf %96, %98 : vector<8x16x4xf32>
    %100 = vector.extract_strided_slice %99 {offsets = [0, 0, 0], sizes = [1, 16, 4], strides = [1, 1, 1]} : vector<8x16x4xf32> to vector<1x16x4xf32>
    %101 = vector.shape_cast %100 : vector<1x16x4xf32> to vector<16x4xf32>
    %102 = vector.extract_strided_slice %99 {offsets = [1, 0, 0], sizes = [1, 16, 4], strides = [1, 1, 1]} : vector<8x16x4xf32> to vector<1x16x4xf32>
    %103 = vector.shape_cast %102 : vector<1x16x4xf32> to vector<16x4xf32>
    %104 = vector.extract_strided_slice %99 {offsets = [2, 0, 0], sizes = [1, 16, 4], strides = [1, 1, 1]} : vector<8x16x4xf32> to vector<1x16x4xf32>
    %105 = vector.shape_cast %104 : vector<1x16x4xf32> to vector<16x4xf32>
    %106 = vector.extract_strided_slice %99 {offsets = [3, 0, 0], sizes = [1, 16, 4], strides = [1, 1, 1]} : vector<8x16x4xf32> to vector<1x16x4xf32>
    %107 = vector.shape_cast %106 : vector<1x16x4xf32> to vector<16x4xf32>
    %108 = vector.extract_strided_slice %99 {offsets = [4, 0, 0], sizes = [1, 16, 4], strides = [1, 1, 1]} : vector<8x16x4xf32> to vector<1x16x4xf32>
    %109 = vector.shape_cast %108 : vector<1x16x4xf32> to vector<16x4xf32>
    %110 = vector.extract_strided_slice %99 {offsets = [5, 0, 0], sizes = [1, 16, 4], strides = [1, 1, 1]} : vector<8x16x4xf32> to vector<1x16x4xf32>
    %111 = vector.shape_cast %110 : vector<1x16x4xf32> to vector<16x4xf32>
    %112 = vector.extract_strided_slice %99 {offsets = [6, 0, 0], sizes = [1, 16, 4], strides = [1, 1, 1]} : vector<8x16x4xf32> to vector<1x16x4xf32>
    %113 = vector.shape_cast %112 : vector<1x16x4xf32> to vector<16x4xf32>
    %114 = vector.extract_strided_slice %99 {offsets = [7, 0, 0], sizes = [1, 16, 4], strides = [1, 1, 1]} : vector<8x16x4xf32> to vector<1x16x4xf32>
    %115 = vector.shape_cast %114 : vector<1x16x4xf32> to vector<16x4xf32>
    %116 = tpu.concatenate %101, %103, %105, %107, %109, %111, %113, %115 in 1 : vector<16x4xf32>, vector<16x4xf32>, vector<16x4xf32>, vector<16x4xf32>, vector<16x4xf32>, vector<16x4xf32>, vector<16x4xf32>, vector<16x4xf32> -> vector<16x32xf32>
    %117 = arith.truncf %116 : vector<16x32xf32> to vector<16x32xbf16>
    %c0_20 = arith.constant 0 : index
    %c0_21 = arith.constant 0 : index
    %118 = vector.load %arg7[%c0_20, %c0_21] : memref<32x32xbf16, #tpu.memory_space<vmem>>, vector<32x32xbf16>
    %cst_22 = arith.constant dense<0.000000e+00> : vector<16x32xf32>
    %119 = tpu.matmul %117, %118, %cst_22 {dimension_numbers = #tpu.dot_dimension_numbers<[1], [0], [0], [1], [0, 0, 1, 1], [], []>} : vector<16x32xbf16>, vector<32x32xbf16>, vector<16x32xf32> -> vector<16x32xf32>
    %c0_23 = arith.constant 0 : index
    %c0_24 = arith.constant 0 : index
    %120 = vector.load %arg8[%c0_23, %c0_24] : memref<32x32xbf16, #tpu.memory_space<vmem>>, vector<32x32xbf16>
    %cst_25 = arith.constant dense<0.000000e+00> : vector<16x32xf32>
    %121 = tpu.matmul %6, %120, %cst_25 {dimension_numbers = #tpu.dot_dimension_numbers<[1], [0], [0], [1], [0, 0, 1, 1], [], []>} : vector<16x32xbf16>, vector<32x32xbf16>, vector<16x32xf32> -> vector<16x32xf32>
    %122 = arith.addf %119, %121 : vector<16x32xf32>
    %c0_26 = arith.constant 0 : index
    %c0_27 = arith.constant 0 : index
    %123 = vector.load %arg9[%c0_26, %c0_27] : memref<1x32xf32, #tpu.memory_space<vmem>>, vector<1x32xf32>
    %124 = vector.broadcast %123 : vector<1x32xf32> to vector<16x32xf32>
    %125 = arith.addf %122, %124 : vector<16x32xf32>
    %cst_28 = arith.constant 0.000000e+00 : f32
    %126 = vector.broadcast %cst_28 : f32 to vector<16x32xf32>
    %127 = arith.maximumf %125, %126 : vector<16x32xf32>
    %c0_29 = arith.constant 0 : index
    %c0_30 = arith.constant 0 : index
    %128 = vector.load %arg10[%c0_29, %c0_30] : memref<16x32xf32, #tpu.memory_space<vmem>>, vector<16x32xf32>
    tpu.vector_store %arg10[%c0_29, %c0_30], %127 {strides = array<i32>} : memref<16x32xf32, #tpu.memory_space<vmem>>, vector<16x32xf32>,
    return
  }
  func.func @transform_0(%arg0: i32) -> (i32, i32) {
    %c0_i32 = arith.constant 0 : i32
    %c0_i32_0 = arith.constant 0 : i32
    %c0_i32_1 = arith.constant 0 : i32
    return %c0_i32, %c0_i32_0 : i32, i32
  }
  func.func @transform_1(%arg0: i32) -> (i32, i32) {
    %c0_i32 = arith.constant 0 : i32
    %c0_i32_0 = arith.constant 0 : i32
    return %arg0, %c0_i32 : i32, i32
  }
  func.func @transform_2(%arg0: i32) -> (i32, i32) {
    %c0_i32 = arith.constant 0 : i32
    %c0_i32_0 = arith.constant 0 : i32
    %c0_i32_1 = arith.constant 0 : i32
    return %c0_i32, %c0_i32_0 : i32, i32
  }
  func.func @transform_3(%arg0: i32) -> (i32, i32) {
    %c0_i32 = arith.constant 0 : i32
    %c0_i32_0 = arith.constant 0 : i32
    %c0_i32_1 = arith.constant 0 : i32
    return %c0_i32, %c0_i32_0 : i32, i32
  }
  func.func @transform_4(%arg0: i32) -> (i32, i32) {
    %c0_i32 = arith.constant 0 : i32
    %c0_i32_0 = arith.constant 0 : i32
    %c0_i32_1 = arith.constant 0 : i32
    return %c0_i32, %c0_i32_0 : i32, i32
  }
  func.func @transform_5(%arg0: i32) -> (i32, i32) {
    %c0_i32 = arith.constant 0 : i32
    %c0_i32_0 = arith.constant 0 : i32
    %c0_i32_1 = arith.constant 0 : i32
    return %c0_i32, %c0_i32_0 : i32, i32
  }
  func.func @transform_6(%arg0: i32) -> (i32, i32) {
    %c0_i32 = arith.constant 0 : i32
    %c0_i32_0 = arith.constant 0 : i32
    %c0_i32_1 = arith.constant 0 : i32
    return %c0_i32, %c0_i32_0 : i32, i32
  }
  func.func @transform_7(%arg0: i32) -> (i32, i32) {
    %c0_i32 = arith.constant 0 : i32
    %c0_i32_0 = arith.constant 0 : i32
    %c0_i32_1 = arith.constant 0 : i32
    return %c0_i32, %c0_i32_0 : i32, i32
  }
  func.func @transform_8(%arg0: i32) -> (i32, i32) {
    %c0_i32 = arith.constant 0 : i32
    %c0_i32_0 = arith.constant 0 : i32
    %c0_i32_1 = arith.constant 0 : i32
    return %c0_i32, %c0_i32_0 : i32, i32
  }
  func.func @transform_9(%arg0: i32) -> (i32, i32) {
    %c0_i32 = arith.constant 0 : i32
    %c0_i32_0 = arith.constant 0 : i32
    return %arg0, %c0_i32 : i32, i32
  }
}

</mosaic_0001>

<bundles_post_ra>
// kernel: _tgrec2_forward_impl.3
= control target key start
LH: loop header
LB: loop body
LE: loop exit
PB: predicated region body
PF: predicated region fallthrough
CT: control target
= control target key end

     0   :  { %vm68_vm0 = vcmask 261120   ;;  %v1892_v4 = vmov 0.0   ;;  %vm1893_vm1 = vmmov 0   ;;  %s2350_s0 = inlined_call_operand.vmem [shape: f32[32,32], index: 0, kind: input, shape index: {}]   ;;  %s2351_s1 = inlined_call_operand.vmem [shape: bf16[32,32], index: 1, kind: input, shape index: {}]   ;;  %s2352_s2 = inlined_call_operand.vmem [shape: bf16[32,32], index: 2, kind: input, shape index: {}]   ;;  %s2353_s3 = inlined_call_operand.vmem [shape: f32[1,32], index: 3, kind: input, shape index: {}]   ;;  %s2354_s4 = inlined_call_operand.vmem [shape: bf16[32,64], index: 4, kind: input, shape index: {}]   ;;  %s2355_s5 = inlined_call_operand.vmem [shape: f32[1,64], index: 5, kind: input, shape index: {}]   ;;  %s2356_s6 = inlined_call_operand.vmem [shape: bf16[32,32], index: 6, kind: input, shape index: {}]   ;;  %s2357_s7 = inlined_call_operand.vmem [shape: bf16[32,32], index: 7, kind: input, shape index: {}]   ;;  %s2358_s8 = inlined_call_operand.vmem [shape: f32[1,32], index: 8, kind: input, shape index: {}]   ;;  %s2359_s9 = inlined_call_operand.hbm [shape: f32[16,32], index: 9, kind: output, shape index: {}]  }
   0x1   :  { %v1798_v0 = vld [vmem:[%s2354_s4 + $0x8] sm:$0xff]   ;;  %v1799_v1 = vld [vmem:[%s2354_s4] sm:$0xff]   ;;  %1584 = vmatprep.subr.bf16.mxu0 %v1892_v4  ;;  %v37_v5 = vld [vmem:[%s2350_s0 + $0x10] sm:$0xff]  ;;  %1588 = vmatprep.mubr.msk.bf16.mxu0 %vm1893_vm1, %v1892_v4 }
   0x2   :  { %1592 = vmatprep.subr.bf16.mxu1 %v1798_v0  ;;  %v35_v2 = vld [vmem:[%s2350_s0] sm:$0xff]  ;;  %v36_v3 = vld [vmem:[%s2350_s0 + $0x8] sm:$0xff]  ;;  %v38_v7 = vld [vmem:[%s2350_s0 + $0x18] sm:$0xff] }
   0x3   :  { %1593 = vmatpush3.bf16.msra.mxu1 %v1798_v0  ;;  %v1977_v6 = vpack.c.bf16 %v36_v3, %v35_v2  ;;  %v1800_v8 = vld [vmem:[%s2352_s2 + $0x8] sm:$0xff]   ;;  %v1801_v9 = vld [vmem:[%s2352_s2] sm:$0xff]   ;;  %v40_v10 = vpack.c.bf16 %v38_v7, %v37_v5 }
   0x4   :  { %1594 = vmatprep.subr.bf16.mxu1 %v1799_v1  ;;  %1585 = vmatpush3.bf16.msra.mxu0 %v1800_v8 }
   0x5   :  { %1596 = vmatprep.mubr.msk.bf16.mxu1 %vm68_vm0, %v1977_v6  ;;  %1586 = vmatprep.subr.bf16.mxu0 %v1892_v4 }
   0x7   :  { %1595 = vmatpush3.bf16.msra.mxu1 %v1799_v1 }
   0x8   :  { %1608 = vmatprep.subr.bf16.mxu1 %v1892_v4 }
   0x9   :  { %14 = vsyncpa [#allocation3], 0  ;;  %1587 = vmatpush3.bf16.msra.mxu0 %v1801_v9  ;;  %v1489_v12 = vld [vmem:[%s2355_s5] ss:$0 sm:$0xff]  ;;  %vm247_vm2 = vcmask 31744   ;;  %s1894_s26 = smov 120  }
   0xa   :  { %1597 = vmatmul.mubr.msk.bf16.vlgmr.msra.gmra.mxu1 %vm68_vm0, %v40_v10  ;;  %1600 = vmatprep.subr.bf16.mxu0 %v1892_v4  ;;  %v1485_v20 = vld [vmem:[%s2353_s3] ss:$0 sm:$0xff]  ;;  %s1895_s5 = smov 124   ;;  %s1896_s3 = smov 116   ;;  %vm1322_vm3 = vcmask 64512   ;;  %vm1325_vm4 = vcmask 97280  }
   0xb   :  { %1612 = vmatprep.mubr.msk.bf16.mxu1 %vm1893_vm1, %v1892_v4  ;;  %s1897_s27 = smov 112   ;;  %s1898_s28 = smov 108   ;;  %v1520_v7 = vld [vmem:[%s2351_s1] sm:$0xff]   ;;  %vm1328_vm5 = vcmask 130048   ;;  %vm1331_vm6 = vcmask 162816   ;;  %vm1334_vm7 = vcmask 195584  }
   0xc   :  { %1589 = vmatmul.mubr.msk.bf16.vlgmr.msra.gmra.mxu0 %vm68_vm0, %v1977_v6  ;;  %s1899_s29 = smov 104   ;;  %s1900_s30 = smov 100   ;;  %v2089_v8 = vunpack.c.l.bf16 %v1520_v7  ;;  %v2092_v10 = vunpack.c.h.bf16 %v1520_v7  ;;  %vm1337_vm8 = vcmask 228352  }
   0xd   :  { %1604 = vmatprep.mubr.msk.bf16.mxu0 %vm1893_vm1, %v1892_v4  ;;  %s1901_s10 = smov 96   ;;  %s1902_s1 = smov 4  }
   0xe   :  { %v1494_v9 = vadd.f32 -1.0, %v2089_v8  ;;  %s1903_s13 = smov 8   ;;  %s1904_s14 = smov 12  }
   0xf   :  { %s1905_s15 = smov 16   ;;  %s1906_s21 = smov 20  }
  0x10   :  { %s1908_s0 = smov 28   ;;  %s1909_s24 = smov [#allocation2]  }
  0x11   :  { %s1474_s25 = sshll.u32 %s1909_s24, 4  ;;  %s1475_s25 = int_to_ptr.vmem [resolvable:$true] %s1474_s25 }
  0x12   :  { %p1875_p1 = scmp.lt.s32.totalorder %s1475_s25, %s1475_s25 }
  0xca   :  { %v1598_v11 = vpop.f32.mrf.mxu1 }
  0xcb   :  { %v185_v16 = vadd.f32 %v1598_v11, %v1489_v12  ;;  %v2094_v11 = vmul.f32 1e+30, %v1494_v9 }
  0xcc   :  { %v176_v13 = vpop.f32.mrf.mxu1  ;;  %v106_v14 = vpop.f32.mrf.mxu0 }
  0xcd   :  { %v177_v24 = vadd.f32 %v1489_v12, %v176_v13  ;;  %v107_v25 = vadd.f32 %v1485_v20, %v106_v14 }
  0xce   :  { %v1599_v15 = vpop.f32.mrf.mxu1  ;;  %v1590_v18 = vpop.f32.mrf.mxu0 }
  0xcf   :  { %v188_v17 = vadd.f32 %v1599_v15, %v1489_v12 }
  0xd0   :  { %v179_v19 = vpop.f32.mrf.mxu1  ;;  %v109_v23 = vpop.f32.mrf.mxu0 }
  0xd1   :  { %v208_v21 = vpack.c.bf16 %v188_v17, %v185_v16  ;;  %v180_v22 = vadd.f32 %v1489_v12, %v179_v19  ;;  %v110_v27 = vadd.f32 %v1485_v20, %v109_v23  ;;  %v1495_v12 = vadd.f32 -1.0, %v2092_v10 }
  0xd2   :  { %v1591_v28 = vpop.f32.mrf.mxu0 }
  0xd3   :  { %217 = vrot.lane.b32.xlu1 %v208_v21, %s1894_s26  ;;  %213 = vrot.lane.b32.xlu0 %v208_v21, %s1895_s5  ;;  %v255_v26 = vsel %vm247_vm2, %v208_v21, 0  ;;  %v207_v29 = vpack.c.bf16 %v180_v22, %v177_v24  ;;  %v191_v30 = vpack.c.bf16 %v110_v27, %v107_v25  ;;  %v2100_v15 = vmul.f32 1e+30, %v1495_v12 }
  0xd4   :  { %1601 = vmatpush3.bf16.xpose.msra.mxu0 %v255_v26 }
  0xd5   :  { %1602 = vmatprep.subr.bf16.mxu0 %v1892_v4  ;;  %v252_v31 = vsel %vm247_vm2, %v207_v29, 0 }
  0xd7   :  { %221 = vrot.lane.b32.xlu1 %v208_v21, %s1896_s3  ;;  %211 = vrot.lane.b32.xlu0 %v207_v29, %s1895_s5 }
  0xdb   :  { %215 = vrot.lane.b32.xlu1 %v207_v29, %s1894_s26  ;;  %193 = vrot.lane.b32.xlu0 %v191_v30, %s1895_s5 }
  0xdc   :  { %1603 = vmatpush3.bf16.xpose.msra.mxu0 %v252_v31 }
  0xdd   :  { %1616 = vmatprep.subr.bf16.mxu0 %v1892_v4 }
  0xdf   :  { %225 = vrot.lane.b32.xlu1 %v208_v21, %s1897_s27  ;;  %219 = vrot.lane.b32.xlu0 %v207_v29, %s1896_s3 }
  0xe3   :  { %229 = vrot.lane.b32.xlu1 %v208_v21, %s1898_s28  ;;  %195 = vrot.lane.b32.xlu0 %v191_v30, %s1894_s26  ;;  %s1870_s26 = scalar_lea.vmem %s1475_s25, 256 }
  0xe4   :  { %1605 = vmatmul.mubr.msk.bf16.vlgmr.msra.gmra.mxu0 %vm247_vm2, %v191_v30  ;;  %p1871_p0 = scmp.ne.s32.totalorder %s1475_s25, %s1870_s26  ;;  %p1876_p2 = scmp.lt.s32.totalorder %s1870_s26, %s1870_s26 }
  0xe5   :  { %1620 = vmatprep.mubr.msk.bf16.mxu0 %vm1893_vm1, %v1892_v4 }
  0xe6   :  { %p1877_p3 = por %p1876_p2, %p1875_p1 }
  0xe7   :  { %223 = vrot.lane.b32.xlu1 %v207_v29, %s1897_s27  ;;  %197 = vrot.lane.b32.xlu0 %v191_v30, %s1896_s3 }
  0xe8   :  { %p1878_p4 = pnand %p1877_p3, %p1871_p0 }
  0xeb   :  { %233 = vrot.lane.b32.xlu1 %v208_v21, %s1899_s29  ;;  %227 = vrot.lane.b32.xlu0 %v207_v29, %s1898_s28 }
  0xef   :  { %237 = vrot.lane.b32.xlu1 %v208_v21, %s1900_s30  ;;  %199 = vrot.lane.b32.xlu0 %v191_v30, %s1897_s27 }
  0xf3   :  { %231 = vrot.lane.b32.xlu1 %v207_v29, %s1899_s29  ;;  %201 = vrot.lane.b32.xlu0 %v191_v30, %s1898_s28 }
  0xf7   :  { %203 = vrot.lane.b32.xlu1 %v191_v30, %s1899_s29  ;;  %235 = vrot.lane.b32.xlu0 %v207_v29, %s1900_s30 }
  0xfb   :  { %832 = vrot.lane.b32.xlu1 %v207_v29, %s1901_s10  ;;  %205 = vrot.lane.b32.xlu0 %v191_v30, %s1900_s30 }
  0xff   :  { %834 = vrot.lane.b32.xlu0 %v208_v21, %s1901_s10 }
 0x145   :  { %v218_v32 = vpop.permute.xlu1 %217  ;;  %v214_v33 = vpop.permute.xlu0 %213 }
 0x146   :  { %v355_v34 = vsel %vm247_vm2, %v218_v32, 0  ;;  %v305_v35 = vsel %vm247_vm2, %v214_v33, 0  ;;  %884 = vrot.lane.b32.xlu1 %v214_v33, %s1901_s10 }
 0x147   :  { %1609 = vmatpush3.bf16.xpose.msra.mxu1 %v305_v35  ;;  %1617 = vmatpush3.bf16.xpose.msra.mxu0 %v355_v34 }
 0x148   :  { %1610 = vmatprep.subr.bf16.mxu1 %v1892_v4  ;;  %1618 = vmatprep.subr.bf16.mxu0 %v1892_v4 }
 0x149   :  { %v222_v36 = vpop.permute.xlu1 %221  ;;  %v212_v37 = vpop.permute.xlu0 %211 }
 0x14a   :  { %934 = vrot.lane.b32.xlu1 %v218_v32, %s1901_s10  ;;  %984 = vrot.lane.b32.xlu0 %v222_v36, %s1901_s10  ;;  %v302_v40 = vsel %vm247_vm2, %v212_v37, 0  ;;  %v405_v46 = vsel %vm247_vm2, %v222_v36, 0 }
 0x14d   :  { %v216_v38 = vpop.permute.xlu1 %215  ;;  %v194_v39 = vpop.permute.xlu0 %193 }
 0x14e   :  { %v352_v41 = vsel %vm247_vm2, %v216_v38, 0 }
 0x14f   :  { %1611 = vmatpush3.bf16.xpose.msra.mxu1 %v302_v40  ;;  %1619 = vmatpush3.bf16.xpose.msra.mxu0 %v352_v41 }
 0x150   :  { %1624 = vmatprep.subr.bf16.mxu1 %v1892_v4  ;;  %1632 = vmatprep.subr.bf16.mxu0 %v1892_v4 }
 0x151   :  { %v226_v42 = vpop.permute.xlu1 %225  ;;  %v220_v43 = vpop.permute.xlu0 %219 }
 0x152   :  { %1034 = vrot.lane.b32.xlu1 %v226_v42, %s1901_s10  ;;  %v455_v47 = vsel %vm247_vm2, %v226_v42, 0  ;;  %v402_v52 = vsel %vm247_vm2, %v220_v43, 0 }
 0x155   :  { %v230_v44 = vpop.permute.xlu1 %229  ;;  %v196_v45 = vpop.permute.xlu0 %195 }
 0x156   :  { %1084 = vrot.lane.b32.xlu0 %v230_v44, %s1901_s10  ;;  %1613 = vmatmul.mubr.msk.bf16.vlgmr.msra.gmra.mxu1 %vm247_vm2, %v194_v39  ;;  %v505_v57 = vsel %vm247_vm2, %v230_v44, 0 }
 0x157   :  { %1621 = vmatmul.mubr.msk.bf16.vlgmr.msra.gmra.mxu0 %vm247_vm2, %v196_v45  ;;  %1625 = vmatpush3.bf16.xpose.msra.mxu1 %v405_v46 }
 0x158   :  { %1633 = vmatpush3.bf16.xpose.msra.mxu0 %v455_v47  ;;  %1626 = vmatprep.subr.bf16.mxu1 %v1892_v4 }
 0x159   :  { %v224_v48 = vpop.permute.xlu1 %223  ;;  %v198_v49 = vpop.permute.xlu0 %197  ;;  %1634 = vmatprep.subr.bf16.mxu0 %v1892_v4  ;;  %1628 = vmatprep.mubr.msk.bf16.mxu1 %vm1893_vm1, %v1892_v4 }
 0x15a   :  { %1636 = vmatprep.mubr.msk.bf16.mxu0 %vm1893_vm1, %v1892_v4  ;;  %v452_v53 = vsel %vm247_vm2, %v224_v48, 0 }
 0x15d   :  { %v234_v50 = vpop.permute.xlu1 %233  ;;  %v228_v51 = vpop.permute.xlu0 %227 }
 0x15e   :  { %1134 = vrot.lane.b32.xlu1 %v234_v50, %s1901_s10  ;;  %v555_v58 = vsel %vm247_vm2, %v234_v50, 0  ;;  %v502_v61 = vsel %vm247_vm2, %v228_v51, 0 }
 0x15f   :  { %1627 = vmatpush3.bf16.xpose.msra.mxu1 %v402_v52 }
 0x160   :  { %1635 = vmatpush3.bf16.xpose.msra.mxu0 %v452_v53  ;;  %1640 = vmatprep.subr.bf16.mxu1 %v1892_v4 }
 0x161   :  { %v238_v54 = vpop.permute.xlu1 %237  ;;  %v200_v55 = vpop.permute.xlu0 %199  ;;  %1648 = vmatprep.subr.bf16.mxu0 %v1892_v4 }
 0x162   :  { %932 = vrot.lane.b32.xlu1 %v216_v38, %s1901_s10  ;;  %1184 = vrot.lane.b32.xlu0 %v238_v54, %s1901_s10  ;;  %v605_v1 = vsel %vm247_vm2, %v238_v54, 0 }
 0x165   :  { %v202_v56 = vpop.permute.xlu0 %201  ;;  %v2062_v60 = vpop.permute.xlu1 %231 }
 0x166   :  { %1032 = vrot.lane.b32.xlu1 %v224_v48, %s1901_s10  ;;  %882 = vrot.lane.b32.xlu0 %v212_v37, %s1901_s10  ;;  %v552_v62 = vsel %vm247_vm2, %v2062_v60, 0 }
 0x167   :  { %1629 = vmatmul.mubr.msk.bf16.vlgmr.msra.gmra.mxu1 %vm247_vm2, %v198_v49  ;;  %1637 = vmatmul.mubr.msk.bf16.vlgmr.msra.gmra.mxu0 %vm247_vm2, %v200_v55 }
 0x168   :  { %1641 = vmatpush3.bf16.xpose.msra.mxu1 %v505_v57  ;;  %1649 = vmatpush3.bf16.xpose.msra.mxu0 %v555_v58 }
 0x169   :  { %1642 = vmatprep.subr.bf16.mxu1 %v1892_v4  ;;  %1650 = vmatprep.subr.bf16.mxu0 %v1892_v4  ;;  %v2058_v59 = vpop.permute.xlu0 %235  ;;  %v204_v0 = vpop.permute.xlu1 %203 }
 0x16a   :  { %982 = vrot.lane.b32.xlu0 %v220_v43, %s1901_s10  ;;  %1644 = vmatprep.mubr.msk.bf16.mxu1 %vm1893_vm1, %v1892_v4  ;;  %v602_v5 = vsel %vm247_vm2, %v2058_v59, 0 }
 0x16b   :  { %1652 = vmatprep.mubr.msk.bf16.mxu0 %vm1893_vm1, %v1892_v4 }
 0x16d   :  { %v206_v63 = vpop.permute.xlu0 %205  ;;  %v833_v3 = vpop.permute.xlu1 %832 }
 0x16e   :  { %1082 = vrot.lane.b32.xlu0 %v228_v51, %s1901_s10 }
 0x170   :  { %1643 = vmatpush3.bf16.xpose.msra.mxu1 %v502_v61  ;;  %1651 = vmatpush3.bf16.xpose.msra.mxu0 %v552_v62 }
 0x171   :  { %1656 = vmatprep.subr.bf16.mxu1 %v1892_v4  ;;  %1664 = vmatprep.subr.bf16.mxu0 %v1892_v4  ;;  %v835_v2 = vpop.permute.xlu0 %834 }
 0x177   :  { %1645 = vmatmul.mubr.msk.bf16.vlgmr.msra.gmra.mxu1 %vm247_vm2, %v202_v56  ;;  %1653 = vmatmul.mubr.msk.bf16.vlgmr.msra.gmra.mxu0 %vm247_vm2, %v204_v0 }
 0x178   :  { %1657 = vmatpush3.bf16.xpose.msra.mxu1 %v605_v1  ;;  %1665 = vmatpush3.bf16.msra.mxu0 %v835_v2 }
 0x179   :  { %1666 = vmatprep.subr.bf16.mxu0 %v1892_v4  ;;  %1658 = vmatprep.subr.bf16.mxu1 %v1892_v4 }
 0x17a   :  { %1660 = vmatprep.mubr.msk.bf16.mxu1 %vm1893_vm1, %v1892_v4  ;;  %1668 = vmatprep.mubr.msk.bf16.mxu0 %vm1893_vm1, %v1892_v4 }
 0x17c   :  { %1667 = vmatpush3.bf16.msra.mxu0 %v833_v3 }
 0x17d   :  { %1680 = vmatprep.subr.bf16.mxu0 %v1892_v4 }
 0x180   :  { %1659 = vmatpush3.bf16.xpose.msra.mxu1 %v602_v5 }
 0x181   :  { %1672 = vmatprep.subr.bf16.mxu1 %v1892_v4 }
 0x187   :  { %1661 = vmatmul.mubr.msk.bf16.vlgmr.msra.gmra.mxu1 %vm247_vm2, %v206_v63 }
 0x188   :  { %1676 = vmatprep.mubr.msk.bf16.mxu1 %vm1893_vm1, %v1892_v4 }
 0x1a4   :  { %v291_v13 = vpop.f32.mrf.mxu0 }
 0x1a5   :  { %v2098_v14 = vadd.f32 %v291_v13, %v2094_v11 }
 0x1a6   :  { %v1606_v16 = vpop.f32.mrf.mxu0 }
 0x1a7   :  { %v648_v17 = vsel %vm68_vm0, %v2098_v14, -inf }
 0x1a8   :  { %649 = vmax.xlane.f32.xlu1 %v648_v17  ;;  %v294_v18 = vpop.f32.mrf.mxu0 }
 0x1a9   :  { %v2105_v19 = vadd.f32 %v294_v18, %v2100_v15 }
 0x1aa   :  { %v1607_v20 = vpop.f32.mrf.mxu0 }
 0x1ab   :  { %v651_v21 = vsel %vm68_vm0, %v2105_v19, -inf }
 0x1ac   :  { %652 = vmax.xlane.f32.xlu0 %v651_v21 }
 0x1b8   :  { %v885_v22 = vpop.permute.xlu1 %884 }
 0x1b9   :  { %1673 = vmatpush3.bf16.msra.mxu1 %v885_v22 }
 0x1ba   :  { %1674 = vmatprep.subr.bf16.mxu1 %v1892_v4 }
 0x1bc   :  { %v2110_v23 = vpop.permute.xlu0 %984  ;;  %v2120_v30 = vpop.permute.xlu1 %934 }
 0x1c4   :  { %v2130_v38 = vpop.permute.xlu1 %1034 }
 0x1c8   :  { %v2112_v24 = vpop.permute.xlu0 %1084 }
 0x1d0   :  { %v2139_v44 = vpop.permute.xlu1 %1134 }
 0x1d4   :  { %v2114_v25 = vpop.permute.xlu0 %1184  ;;  %v2143_v46 = vpop.permute.xlu1 %932 }
 0x1d8   :  { %v883_v26 = vpop.permute.xlu0 %882  ;;  %v2155_v57 = vpop.permute.xlu1 %1032 }
 0x1d9   :  { %1675 = vmatpush3.bf16.msra.mxu1 %v883_v26 }
 0x1da   :  { %1688 = vmatprep.subr.bf16.mxu1 %v1892_v4 }
 0x1dc   :  { %v2148_v52 = vpop.permute.xlu0 %982 }
 0x1e0   :  { %v2167_v2 = vpop.permute.xlu0 %1082 }
 0x216   :  { %v341_v27 = vpop.f32.mrf.mxu1 }
 0x217   :  { %v2118_v28 = vadd.f32 %v341_v27, %v2094_v11  ;;  %v391_v29 = vpop.f32.mrf.mxu0 }
 0x218   :  { %v1614_v31 = vpop.f32.mrf.mxu1  ;;  %v2123_v32 = vadd.f32 %v391_v29, %v2094_v11 }
 0x219   :  { %v1622_v33 = vpop.f32.mrf.mxu0  ;;  %v654_v34 = vsel %vm68_vm0, %v2118_v28, -inf }
 0x21a   :  { %v344_v35 = vpop.f32.mrf.mxu1  ;;  %655 = vmax.xlane.f32.xlu0 %v654_v34  ;;  %v660_v43 = vsel %vm68_vm0, %v2123_v32, -inf }
 0x21b   :  { %v2128_v36 = vadd.f32 %v344_v35, %v2100_v15  ;;  %v394_v37 = vpop.f32.mrf.mxu0 }
 0x21c   :  { %v1615_v39 = vpop.f32.mrf.mxu1  ;;  %v2133_v40 = vadd.f32 %v394_v37, %v2100_v15 }
 0x21d   :  { %v1623_v41 = vpop.f32.mrf.mxu0  ;;  %v657_v42 = vsel %vm68_vm0, %v2128_v36, -inf }
 0x21e   :  { %658 = vmax.xlane.f32.xlu1 %v657_v42  ;;  %661 = vmax.xlane.f32.xlu0 %v660_v43  ;;  %v663_v45 = vsel %vm68_vm0, %v2133_v40, -inf }
 0x222   :  { %664 = vmax.xlane.f32.xlu1 %v663_v45 }
 0x227   :  { %v441_v47 = vpop.f32.mrf.mxu1  ;;  %v491_v48 = vpop.f32.mrf.mxu0 }
 0x228   :  { %v2146_v49 = vadd.f32 %v441_v47, %v2094_v11  ;;  %v2151_v53 = vadd.f32 %v491_v48, %v2094_v11 }
 0x229   :  { %v1630_v50 = vpop.f32.mrf.mxu1  ;;  %v1638_v51 = vpop.f32.mrf.mxu0 }
 0x22a   :  { %v666_v54 = vsel %vm68_vm0, %v2146_v49, -inf  ;;  %v672_v1 = vsel %vm68_vm0, %v2151_v53, -inf }
 0x22b   :  { %v444_v55 = vpop.f32.mrf.mxu1  ;;  %667 = vmax.xlane.f32.xlu0 %v666_v54  ;;  %v494_v56 = vpop.f32.mrf.mxu0 }
 0x22c   :  { %v2158_v58 = vadd.f32 %v444_v55, %v2100_v15  ;;  %v2161_v63 = vadd.f32 %v494_v56, %v2100_v15 }
 0x22d   :  { %v1631_v61 = vpop.f32.mrf.mxu1  ;;  %v1639_v62 = vpop.f32.mrf.mxu0 }
 0x22e   :  { %v669_v0 = vsel %vm68_vm0, %v2158_v58, -inf  ;;  %v675_v7 = vsel %vm68_vm0, %v2161_v63, -inf }
 0x22f   :  { %670 = vmax.xlane.f32.xlu1 %v669_v0  ;;  %673 = vmax.xlane.f32.xlu0 %v672_v1 }
 0x231   :  { %v650_v3 = vpop.xlane.xlu1 %649 }
 0x232   :  { %v696_v5 = vsub.f32 %v2098_v14, %v650_v3 }
 0x233   :  { %676 = vmax.xlane.f32.xlu1 %v675_v7 }
 0x234   :  { %v712_v9 = vmul.f32 1.442695, %v696_v5 }
 0x235   :  { %v653_v12 = vpop.xlane.xlu0 %652 }
 0x236   :  { %v697_v13 = vsub.f32 %v2105_v19, %v653_v12  ;;  %1806 = vpow2.f32 %v712_v9 }
 0x237   :  { %v541_v16 = vpop.f32.mrf.mxu1  ;;  %v591_v17 = vpop.f32.mrf.mxu0 }
 0x238   :  { %v714_v18 = vmul.f32 1.442695, %v697_v13  ;;  %v2174_v20 = vadd.f32 %v541_v16, %v2094_v11  ;;  %v2177_v14 = vadd.f32 %v591_v17, %v2094_v11 }
 0x239   :  { %v1646_v21 = vpop.f32.mrf.mxu1  ;;  %v1654_v22 = vpop.f32.mrf.mxu0 }
 0x23a   :  { %1808 = vpow2.f32 %v714_v18  ;;  %v678_v26 = vsel %vm68_vm0, %v2174_v20, -inf  ;;  %v684_v37 = vsel %vm68_vm0, %v2177_v14, -inf }
 0x23b   :  { %v544_v27 = vpop.f32.mrf.mxu1  ;;  %679 = vmax.xlane.f32.xlu0 %v678_v26  ;;  %v594_v29 = vpop.f32.mrf.mxu0 }
 0x23c   :  { %v2182_v19 = vadd.f32 %v544_v27, %v2100_v15  ;;  %v2185_v34 = vadd.f32 %v594_v29, %v2100_v15 }
 0x23d   :  { %v1647_v31 = vpop.f32.mrf.mxu1  ;;  %v1655_v33 = vpop.f32.mrf.mxu0 }
 0x23e   :  { %v681_v35 = vsel %vm68_vm0, %v2182_v19, -inf  ;;  %v687_v39 = vsel %vm68_vm0, %v2185_v34, -inf }
 0x23f   :  { %682 = vmax.xlane.f32.xlu1 %v681_v35  ;;  %685 = vmax.xlane.f32.xlu0 %v684_v37 }
 0x243   :  { %688 = vmax.xlane.f32.xlu1 %v687_v39  ;;  %v1807_v41 = vpop.eup %1806 }
 0x244   :  { %v2197_v47 = vmul.f32 %v1807_v41, %v2089_v8 }
 0x247   :  { %v1809_v42 = vpop.eup %1808  ;;  %v641_v43 = vpop.f32.mrf.mxu1 }
 0x248   :  { %v2194_v45 = vadd.f32 %v641_v43, %v2094_v11  ;;  %v2200_v48 = vmul.f32 %v1809_v42, %v2092_v10 }
 0x249   :  { %v1662_v50 = vpop.f32.mrf.mxu1 }
 0x24a   :  { %v690_v51 = vsel %vm68_vm0, %v2194_v45, -inf  ;;  %v824_v54 = vpack.c.bf16 %v2200_v48, %v2197_v47 }
 0x24b   :  { %v644_v55 = vpop.f32.mrf.mxu1  ;;  %691 = vmax.xlane.f32.xlu0 %v690_v51 }
 0x24c   :  { %v2207_v56 = vadd.f32 %v644_v55, %v2100_v15  ;;  %1669 = vmatmul.mubr.msk.bf16.vlgmr.msra.gmra.mxu0 %vm68_vm0, %v824_v54 }
 0x24d   :  { %1681 = vmatpush3.bf16.msra.mxu0 %v2120_v30  ;;  %v1663_v11 = vpop.f32.mrf.mxu1  ;;  %1684 = vmatprep.mubr.msk.bf16.mxu0 %vm1893_vm1, %v1892_v4 }
 0x24e   :  { %1682 = vmatprep.subr.bf16.mxu0 %v1892_v4  ;;  %v693_v61 = vsel %vm68_vm0, %v2207_v56, -inf }
 0x24f   :  { %694 = vmax.xlane.f32.xlu1 %v693_v61 }
 0x251   :  { %1683 = vmatpush3.bf16.msra.mxu0 %v2143_v46 }
 0x252   :  { %1696 = vmatprep.subr.bf16.mxu0 %v1892_v4 }
 0x260   :  { %1132 = vrot.lane.b32.xlu1 %v2062_v60, %s1901_s10 }
 0x261   :  { %1182 = vrot.lane.b32.xlu0 %v2058_v59, %s1901_s10 }
 0x2a3   :  { %v656_v15 = vpop.xlane.xlu0 %655 }
 0x2a4   :  { %v698_v30 = vsub.f32 %v2118_v28, %v656_v15 }
 0x2a6   :  { %v716_v62 = vmul.f32 1.442695, %v698_v30 }
 0x2a7   :  { %v659_v0 = vpop.xlane.xlu1 %658  ;;  %v662_v1 = vpop.xlane.xlu0 %661 }
 0x2a8   :  { %1810 = vpow2.f32 %v716_v62  ;;  %v699_v3 = vsub.f32 %v2128_v36, %v659_v0  ;;  %v700_v5 = vsub.f32 %v2123_v32, %v662_v1 }
 0x2aa   :  { %v718_v46 = vmul.f32 1.442695, %v699_v3  ;;  %v720_v7 = vmul.f32 1.442695, %v700_v5 }
 0x2ab   :  { %v665_v9 = vpop.xlane.xlu1 %664 }
 0x2ac   :  { %1812 = vpow2.f32 %v718_v46  ;;  %v701_v60 = vsub.f32 %v2133_v40, %v665_v9 }
 0x2ad   :  { %1814 = vpow2.f32 %v720_v7 }
 0x2ae   :  { %v722_v12 = vmul.f32 1.442695, %v701_v60 }
 0x2b0   :  { %1816 = vpow2.f32 %v722_v12 }
 0x2b4   :  { %v668_v59 = vpop.xlane.xlu0 %667 }
 0x2b5   :  { %v1811_v13 = vpop.eup %1810  ;;  %v702_v28 = vsub.f32 %v2146_v49, %v668_v59 }
 0x2b6   :  { %v746_v16 = vmul.f32 %v1811_v13, %v2089_v8 }
 0x2b7   :  { %v724_v17 = vmul.f32 1.442695, %v702_v28 }
 0x2b8   :  { %v671_v18 = vpop.xlane.xlu1 %670  ;;  %v674_v36 = vpop.xlane.xlu0 %673  ;;  %v766_v32 = vsel %vm68_vm0, %v746_v16, 0.0 }
 0x2b9   :  { %v1813_v21 = vpop.eup %1812  ;;  %1818 = vpow2.f32 %v724_v17  ;;  %v703_v22 = vsub.f32 %v2158_v58, %v671_v18  ;;  %v704_v40 = vsub.f32 %v2151_v53, %v674_v36  ;;  %767 = vadd.xlane.f32.xlu1 %v766_v32 }
 0x2ba   :  { %v1815_v26 = vpop.eup %1814  ;;  %v747_v27 = vmul.f32 %v1813_v21, %v2092_v10 }
 0x2bb   :  { %v726_v29 = vmul.f32 1.442695, %v703_v22  ;;  %v728_v31 = vmul.f32 1.442695, %v704_v40  ;;  %v748_v49 = vmul.f32 %v1815_v26, %v2089_v8 }
 0x2bc   :  { %v825_v33 = vpack.c.bf16 %v747_v27, %v746_v16  ;;  %v677_v35 = vpop.xlane.xlu1 %676 }
 0x2bd   :  { %v1817_v37 = vpop.eup %1816  ;;  %1820 = vpow2.f32 %v726_v29  ;;  %v705_v39 = vsub.f32 %v2161_v63, %v677_v35  ;;  %v772_v41 = vsel %vm68_vm0, %v748_v49, 0.0  ;;  %v769_v63 = vsel %vm68_vm0, %v747_v27, 0.0 }
 0x2be   :  { %1822 = vpow2.f32 %v728_v31  ;;  %773 = vadd.xlane.f32.xlu0 %v772_v41  ;;  %1677 = vmatmul.mubr.msk.bf16.vlgmr.msra.gmra.mxu1 %vm68_vm0, %v825_v33  ;;  %v749_v53 = vmul.f32 %v1817_v37, %v2092_v10 }
 0x2bf   :  { %v730_v58 = vmul.f32 1.442695, %v705_v39  ;;  %1689 = vmatpush3.bf16.msra.mxu1 %v2110_v23  ;;  %1692 = vmatprep.mubr.msk.bf16.mxu1 %vm1893_vm1, %v1892_v4 }
 0x2c0   :  { %1690 = vmatprep.subr.bf16.mxu1 %v1892_v4  ;;  %v775_v42 = vsel %vm68_vm0, %v749_v53, 0.0  ;;  %v826_v43 = vpack.c.bf16 %v749_v53, %v748_v49  ;;  %v760_v53 = vsel %vm68_vm0, %v2197_v47, 0.0 }
 0x2c1   :  { %1824 = vpow2.f32 %v730_v58  ;;  %776 = vadd.xlane.f32.xlu1 %v775_v42 }
 0x2c2   :  { %770 = vadd.xlane.f32.xlu0 %v769_v63  ;;  %1685 = vmatmul.mubr.msk.bf16.vlgmr.msra.gmra.mxu0 %vm68_vm0, %v826_v43 }
 0x2c3   :  { %1691 = vmatpush3.bf16.msra.mxu1 %v2148_v52  ;;  %1697 = vmatpush3.bf16.msra.mxu0 %v2130_v38 }
 0x2c4   :  { %v680_v23 = vpop.xlane.xlu0 %679  ;;  %1698 = vmatprep.subr.bf16.mxu0 %v1892_v4  ;;  %1704 = vmatprep.subr.bf16.mxu1 %v1892_v4 }
 0x2c5   :  { %v706_v50 = vsub.f32 %v2174_v20, %v680_v23  ;;  %1700 = vmatprep.mubr.msk.bf16.mxu0 %vm1893_vm1, %v1892_v4 }
 0x2c6   :  { %v1819_v51 = vpop.eup %1818 }
 0x2c7   :  { %v732_v54 = vmul.f32 1.442695, %v706_v50  ;;  %1699 = vmatpush3.bf16.msra.mxu0 %v2155_v57  ;;  %v750_v55 = vmul.f32 %v1819_v51, %v2089_v8 }
 0x2c8   :  { %v683_v11 = vpop.xlane.xlu1 %682  ;;  %v686_v52 = vpop.xlane.xlu0 %685  ;;  %1712 = vmatprep.subr.bf16.mxu0 %v1892_v4 }
 0x2c9   :  { %1826 = vpow2.f32 %v732_v54  ;;  %v707_v38 = vsub.f32 %v2182_v19, %v683_v11  ;;  %v708_v61 = vsub.f32 %v2177_v14, %v686_v52  ;;  %v778_v20 = vsel %vm68_vm0, %v750_v55, 0.0 }
 0x2ca   :  { %v1821_v15 = vpop.eup %1820  ;;  %779 = vadd.xlane.f32.xlu0 %v778_v20 }
 0x2cb   :  { %v1823_v30 = vpop.eup %1822  ;;  %v734_v62 = vmul.f32 1.442695, %v707_v38  ;;  %v736_v0 = vmul.f32 1.442695, %v708_v61  ;;  %v751_v57 = vmul.f32 %v1821_v15, %v2092_v10 }
 0x2cc   :  { %v689_v1 = vpop.xlane.xlu1 %688  ;;  %v752_v3 = vmul.f32 %v1823_v30, %v2089_v8 }
 0x2cd   :  { %1828 = vpow2.f32 %v734_v62  ;;  %v709_v5 = vsub.f32 %v2185_v34, %v689_v1  ;;  %v781_v46 = vsel %vm68_vm0, %v751_v57, 0.0  ;;  %v827_v19 = vpack.c.bf16 %v751_v57, %v750_v55 }
 0x2ce   :  { %v1825_v7 = vpop.eup %1824  ;;  %1830 = vpow2.f32 %v736_v0  ;;  %v784_v14 = vsel %vm68_vm0, %v752_v3, 0.0  ;;  %782 = vadd.xlane.f32.xlu1 %v781_v46 }
 0x2cf   :  { %v738_v9 = vmul.f32 1.442695, %v709_v5  ;;  %785 = vadd.xlane.f32.xlu0 %v784_v14  ;;  %1693 = vmatmul.mubr.msk.bf16.vlgmr.msra.gmra.mxu1 %vm68_vm0, %v827_v19  ;;  %v753_v60 = vmul.f32 %v1825_v7, %v2092_v10 }
 0x2d0   :  { %1705 = vmatpush3.bf16.msra.mxu1 %v2112_v24  ;;  %1708 = vmatprep.mubr.msk.bf16.mxu1 %vm1893_vm1, %v1892_v4 }
 0x2d1   :  { %1832 = vpow2.f32 %v738_v9  ;;  %1706 = vmatprep.subr.bf16.mxu1 %v1892_v4  ;;  %v787_v34 = vsel %vm68_vm0, %v753_v60, 0.0  ;;  %v828_v12 = vpack.c.bf16 %v753_v60, %v752_v3 }
 0x2d2   :  { %788 = vadd.xlane.f32.xlu1 %v787_v34 }
 0x2d3   :  { %1701 = vmatmul.mubr.msk.bf16.vlgmr.msra.gmra.mxu0 %vm68_vm0, %v828_v12 }
 0x2d4   :  { %1707 = vmatpush3.bf16.msra.mxu1 %v2167_v2  ;;  %1713 = vmatpush3.bf16.msra.mxu0 %v2139_v44  ;;  %v692_v59 = vpop.xlane.xlu0 %691 }
 0x2d5   :  { %v710_v13 = vsub.f32 %v2194_v45, %v692_v59  ;;  %1714 = vmatprep.subr.bf16.mxu0 %v1892_v4  ;;  %1720 = vmatprep.subr.bf16.mxu1 %v1892_v4 }
 0x2d6   :  { %v1827_v24 = vpop.eup %1826  ;;  %1716 = vmatprep.mubr.msk.bf16.mxu0 %vm1893_vm1, %v1892_v4 }
 0x2d7   :  { %v740_v28 = vmul.f32 1.442695, %v710_v13  ;;  %v754_v16 = vmul.f32 %v1827_v24, %v2089_v8 }
 0x2d8   :  { %v695_v17 = vpop.xlane.xlu1 %694  ;;  %v1183_v33 = vpop.permute.xlu0 %1182 }
 0x2d9   :  { %1834 = vpow2.f32 %v740_v28  ;;  %v711_v2 = vsub.f32 %v2207_v56, %v695_v17  ;;  %v790_v44 = vsel %vm68_vm0, %v754_v16, 0.0 }
 0x2da   :  { %v1829_v18 = vpop.eup %1828  ;;  %791 = vadd.xlane.f32.xlu0 %v790_v44 }
 0x2db   :  { %v1831_v45 = vpop.eup %1830  ;;  %v742_v36 = vmul.f32 1.442695, %v711_v2  ;;  %v755_v32 = vmul.f32 %v1829_v18, %v2092_v10 }
 0x2dc   :  { %v1133_v21 = vpop.permute.xlu1 %1132  ;;  %v756_v22 = vmul.f32 %v1831_v45, %v2089_v8 }
 0x2dd   :  { %1836 = vpow2.f32 %v742_v36  ;;  %1715 = vmatpush3.bf16.msra.mxu0 %v1133_v21  ;;  %v793_v40 = vsel %vm68_vm0, %v755_v32, 0.0  ;;  %v829_v26 = vpack.c.bf16 %v755_v32, %v754_v16 }
 0x2de   :  { %v1833_v27 = vpop.eup %1832  ;;  %v796_v29 = vsel %vm68_vm0, %v756_v22, 0.0  ;;  %794 = vadd.xlane.f32.xlu1 %v793_v40  ;;  %1728 = vmatprep.subr.bf16.mxu0 %v1892_v4 }
 0x2df   :  { %797 = vadd.xlane.f32.xlu0 %v796_v29  ;;  %1709 = vmatmul.mubr.msk.bf16.vlgmr.msra.gmra.mxu1 %vm68_vm0, %v829_v26  ;;  %v757_v56 = vmul.f32 %v1833_v27, %v2092_v10 }
 0x2e0   :  { %1721 = vmatpush3.bf16.msra.mxu1 %v2114_v25  ;;  %1724 = vmatprep.mubr.msk.bf16.mxu1 %vm1893_vm1, %v1892_v4 }
 0x2e1   :  { %1722 = vmatprep.subr.bf16.mxu1 %v1892_v4  ;;  %v799_v31 = vsel %vm68_vm0, %v757_v56, 0.0  ;;  %v830_v49 = vpack.c.bf16 %v757_v56, %v756_v22 }
 0x2e2   :  { %800 = vadd.xlane.f32.xlu1 %v799_v31 }
 0x2e3   :  { %1717 = vmatmul.mubr.msk.bf16.vlgmr.msra.gmra.mxu0 %vm68_vm0, %v830_v49 }
 0x2e4   :  { %1723 = vmatpush3.bf16.msra.mxu1 %v1183_v33  ;;  %1732 = vmatprep.mubr.msk.bf16.mxu0 %vm1893_vm1, %v1892_v4 }
 0x2e5   :  { %1736 = vmatprep.subr.bf16.mxu1 %v1892_v4 }
 0x2e6   :  { %v1835_v35 = vpop.eup %1834 }
 0x2e7   :  { %v758_v25 = vmul.f32 %v1835_v35, %v2089_v8  ;;  %v763_v8 = vsel %vm68_vm0, %v2200_v48, 0.0 }
 0x2e9   :  { %v802_v37 = vsel %vm68_vm0, %v758_v25, 0.0 }
 0x2ea   :  { %v1837_v39 = vpop.eup %1836  ;;  %803 = vadd.xlane.f32.xlu0 %v802_v37 }
 0x2eb   :  { %v759_v41 = vmul.f32 %v1837_v39, %v2092_v10 }
 0x2ed   :  { %v805_v58 = vsel %vm68_vm0, %v759_v41, 0.0  ;;  %v831_v42 = vpack.c.bf16 %v759_v41, %v758_v25 }
 0x2ee   :  { %761 = vadd.xlane.f32.xlu0 %v760_v53  ;;  %806 = vadd.xlane.f32.xlu1 %v805_v58 }
 0x2ef   :  { %1725 = vmatmul.mubr.msk.bf16.vlgmr.msra.gmra.mxu1 %vm68_vm0, %v831_v42 }
 0x2f0   :  { %1740 = vmatprep.mubr.msk.bf16.mxu1 %vm1893_vm1, %v1892_v4 }
 0x2f2   :  { %764 = vadd.xlane.f32.xlu1 %v763_v8 }
 0x30c   :  { %v2307_v43 = vpop.f32.mrf.mxu0 }
 0x30e   :  { %v1670_v10 = vpop.f32.mrf.mxu0 }
 0x310   :  { %v2309_v63 = vpop.f32.mrf.mxu0 }
 0x312   :  { %v1671_v47 = vpop.f32.mrf.mxu0 }
 0x342   :  { %v768_v50 = vpop.xlane.xlu1 %767 }
 0x343   :  { %v810_v54 = vadd.f32 1e-16, %v768_v50 }
 0x345   :  { %1838 = vrcp.f32 %v810_v54 }
 0x347   :  { %v774_v23 = vpop.xlane.xlu0 %773 }
 0x348   :  { %v812_v52 = vadd.f32 1e-16, %v774_v23 }
 0x34a   :  { %v777_v11 = vpop.xlane.xlu1 %776 }
 0x34b   :  { %v771_v51 = vpop.xlane.xlu0 %770  ;;  %v813_v38 = vadd.f32 1e-16, %v777_v11  ;;  %v1802_v11 = vld [vmem:[%s2357_s7 + $0x8] sm:$0xff]  }
 0x34c   :  { %v811_v55 = vadd.f32 1e-16, %v771_v51  ;;  %1729 = vmatpush3.bf16.msra.mxu0 %v1802_v11 }
 0x34d   :  { %1730 = vmatprep.subr.bf16.mxu0 %v1892_v4 }
 0x34e   :  { %1840 = vrcp.f32 %v811_v55 }
 0x34f   :  { %1842 = vrcp.f32 %v812_v52  ;;  %v1804_v52 = vld [vmem:[%s2356_s6 + $0x8] sm:$0xff]  }
 0x350   :  { %1844 = vrcp.f32 %v813_v38  ;;  %1737 = vmatpush3.bf16.msra.mxu1 %v1804_v52 }
 0x351   :  { %1738 = vmatprep.subr.bf16.mxu1 %v1892_v4  ;;  %v1805_v4 = vld [vmem:[%s2356_s6] sm:$0xff]  }
 0x352   :  { %v1839_v30 = vpop.eup %1838 }
 0x353   :  { %v780_v48 = vpop.xlane.xlu0 %779 }
 0x354   :  { %v814_v62 = vadd.f32 1e-16, %v780_v48  ;;  %1739 = vmatpush3.bf16.msra.mxu1 %v1805_v4 }
 0x356   :  { %1846 = vrcp.f32 %v814_v62 }
 0x357   :  { %v783_v61 = vpop.xlane.xlu1 %782 }
 0x358   :  { %v786_v0 = vpop.xlane.xlu0 %785  ;;  %v815_v1 = vadd.f32 1e-16, %v783_v61 }
 0x359   :  { %v816_v34 = vadd.f32 1e-16, %v786_v0 }
 0x35a   :  { %1848 = vrcp.f32 %v815_v1 }
 0x35b   :  { %v1841_v57 = vpop.eup %1840  ;;  %v789_v46 = vpop.xlane.xlu1 %788  ;;  %1850 = vrcp.f32 %v816_v34 }
 0x35c   :  { %v1843_v60 = vpop.eup %1842  ;;  %v817_v13 = vadd.f32 1e-16, %v789_v46 }
 0x35d   :  { %v1845_v59 = vpop.eup %1844 }
 0x35e   :  { %1852 = vrcp.f32 %v817_v13 }
 0x363   :  { %v792_v44 = vpop.xlane.xlu0 %791  ;;  %v1847_v21 = vpop.eup %1846 }
 0x364   :  { %v818_v36 = vadd.f32 1e-16, %v792_v44 }
 0x366   :  { %1854 = vrcp.f32 %v818_v36 }
 0x367   :  { %v795_v18 = vpop.xlane.xlu1 %794  ;;  %v1849_v27 = vpop.eup %1848 }
 0x368   :  { %v798_v22 = vpop.xlane.xlu0 %797  ;;  %v819_v40 = vadd.f32 1e-16, %v795_v18  ;;  %v1851_v37 = vpop.eup %1850 }
 0x369   :  { %v820_v33 = vadd.f32 1e-16, %v798_v22 }
 0x36a   :  { %1856 = vrcp.f32 %v819_v40 }
 0x36b   :  { %v801_v26 = vpop.xlane.xlu1 %800  ;;  %v1853_v53 = vpop.eup %1852  ;;  %1858 = vrcp.f32 %v820_v33 }
 0x36c   :  { %v821_v39 = vadd.f32 1e-16, %v801_v26 }
 0x36e   :  { %1860 = vrcp.f32 %v821_v39 }
 0x373   :  { %v804_v23 = vpop.xlane.xlu0 %803  ;;  %v1855_v38 = vpop.eup %1854 }
 0x374   :  { %v822_v54 = vadd.f32 1e-16, %v804_v23 }
 0x376   :  { %1862 = vrcp.f32 %v822_v54 }
 0x377   :  { %v807_v50 = vpop.xlane.xlu1 %806  ;;  %v1857_v61 = vpop.eup %1856 }
 0x378   :  { %v823_v48 = vadd.f32 1e-16, %v807_v50  ;;  %v762_v44 = vpop.xlane.xlu0 %761 }
 0x379   :  { %v808_v18 = vadd.f32 1e-16, %v762_v44 }
 0x37a   :  { %1864 = vrcp.f32 %v823_v48 }
 0x37b   :  { %1866 = vrcp.f32 %v808_v18 }
 0x37e   :  { %v925_v20 = vpop.f32.mrf.mxu1 }
 0x37f   :  { %v1250_v19 = vmul.f32 %v1839_v30, %v925_v20  ;;  %v1803_v30 = vld [vmem:[%s2357_s7] sm:$0xff]   ;;  %s1907_s7 = smov 24  }
 0x380   :  { %v1678_v15 = vpop.f32.mrf.mxu1  ;;  %1731 = vmatpush3.bf16.msra.mxu0 %v1803_v30 }
 0x382   :  { %v928_v3 = vpop.f32.mrf.mxu1  ;;  %v975_v5 = vpop.f32.mrf.mxu0 }
 0x383   :  { %v1251_v7 = vmul.f32 %v1841_v57, %v928_v3  ;;  %v1252_v28 = vmul.f32 %v1843_v60, %v975_v5  ;;  %v1859_v3 = vpop.eup %1858  ;;  %1733 = vmatmul.mubr.msk.bf16.vlgmr.msra.gmra.mxu0 %vm68_vm0, %v1977_v6  ;;  %v765_v6 = vpop.xlane.xlu1 %764 }
 0x384   :  { %v1679_v14 = vpop.f32.mrf.mxu1  ;;  %v1686_v9 = vpop.f32.mrf.mxu0 }
 0x385   :  { %v1763_v12 = vpack.i.bf16 %v1251_v7, %v1250_v19  ;;  %v1861_v46 = vpop.eup %1860 }
 0x386   :  { %v978_v24 = vpop.f32.mrf.mxu0 }
 0x387   :  { %v1253_v16 = vmul.f32 %v1845_v59, %v978_v24  ;;  %1764 = vrot.lane.b32.xlu0 %v1763_v12, %s1902_s1  ;;  %v1863_v59 = vpop.eup %1862 }
 0x388   :  { %v1687_v17 = vpop.f32.mrf.mxu0  ;;  %v1865_v13 = vpop.eup %1864 }
 0x389   :  { %v1768_v2 = vpack.i.bf16 %v1253_v16, %v1252_v28  ;;  %v1867_v22 = vpop.eup %1866 }
 0x38a   :  { %v1248_v33 = vmul.f32 %v1867_v22, %v2307_v43 }
 0x38b   :  { %1769 = vrot.lane.b32.xlu1 %v1768_v2, %s1903_s13 }
 0x38f   :  { %v1025_v45 = vpop.f32.mrf.mxu1 }
 0x390   :  { %v1254_v31 = vmul.f32 %v1847_v21, %v1025_v45  ;;  %v809_v45 = vadd.f32 1e-16, %v765_v6 }
 0x391   :  { %v1694_v32 = vpop.f32.mrf.mxu1 }
 0x392   :  { %1868 = vrcp.f32 %v809_v45 }
 0x393   :  { %v1028_v29 = vpop.f32.mrf.mxu1  ;;  %v1075_v56 = vpop.f32.mrf.mxu0 }
 0x394   :  { %v1255_v49 = vmul.f32 %v1849_v27, %v1028_v29  ;;  %v1256_v42 = vmul.f32 %v1851_v37, %v1075_v56 }
 0x395   :  { %v1695_v35 = vpop.f32.mrf.mxu1  ;;  %v1702_v25 = vpop.f32.mrf.mxu0 }
 0x396   :  { %v1773_v41 = vpack.i.bf16 %v1255_v49, %v1254_v31 }
 0x397   :  { %v1078_v58 = vpop.f32.mrf.mxu0 }
 0x398   :  { %v1257_v8 = vmul.f32 %v1853_v53, %v1078_v58  ;;  %1774 = vrot.lane.b32.xlu1 %v1773_v41, %s1904_s14 }
 0x399   :  { %v1703_v10 = vpop.f32.mrf.mxu0 }
 0x39a   :  { %v1778_v47 = vpack.i.bf16 %v1257_v8, %v1256_v42 }
 0x39c   :  { %1779 = vrot.lane.b32.xlu0 %v1778_v47, %s1905_s15 }
 0x39f   :  { %v1125_v51 = vpop.f32.mrf.mxu1  ;;  %v1869_v26 = vpop.eup %1868 }
 0x3a0   :  { %v1258_v62 = vmul.f32 %v1855_v38, %v1125_v51  ;;  %v1249_v35 = vmul.f32 %v1869_v26, %v2309_v63 }
 0x3a1   :  { %v1710_v55 = vpop.f32.mrf.mxu1 }
 0x3a3   :  { %v1128_v20 = vpop.f32.mrf.mxu1  ;;  %v1175_v15 = vpop.f32.mrf.mxu0 }
 0x3a4   :  { %v1259_v0 = vmul.f32 %v1857_v61, %v1128_v20  ;;  %v1260_v7 = vmul.f32 %v1859_v3, %v1175_v15 }
 0x3a5   :  { %v1711_v57 = vpop.f32.mrf.mxu1  ;;  %v1718_v1 = vpop.f32.mrf.mxu0 }
 0x3a6   :  { %v1783_v5 = vpack.i.bf16 %v1259_v0, %v1258_v62 }
 0x3a7   :  { %v1178_v19 = vpop.f32.mrf.mxu0 }
 0x3a8   :  { %v1261_v14 = vmul.f32 %v1861_v46, %v1178_v19  ;;  %1784 = vrot.lane.b32.xlu1 %v1783_v5, %s1906_s21  ;;  %v1518_v19 = vld [vmem:[%s2358_s8] ss:$0 sm:$0xff] }
 0x3a9   :  { %v1719_v9 = vpop.f32.mrf.mxu0 }
 0x3aa   :  { %v1788_v60 = vpack.i.bf16 %v1261_v14, %v1260_v7 }
 0x3ac   :  { %1789 = vrot.lane.b32.xlu0 %v1788_v60, %s1907_s7 }
 0x3af   :  { %v1225_v34 = vpop.f32.mrf.mxu1 }
 0x3b0   :  { %v1262_v28 = vmul.f32 %v1863_v59, %v1225_v34 }
 0x3b1   :  { %v1726_v12 = vpop.f32.mrf.mxu1 }
 0x3b3   :  { %v1228_v24 = vpop.f32.mrf.mxu1 }
 0x3b4   :  { %v1263_v16 = vmul.f32 %v1865_v13, %v1228_v24 }
 0x3b5   :  { %v1727_v17 = vpop.f32.mrf.mxu1 }
 0x3b6   :  { %v1793_v2 = vpack.i.bf16 %v1263_v16, %v1262_v28 }
 0x3b8   :  { %1794 = vrot.lane.b32.xlu1 %v1793_v2, %s1908_s0 }
 0x3f9   :  { %v1765_v32 = vpop.permute.xlu0 %1764 }
 0x3fa   :  { %v1767_v27 = vunpack.i.h.bf16 %v1765_v32  ;;  %v1766_v29 = vunpack.i.l.bf16 %v1765_v32 }
 0x3fc   :  { %v1320_v58 = vsel %vm247_vm2, %v1248_v33, %v1766_v29  ;;  %v1321_v42 = vsel %vm247_vm2, %v1249_v35, %v1767_v27 }
 0x3fd   :  { %v1770_v36 = vpop.permute.xlu1 %1769 }
 0x3fe   :  { %v1772_v56 = vunpack.i.h.bf16 %v1770_v36  ;;  %v1771_v31 = vunpack.i.l.bf16 %v1770_v36 }
 0x400   :  { %v1324_v47 = vsel %vm1322_vm3, %v1321_v42, %v1772_v56  ;;  %v1323_v23 = vsel %vm1322_vm3, %v1320_v58, %v1771_v31 }
 0x40a   :  { %v1775_v21 = vpop.permute.xlu1 %1774 }
 0x40b   :  { %v1777_v25 = vunpack.i.h.bf16 %v1775_v21  ;;  %v1776_v37 = vunpack.i.l.bf16 %v1775_v21 }
 0x40d   :  { %v1326_v63 = vsel %vm1325_vm4, %v1323_v23, %v1776_v37  ;;  %v1327_v51 = vsel %vm1325_vm4, %v1324_v47, %v1777_v25 }
 0x40e   :  { %v1780_v40 = vpop.permute.xlu0 %1779 }
 0x40f   :  { %v1782_v41 = vunpack.i.h.bf16 %v1780_v40  ;;  %v1781_v53 = vunpack.i.l.bf16 %v1780_v40 }
 0x411   :  { %v1330_v54 = vsel %vm1328_vm5, %v1327_v51, %v1782_v41  ;;  %v1329_v55 = vsel %vm1328_vm5, %v1326_v63, %v1781_v53 }
 0x41a   :  { %v1785_v49 = vpop.permute.xlu1 %1784 }
 0x41b   :  { %v1787_v8 = vunpack.i.h.bf16 %v1785_v49  ;;  %v1786_v10 = vunpack.i.l.bf16 %v1785_v49 }
 0x41d   :  { %v1332_v52 = vsel %vm1331_vm6, %v1329_v55, %v1786_v10  ;;  %v1333_v38 = vsel %vm1331_vm6, %v1330_v54, %v1787_v8 }
 0x41e   :  { %v1790_v39 = vpop.permute.xlu0 %1789 }
 0x41f   :  { %v1792_v43 = vunpack.i.h.bf16 %v1790_v39  ;;  %v1791_v50 = vunpack.i.l.bf16 %v1790_v39 }
 0x421   :  { %v1336_v20 = vsel %vm1334_vm7, %v1333_v38, %v1792_v43  ;;  %v1335_v15 = vsel %vm1334_vm7, %v1332_v52, %v1791_v50 }
 0x42a   :  { %v1795_v11 = vpop.permute.xlu1 %1794 }
 0x42b   :  { %v1797_v48 = vunpack.i.h.bf16 %v1795_v11  ;;  %v1796_v61 = vunpack.i.l.bf16 %v1795_v11 }
 0x42d   :  { %v1338_v30 = vsel %vm1337_vm8, %v1335_v15, %v1796_v61  ;;  %v1339_v62 = vsel %vm1337_vm8, %v1336_v20, %v1797_v48 }
 0x42e   :  { %v1340_v0 = vpack.c.bf16 %v1339_v62, %v1338_v30 }
 0x430   :  { %1741 = vmatmul.mubr.msk.bf16.vlgmr.msra.gmra.mxu1 %vm68_vm0, %v1340_v0 }
 0x443   :  { %v1395_v57 = vpop.f32.mrf.mxu0 }
 0x445   :  { %v1734_v1 = vpop.f32.mrf.mxu0 }
 0x447   :  { %v1398_v3 = vpop.f32.mrf.mxu0 }
 0x449   :  { %v1735_v5 = vpop.f32.mrf.mxu0 }
 0x4f0   :  { %v1451_v46 = vpop.f32.mrf.mxu1 }
 0x4f1   :  { %v1452_v7 = vadd.f32 %v1451_v46, %v1395_v57 }
 0x4f2   :  { %v1742_v14 = vpop.f32.mrf.mxu1 }
 0x4f3   :  { %v1465_v9 = vadd.f32 %v1518_v19, %v1452_v7 }
 0x4f4   :  { %v1454_v60 = vpop.f32.mrf.mxu1 }
 0x4f5   :  { %1467 = vst.msk [vmem:[#allocation2] sm:$0xff] %vm68_vm0, %v1465_v9  ;;  %v1455_v4 = vadd.f32 %v1454_v60, %v1398_v3 }
 0x4f6   :  { %v1743_v34 = vpop.f32.mrf.mxu1 }
 0x4f7   :  { %v1466_v12 = vadd.f32 %v1518_v19, %v1455_v4 }
 0x4f9   :  { %1468 = vst.msk [vmem:[#allocation2 + $0x8] sm:$0xff] %vm68_vm0, %v1466_v12 }
 0x4fa   :  { %1881 = shalt.err (!%p1878_p4)
}
 0x4fb   :  { %s1910_s8 = smov 128  }
 0x4fc   :  { %1480 = dma.vmem_to_hbm [thread:$0]  %s1475_s25, 256, %s2359_s9, [#allocation3], %s1910_s8, %s1910_s8, %s1903_s13  }
 0x4fd   :  { %1890 = dma.done.wait [#allocation3], 256  }
 0x4fe   :  { %1891 = vsyncadd [#allocation3], 4294967040 }
 0x4ff   :  { %1484 = vsyncpa [#allocation3], 1 }

// kernel: _tgrec2_forward_impl.2
= control target key start
LH: loop header
LB: loop body
LE: loop exit
PB: predicated region body
PF: predicated region fallthrough
CT: control target
= control target key end

     0   :  { %s2571_s30 = smov 0   ;;  %s3166_s0 = inlined_call_operand.vmem [shape: f32[64,32], index: 0, kind: input, shape index: {}]   ;;  %s3167_s1 = inlined_call_operand.vmem [shape: bf16[64,64], index: 1, kind: input, shape index: {}]   ;;  %s3168_s2 = inlined_call_operand.vmem [shape: bf16[32,32], index: 2, kind: input, shape index: {}]   ;;  %s3169_s3 = inlined_call_operand.vmem [shape: f32[1,32], index: 3, kind: input, shape index: {}]   ;;  %s3170_s4 = inlined_call_operand.vmem [shape: bf16[32,64], index: 4, kind: input, shape index: {}]   ;;  %s3171_s5 = inlined_call_operand.vmem [shape: f32[1,64], index: 5, kind: input, shape index: {}]   ;;  %s3172_s6 = inlined_call_operand.vmem [shape: bf16[32,32], index: 6, kind: input, shape index: {}]   ;;  %s3173_s7 = inlined_call_operand.vmem [shape: bf16[32,32], index: 7, kind: input, shape index: {}]   ;;  %s3174_s8 = inlined_call_operand.vmem [shape: f32[1,32], index: 8, kind: input, shape index: {}]   ;;  %s3175_s9 = inlined_call_operand.vmem [shape: f32[32,32], index: 9, kind: output, shape index: {}]  }
   0x1 LB: > { %s1989_s10 = sadd.s32 4294967295, %s2502_s30   ;;  %p1993_p0 = scmp.ge.s32.totalorder %s2502_s30, 1  ;;  %s2502_s30 = sphi %s2571_s30, %s19_s30  }
   0x2   : > { %p288_p1 = scmp.lt.s32.totalorder %s2502_s30, 3 }
   0x4   : > { %p289_p2 = pnand %p1993_p0, %p288_p1 }
   0x5   : > { %s1998_s19 = sshll.u32 (!%p289_p2), %s1989_s10, 4  ;;  %s2506_s22 = smov (!%p289_p2), 124  }
   0x6   : > { %292 = sbr.rel (%p289_p2) target bundleno = 1375 (0x55f), region = 56  ;;  %s350_s26 = scalar_lea.vmem (!%p289_p2), %s3166_s0, %s1998_s19 }
   0x7   : > { %s2507_s23 = smov (!%p289_p2), 116   ;;  %s2509_s27 = smov (!%p289_p2), 112  }
   0x8   : > { %s2510_s28 = smov (!%p289_p2), 108   ;;  %s2511_s29 = smov (!%p289_p2), 104  }
   0x9   : > { %s2512_s11 = smov (!%p289_p2), 100   ;;  %s2513_s12 = smov (!%p289_p2), 96  }
   0xa   : > { %s2813_s13 = sshll.u32 (!%p289_p2), %s1989_s10, 1  ;;  %s2514_s18 = smov (!%p289_p2), 4  }
   0xb   : > { %v2424_v0 = vld [vmem:[%s3170_s4 + $0x8] sm:$0xff]   ;;  %v2425_v1 = vld [vmem:[%s3170_s4] sm:$0xff]   ;;  %vm377_vm0 = vcmask 261120   ;;  %v2504_v4 = vmov 0.0   ;;  %v340_v6 = vld [vmem:[%s3166_s0 + $0x10] sm:$0xff]  ;;  %vm2505_vm1 = vmmov 0  }
   0xc   : > { %2144 = vmatprep.subr.bf16.mxu1 %v2424_v0  ;;  %v338_v2 = vld [vmem:[%s3166_s0] sm:$0xff]  ;;  %v339_v3 = vld [vmem:[%s3166_s0 + $0x8] sm:$0xff]  ;;  %2136 = vmatprep.subr.bf16.mxu0 %v2504_v4  ;;  %v341_v7 = vld [vmem:[%s3166_s0 + $0x18] sm:$0xff]  ;;  %vm610_vm2 = vcmask 31744   ;;  %p325_p3 = scmp.lt.s32.totalorder %s2813_s13, 7  ;;  %vm1059_vm3 = vcmask 523264  }
   0xd   : > { %2145 = vmatpush3.bf16.msra.mxu1 %v2424_v0  ;;  %v346_v5 = vpack.c.bf16 %v339_v3, %v338_v2  ;;  %2140 = vmatprep.mubr.msk.bf16.mxu0 %vm2505_vm1, %v2504_v4  ;;  %v342_v8 = vld [vmem:[%s3166_s0 + $0x20] sm:$0xff]  ;;  %v343_v9 = vld [vmem:[%s3166_s0 + $0x28] sm:$0xff]  ;;  %v347_v11 = vpack.c.bf16 %v341_v7, %v340_v6  ;;  %v344_v17 = vld [vmem:[%s3166_s0 + $0x30] sm:$0xff]  ;;  %s2515_s19 = smov 8   ;;  %s2516_s20 = smov 16   ;;  %vm1782_vm4 = vcmask 64512  }
   0xe   : > { %2146 = vmatprep.subr.bf16.mxu1 %v2425_v1  ;;  %v2426_v10 = vld [vmem:[%s3168_s2 + $0x8] sm:$0xff]   ;;  %v2427_v12 = vld [vmem:[%s3168_s2] sm:$0xff]   ;;  %v348_v14 = vpack.c.bf16 %v343_v9, %v342_v8  ;;  %v345_v18 = vld [vmem:[%s3166_s0 + $0x38] sm:$0xff]  ;;  %s326_s10 = scalar_select %p325_p3, %s2813_s13, 7  ;;  %vm1785_vm5 = vcmask 97280   ;;  %vm1788_vm6 = vcmask 130048  }
   0xf   : > { %2148 = vmatprep.mubr.msk.bf16.mxu1 %vm377_vm0, %v346_v5  ;;  %v351_v13 = vld [vmem:[%s350_s26] sm:$0xff]  ;;  %2137 = vmatpush3.bf16.msra.mxu0 %v2426_v10  ;;  %v352_v15 = vld [vmem:[%s350_s26 + $0x8] sm:$0xff]  ;;  %v349_v19 = vpack.c.bf16 %v345_v18, %v344_v17  ;;  %s2508_s26 = smov 120   ;;  %s2517_s21 = smov 12   ;;  %vm1791_vm7 = vcmask 162816   ;;  %vm1794_vm8 = vcmask 195584  }
  0x10   : > { %2138 = vmatprep.subr.bf16.mxu0 %v2504_v4  ;;  %v2621_v16 = vpack.c.bf16 %v352_v15, %v351_v13  ;;  %v2003_v21 = vld [vmem:[%s3171_s5] ss:$0 sm:$0xff]  ;;  %s1995_s14 = sshll.u32 %s326_s10, 2  ;;  %s2518_s24 = smov 20   ;;  %vm1797_vm9 = vcmask 228352  }
  0x11   : > { %2147 = vmatpush3.bf16.msra.mxu1 %v2425_v1  ;;  %v1999_v45 = vld [vmem:[%s3169_s3] ss:$0 sm:$0xff]  ;;  %s328_s17 = scalar_lea.vmem %s3167_s1, %s1995_s14  ;;  %s2520_s10 = smov 24  }
  0x12   : > { %2168 = vmatprep.subr.bf16.mxu1 %v2504_v4  ;;  %p331_p4 = scmp.lt.s32.totalorder %s2813_s13, 3 }
  0x13   : > { %2139 = vmatpush3.bf16.msra.mxu0 %v2427_v12 }
  0x14   : > { %2149 = vmatmul.mubr.msk.bf16.vlgmr.msra.gmra.mxu1 %vm377_vm0, %v347_v11  ;;  %2156 = vmatprep.subr.bf16.mxu0 %v2504_v4  ;;  %s3177_s13 = smov (!%p331_p4, %s2813_s13), 3 }
  0x15   : > { %2152 = vmatprep.mubr.msk.bf16.mxu1 %vm377_vm0, %v348_v14  ;;  %s1997_s16 = sshll.u32 %s3177_s13, 3 }
  0x16   : > { %2141 = vmatmul.mubr.msk.bf16.vlgmr.msra.gmra.mxu0 %vm377_vm0, %v2621_v16 }
  0x17   : > { %2164 = vmatprep.mubr.msk.bf16.mxu0 %vm2505_vm1, %v2504_v4 }
  0x1c   : > { %2153 = vmatmul.mubr.msk.bf16.gmra.mxu1 %vm377_vm0, %v349_v19 }
  0x1d   : > { %2176 = vmatprep.mubr.msk.bf16.mxu1 %vm2505_vm1, %v2504_v4 }
  0xd4   : > { %v2150_v20 = vpop.f32.mrf.mxu1 }
  0xd5   : > { %v500_v25 = vadd.f32 %v2150_v20, %v2003_v21 }
  0xd6   : > { %v491_v22 = vpop.f32.mrf.mxu1  ;;  %v415_v24 = vpop.f32.mrf.mxu0 }
  0xd7   : > { %v492_v33 = vadd.f32 %v2003_v21, %v491_v22  ;;  %v416_v47 = vadd.f32 %v1999_v45, %v415_v24 }
  0xd8   : > { %v2151_v23 = vpop.f32.mrf.mxu1  ;;  %v2142_v28 = vpop.f32.mrf.mxu0 }
  0xd9   : > { %v503_v26 = vadd.f32 %v2151_v23, %v2003_v21 }
  0xda   : > { %v494_v27 = vpop.f32.mrf.mxu1  ;;  %v418_v32 = vpop.f32.mrf.mxu0 }
  0xdb   : > { %v2641_v29 = vpack.c.bf16 %v503_v26, %v500_v25  ;;  %v495_v30 = vadd.f32 %v2003_v21, %v494_v27  ;;  %v419_v48 = vadd.f32 %v1999_v45, %v418_v32 }
  0xdc   : > { %v2154_v31 = vpop.f32.mrf.mxu1  ;;  %v2143_v35 = vpop.f32.mrf.mxu0 }
  0xdd   : > { %548 = vrot.lane.b32.xlu1 %v2641_v29, %s2506_s22  ;;  %v2645_v36 = vpack.c.bf16 %v495_v30, %v492_v33  ;;  %v516_v38 = vadd.f32 %v2154_v31, %v2003_v21  ;;  %v522_v49 = vpack.c.bf16 %v419_v48, %v416_v47  ;;  %v618_v51 = vsel %vm610_vm2, %v2641_v29, 0 }
  0xde   : > { %v507_v34 = vpop.f32.mrf.mxu1 }
  0xdf   : > { %v508_v43 = vadd.f32 %v2003_v21, %v507_v34  ;;  %v615_v52 = vsel %vm610_vm2, %v2645_v36, 0 }
  0xe0   : > { %v2155_v37 = vpop.f32.mrf.mxu1 }
  0xe1   : > { %v519_v39 = vadd.f32 %v2155_v37, %v2003_v21  ;;  %546 = vrot.lane.b32.xlu1 %v2645_v36, %s2506_s22 }
  0xe2   : > { %v510_v40 = vpop.f32.mrf.mxu1 }
  0xe3   : > { %v2649_v41 = vpack.c.bf16 %v519_v39, %v516_v38  ;;  %v511_v42 = vadd.f32 %v2003_v21, %v510_v40 }
  0xe5   : > { %552 = vrot.lane.b32.xlu0 %v2649_v41, %s2506_s22  ;;  %568 = vrot.lane.b32.xlu1 %v2649_v41, %s2507_s23  ;;  %v624_v44 = vsel %vm610_vm2, %v2649_v41, 0  ;;  %v540_v46 = vpack.c.bf16 %v511_v42, %v508_v43 }
  0xe6   : > { %2157 = vmatpush3.bf16.xpose.msra.mxu0 %v624_v44 }
  0xe7   : > { %2158 = vmatprep.subr.bf16.mxu0 %v2504_v4  ;;  %v621_v50 = vsel %vm610_vm2, %v540_v46, 0 }
  0xe9   : > { %550 = vrot.lane.b32.xlu0 %v540_v46, %s2506_s22  ;;  %558 = vrot.lane.b32.xlu1 %v540_v46, %s2508_s26 }
  0xed   : > { %560 = vrot.lane.b32.xlu0 %v2649_v41, %s2508_s26  ;;  %556 = vrot.lane.b32.xlu1 %v2641_v29, %s2508_s26 }
  0xee   : > { %2159 = vmatpush3.bf16.xpose.msra.mxu0 %v621_v50 }
  0xef   : > { %2160 = vmatprep.subr.bf16.mxu0 %v2504_v4 }
  0xf1   : > { %554 = vrot.lane.b32.xlu1 %v2645_v36, %s2508_s26  ;;  %524 = vrot.lane.b32.xlu0 %v522_v49, %s2506_s22 }
  0xf5   : > { %576 = vrot.lane.b32.xlu1 %v2649_v41, %s2509_s27  ;;  %566 = vrot.lane.b32.xlu0 %v540_v46, %s2507_s23 }
  0xf6   : > { %2161 = vmatpush3.bf16.xpose.msra.mxu0 %v618_v51 }
  0xf7   : > { %2162 = vmatprep.subr.bf16.mxu0 %v2504_v4 }
  0xf9   : > { %584 = vrot.lane.b32.xlu1 %v2649_v41, %s2510_s28  ;;  %564 = vrot.lane.b32.xlu0 %v2641_v29, %s2507_s23 }
  0xfd   : > { %574 = vrot.lane.b32.xlu1 %v540_v46, %s2509_s27  ;;  %562 = vrot.lane.b32.xlu0 %v2645_v36, %s2507_s23 }
  0xfe   : > { %2163 = vmatpush3.bf16.xpose.msra.mxu0 %v615_v52 }
  0xff   : > { %2180 = vmatprep.subr.bf16.mxu0 %v2504_v4 }
 0x101   : > { %572 = vrot.lane.b32.xlu1 %v2641_v29, %s2509_s27  ;;  %526 = vrot.lane.b32.xlu0 %v522_v49, %s2508_s26 }
 0x105   : > { %570 = vrot.lane.b32.xlu1 %v2645_v36, %s2509_s27  ;;  %528 = vrot.lane.b32.xlu0 %v522_v49, %s2507_s23 }
 0x106   : > { %2165 = vmatmul.mubr.msk.bf16.vlgmr.msra.gmra.mxu0 %vm610_vm2, %v522_v49 }
 0x107   : > { %2188 = vmatprep.mubr.msk.bf16.mxu0 %vm2505_vm1, %v2504_v4 }
 0x109   : > { %592 = vrot.lane.b32.xlu1 %v2649_v41, %s2511_s29  ;;  %582 = vrot.lane.b32.xlu0 %v540_v46, %s2510_s28 }
 0x10d   : > { %600 = vrot.lane.b32.xlu1 %v2649_v41, %s2512_s11  ;;  %580 = vrot.lane.b32.xlu0 %v2641_v29, %s2510_s28 }
 0x111   : > { %590 = vrot.lane.b32.xlu1 %v540_v46, %s2511_s29  ;;  %578 = vrot.lane.b32.xlu0 %v2645_v36, %s2510_s28 }
 0x115   : > { %588 = vrot.lane.b32.xlu1 %v2641_v29, %s2511_s29  ;;  %530 = vrot.lane.b32.xlu0 %v522_v49, %s2509_s27 }
 0x119   : > { %586 = vrot.lane.b32.xlu1 %v2645_v36, %s2511_s29  ;;  %532 = vrot.lane.b32.xlu0 %v522_v49, %s2510_s28 }
 0x11d   : > { %534 = vrot.lane.b32.xlu1 %v522_v49, %s2511_s29  ;;  %598 = vrot.lane.b32.xlu0 %v540_v46, %s2512_s11 }
 0x121   : > { %1246 = vrot.lane.b32.xlu1 %v2641_v29, %s2513_s12  ;;  %596 = vrot.lane.b32.xlu0 %v2641_v29, %s2512_s11 }
 0x125   : > { %1244 = vrot.lane.b32.xlu1 %v2645_v36, %s2513_s12  ;;  %594 = vrot.lane.b32.xlu0 %v2645_v36, %s2512_s11 }
 0x129   : > { %1248 = vrot.lane.b32.xlu1 %v540_v46, %s2513_s12  ;;  %536 = vrot.lane.b32.xlu0 %v522_v49, %s2512_s11  ;;  %v2038_v49 = vld [vmem:[%s328_s17] sm:$0xff]  }
 0x12d   : > { %1250 = vrot.lane.b32.xlu0 %v2649_v41, %s2513_s12 }
 0x14f   : > { %v549_v53 = vpop.permute.xlu1 %548 }
 0x150   : > { %1302 = vrot.lane.b32.xlu0 %v549_v53, %s2513_s12  ;;  %v674_v5 = vsel %vm610_vm2, %v549_v53, 0  ;;  %v2847_v53 = vunpack.c.l.bf16 %v2038_v49 }
 0x153   : > { %v2703_v54 = vpop.permute.xlu1 %546 }
 0x154   : > { %v671_v12 = vsel %vm610_vm2, %v2703_v54, 0 }
 0x157   : > { %v553_v55 = vpop.permute.xlu0 %552  ;;  %v2705_v56 = vpop.permute.xlu1 %568 }
 0x158   : > { %v680_v57 = vsel %vm610_vm2, %v553_v55, 0  ;;  %v792_v18 = vsel %vm610_vm2, %v2705_v56, 0 }
 0x159   : > { %2169 = vmatpush3.bf16.xpose.msra.mxu1 %v680_v57 }
 0x15a   : > { %2170 = vmatprep.subr.bf16.mxu1 %v2504_v4 }
 0x15b   : > { %v2709_v58 = vpop.permute.xlu0 %550  ;;  %v2711_v59 = vpop.permute.xlu1 %558 }
 0x15c   : > { %v677_v62 = vsel %vm610_vm2, %v2709_v58, 0  ;;  %v733_v6 = vsel %vm610_vm2, %v2711_v59, 0 }
 0x15f   : > { %v2713_v60 = vpop.permute.xlu0 %560  ;;  %v557_v61 = vpop.permute.xlu1 %556 }
 0x160   : > { %1358 = vrot.lane.b32.xlu1 %v557_v61, %s2513_s12  ;;  %v736_v63 = vsel %vm610_vm2, %v2713_v60, 0  ;;  %v730_v11 = vsel %vm610_vm2, %v557_v61, 0 }
 0x161   : > { %2171 = vmatpush3.bf16.xpose.msra.mxu1 %v677_v62  ;;  %2181 = vmatpush3.bf16.xpose.msra.mxu0 %v736_v63 }
 0x162   : > { %2172 = vmatprep.subr.bf16.mxu1 %v2504_v4  ;;  %2182 = vmatprep.subr.bf16.mxu0 %v2504_v4 }
 0x163   : > { %v555_v0 = vpop.permute.xlu1 %554  ;;  %v525_v1 = vpop.permute.xlu0 %524 }
 0x164   : > { %v727_v17 = vsel %vm610_vm2, %v555_v0, 0 }
 0x167   : > { %v577_v2 = vpop.permute.xlu1 %576  ;;  %v2722_v3 = vpop.permute.xlu0 %566 }
 0x168   : > { %v789_v22 = vsel %vm610_vm2, %v2722_v3, 0  ;;  %v848_v23 = vsel %vm610_vm2, %v577_v2, 0 }
 0x169   : > { %2173 = vmatpush3.bf16.xpose.msra.mxu1 %v674_v5  ;;  %2183 = vmatpush3.bf16.xpose.msra.mxu0 %v733_v6 }
 0x16a   : > { %2174 = vmatprep.subr.bf16.mxu1 %v2504_v4  ;;  %2184 = vmatprep.subr.bf16.mxu0 %v2504_v4 }
 0x16b   : > { %v2729_v7 = vpop.permute.xlu1 %584  ;;  %v565_v8 = vpop.permute.xlu0 %564 }
 0x16c   : > { %1414 = vrot.lane.b32.xlu0 %v565_v8, %s2513_s12  ;;  %v786_v25 = vsel %vm610_vm2, %v565_v8, 0  ;;  %v904_v32 = vsel %vm610_vm2, %v2729_v7, 0 }
 0x16f   : > { %v2732_v9 = vpop.permute.xlu1 %574  ;;  %v563_v10 = vpop.permute.xlu0 %562 }
 0x170   : > { %v845_v26 = vsel %vm610_vm2, %v2732_v9, 0  ;;  %v783_v29 = vsel %vm610_vm2, %v563_v10, 0 }
 0x171   : > { %2175 = vmatpush3.bf16.xpose.msra.mxu1 %v671_v12  ;;  %2185 = vmatpush3.bf16.xpose.msra.mxu0 %v730_v11 }
 0x172   : > { %2192 = vmatprep.subr.bf16.mxu1 %v2504_v4  ;;  %2186 = vmatprep.subr.bf16.mxu0 %v2504_v4 }
 0x173   : > { %v573_v13 = vpop.permute.xlu1 %572  ;;  %v527_v14 = vpop.permute.xlu0 %526 }
 0x174   : > { %1470 = vrot.lane.b32.xlu1 %v573_v13, %s2513_s12  ;;  %v842_v30 = vsel %vm610_vm2, %v573_v13, 0 }
 0x177   : > { %v529_v15 = vpop.permute.xlu0 %528  ;;  %v571_v19 = vpop.permute.xlu1 %570 }
 0x178   : > { %1356 = vrot.lane.b32.xlu1 %v555_v0, %s2513_s12  ;;  %2177 = vmatmul.mubr.msk.bf16.vlgmr.msra.gmra.mxu1 %vm610_vm2, %v525_v1  ;;  %v839_v33 = vsel %vm610_vm2, %v571_v19, 0 }
 0x179   : > { %2187 = vmatpush3.bf16.xpose.msra.mxu0 %v727_v17  ;;  %2193 = vmatpush3.bf16.xpose.msra.mxu1 %v792_v18 }
 0x17a   : > { %2194 = vmatprep.subr.bf16.mxu1 %v2504_v4  ;;  %2204 = vmatprep.subr.bf16.mxu0 %v2504_v4 }
 0x17b   : > { %v2747_v20 = vpop.permute.xlu0 %582  ;;  %2200 = vmatprep.mubr.msk.bf16.mxu1 %vm2505_vm1, %v2504_v4  ;;  %v593_v24 = vpop.permute.xlu1 %592 }
 0x17c   : > { %1468 = vrot.lane.b32.xlu1 %v571_v19, %s2513_s12  ;;  %v901_v35 = vsel %vm610_vm2, %v2747_v20, 0  ;;  %v960_v36 = vsel %vm610_vm2, %v593_v24, 0 }
 0x17f   : > { %v581_v21 = vpop.permute.xlu0 %580  ;;  %v601_v28 = vpop.permute.xlu1 %600 }
 0x180   : > { %1306 = vrot.lane.b32.xlu1 %v553_v55, %s2513_s12  ;;  %1526 = vrot.lane.b32.xlu0 %v581_v21, %s2513_s12  ;;  %v898_v39 = vsel %vm610_vm2, %v581_v21, 0  ;;  %v1016_v48 = vsel %vm610_vm2, %v601_v28, 0  ;;  %v2010_v55 = vadd.f32 -1.0, %v2847_v53 }
 0x181   : > { %2189 = vmatmul.mubr.msk.bf16.vlgmr.msra.gmra.mxu0 %vm610_vm2, %v527_v14  ;;  %2195 = vmatpush3.bf16.xpose.msra.mxu1 %v789_v22 }
 0x182   : > { %2205 = vmatpush3.bf16.xpose.msra.mxu0 %v848_v23  ;;  %2196 = vmatprep.subr.bf16.mxu1 %v2504_v4 }
 0x183   : > { %2206 = vmatprep.subr.bf16.mxu0 %v2504_v4  ;;  %2212 = vmatprep.mubr.msk.bf16.mxu0 %vm2505_vm1, %v2504_v4  ;;  %v579_v27 = vpop.permute.xlu0 %578  ;;  %v591_v31 = vpop.permute.xlu1 %590 }
 0x184   : > { %1418 = vrot.lane.b32.xlu1 %v2705_v56, %s2513_s12  ;;  %1300 = vrot.lane.b32.xlu0 %v2703_v54, %s2513_s12  ;;  %v957_v40 = vsel %vm610_vm2, %v591_v31, 0  ;;  %v895_v44 = vsel %vm610_vm2, %v579_v27, 0  ;;  %v2850_v56 = vunpack.c.h.bf16 %v2038_v49 }
 0x187   : > { %v531_v34 = vpop.permute.xlu0 %530  ;;  %v2809_v38 = vpop.permute.xlu1 %588 }
 0x188   : > { %1474 = vrot.lane.b32.xlu1 %v577_v2, %s2513_s12  ;;  %1412 = vrot.lane.b32.xlu0 %v563_v10, %s2513_s12  ;;  %v954_v45 = vsel %vm610_vm2, %v2809_v38, 0 }
 0x189   : > { %2197 = vmatpush3.bf16.xpose.msra.mxu1 %v786_v25 }
 0x18a   : > { %2207 = vmatpush3.bf16.xpose.msra.mxu0 %v845_v26  ;;  %2198 = vmatprep.subr.bf16.mxu1 %v2504_v4 }
 0x18b   : > { %2208 = vmatprep.subr.bf16.mxu0 %v2504_v4  ;;  %v533_v37 = vpop.permute.xlu0 %532  ;;  %v2824_v42 = vpop.permute.xlu1 %586 }
 0x18c   : > { %1586 = vrot.lane.b32.xlu1 %v593_v24, %s2513_s12  ;;  %1524 = vrot.lane.b32.xlu0 %v579_v27, %s2513_s12  ;;  %v951_v50 = vsel %vm610_vm2, %v2824_v42, 0 }
 0x18f   : > { %v2819_v41 = vpop.permute.xlu0 %598  ;;  %v535_v46 = vpop.permute.xlu1 %534 }
 0x190   : > { %1360 = vrot.lane.b32.xlu1 %v2711_v59, %s2513_s12  ;;  %1362 = vrot.lane.b32.xlu0 %v2713_v60, %s2513_s12  ;;  %v1013_v57 = vsel %vm610_vm2, %v2819_v41, 0  ;;  %v2857_v59 = vmul.f32 1e+30, %v2010_v55  ;;  %v2011_v60 = vadd.f32 -1.0, %v2850_v56 }
 0x191   : > { %2199 = vmatpush3.bf16.xpose.msra.mxu1 %v783_v29 }
 0x192   : > { %2209 = vmatpush3.bf16.xpose.msra.mxu0 %v842_v30  ;;  %2216 = vmatprep.subr.bf16.mxu1 %v2504_v4  ;;  %v2866_v0 = vmul.f32 1e+30, %v2011_v60 }
 0x193   : > { %2210 = vmatprep.subr.bf16.mxu0 %v2504_v4  ;;  %v2827_v43 = vpop.permute.xlu0 %596  ;;  %v1247_v51 = vpop.permute.xlu1 %1246 }
 0x194   : > { %1584 = vrot.lane.b32.xlu1 %v591_v31, %s2513_s12  ;;  %1530 = vrot.lane.b32.xlu0 %v2729_v7, %s2513_s12  ;;  %v1010_v1 = vsel %vm610_vm2, %v2827_v43, 0 }
 0x197   : > { %v2834_v47 = vpop.permute.xlu0 %594  ;;  %v1245_v54 = vpop.permute.xlu1 %1244 }
 0x198   : > { %2201 = vmatmul.mubr.msk.bf16.vlgmr.msra.gmra.mxu1 %vm610_vm2, %v529_v15  ;;  %1642 = vrot.lane.b32.xlu0 %v601_v28, %s2513_s12 }
 0x199   : > { %2217 = vmatpush3.bf16.xpose.msra.mxu1 %v904_v32  ;;  %2224 = vmatprep.mubr.msk.bf16.mxu1 %vm2505_vm1, %v2504_v4 }
 0x19a   : > { %2211 = vmatpush3.bf16.xpose.msra.mxu0 %v839_v33  ;;  %2218 = vmatprep.subr.bf16.mxu1 %v2504_v4 }
 0x19b   : > { %2228 = vmatprep.subr.bf16.mxu0 %v2504_v4  ;;  %v537_v52 = vpop.permute.xlu0 %536  ;;  %v1249_v61 = vpop.permute.xlu1 %1248 }
 0x19c   : > { %1304 = vrot.lane.b32.xlu0 %v2709_v58, %s2513_s12 }
 0x19f   : > { %v1251_v58 = vpop.permute.xlu0 %1250 }
 0x1a0   : > { %1416 = vrot.lane.b32.xlu0 %v2722_v3, %s2513_s12 }
 0x1a1   : > { %2213 = vmatmul.mubr.msk.bf16.vlgmr.msra.gmra.mxu0 %vm610_vm2, %v531_v34  ;;  %2219 = vmatpush3.bf16.xpose.msra.mxu1 %v901_v35 }
 0x1a2   : > { %2229 = vmatpush3.bf16.xpose.msra.mxu0 %v960_v36  ;;  %2220 = vmatprep.subr.bf16.mxu1 %v2504_v4 }
 0x1a3   : > { %2230 = vmatprep.subr.bf16.mxu0 %v2504_v4  ;;  %2236 = vmatprep.mubr.msk.bf16.mxu0 %vm2505_vm1, %v2504_v4 }
 0x1a4   : > { %1472 = vrot.lane.b32.xlu0 %v2732_v9, %s2513_s12  ;;  %v1007_v9 = vsel %vm610_vm2, %v2834_v47, 0 }
 0x1a8   : > { %1528 = vrot.lane.b32.xlu0 %v2747_v20, %s2513_s12 }
 0x1a9   : > { %2221 = vmatpush3.bf16.xpose.msra.mxu1 %v898_v39 }
 0x1aa   : > { %2231 = vmatpush3.bf16.xpose.msra.mxu0 %v957_v40  ;;  %2222 = vmatprep.subr.bf16.mxu1 %v2504_v4 }
 0x1ab   : > { %2232 = vmatprep.subr.bf16.mxu0 %v2504_v4 }
 0x1b1   : > { %2223 = vmatpush3.bf16.xpose.msra.mxu1 %v895_v44 }
 0x1b2   : > { %2233 = vmatpush3.bf16.xpose.msra.mxu0 %v954_v45  ;;  %2240 = vmatprep.subr.bf16.mxu1 %v2504_v4 }
 0x1b3   : > { %2234 = vmatprep.subr.bf16.mxu0 %v2504_v4 }
 0x1b8   : > { %2225 = vmatmul.mubr.msk.bf16.vlgmr.msra.gmra.mxu1 %vm610_vm2, %v533_v37 }
 0x1b9   : > { %2241 = vmatpush3.bf16.xpose.msra.mxu1 %v1016_v48  ;;  %2248 = vmatprep.mubr.msk.bf16.mxu1 %vm2505_vm1, %v2504_v4 }
 0x1ba   : > { %2235 = vmatpush3.bf16.xpose.msra.mxu0 %v951_v50  ;;  %2242 = vmatprep.subr.bf16.mxu1 %v2504_v4 }
 0x1bb   : > { %2252 = vmatprep.subr.bf16.mxu0 %v2504_v4 }
 0x1c1   : > { %2237 = vmatmul.mubr.msk.bf16.vlgmr.msra.gmra.mxu0 %vm610_vm2, %v535_v46  ;;  %2243 = vmatpush3.bf16.xpose.msra.mxu1 %v1013_v57 }
 0x1c2   : > { %2253 = vmatpush3.bf16.msra.mxu0 %v1251_v58  ;;  %2244 = vmatprep.subr.bf16.mxu1 %v2504_v4  ;;  %v1303_v12 = vpop.permute.xlu0 %1302 }
 0x1c3   : > { %2254 = vmatprep.subr.bf16.mxu0 %v2504_v4  ;;  %2260 = vmatprep.mubr.msk.bf16.mxu0 %vm2505_vm1, %v2504_v4 }
 0x1c6   : > { %v660_v62 = vpop.f32.mrf.mxu0  ;;  %2255 = vmatpush3.bf16.msra.mxu0 %v1249_v61 }
 0x1c7   : > { %v2863_v63 = vadd.f32 %v660_v62, %v2857_v59  ;;  %2256 = vmatprep.subr.bf16.mxu0 %v2504_v4 }
 0x1c8   : > { %v2166_v2 = vpop.f32.mrf.mxu0 }
 0x1c9   : > { %2245 = vmatpush3.bf16.xpose.msra.mxu1 %v1010_v1  ;;  %v1060_v3 = vsel %vm1059_vm3, %v2863_v63, -inf }
 0x1ca   : > { %v663_v5 = vpop.f32.mrf.mxu0  ;;  %2257 = vmatpush3.bf16.msra.mxu0 %v1247_v51  ;;  %1061 = vmax.xlane.f32.xlu1 %v1060_v3 }
 0x1cb   : > { %v2873_v6 = vadd.f32 %v663_v5, %v2866_v0  ;;  %2258 = vmatprep.subr.bf16.mxu0 %v2504_v4  ;;  %2246 = vmatprep.subr.bf16.mxu1 %v2504_v4 }
 0x1cc   : > { %v2167_v7 = vpop.f32.mrf.mxu0 }
 0x1cd   : > { %v1063_v8 = vsel %vm1059_vm3, %v2873_v6, -inf }
 0x1ce   : > { %2259 = vmatpush3.bf16.msra.mxu0 %v1245_v54  ;;  %1064 = vmax.xlane.f32.xlu0 %v1063_v8 }
 0x1cf   : > { %2276 = vmatprep.subr.bf16.mxu0 %v2504_v4 }
 0x1d1   : > { %2247 = vmatpush3.bf16.xpose.msra.mxu1 %v1007_v9 }
 0x1d2   : > { %2264 = vmatprep.subr.bf16.mxu1 %v2504_v4  ;;  %v2886_v10 = vpop.permute.xlu1 %1358 }
 0x1d8   : > { %2249 = vmatmul.mubr.msk.bf16.vlgmr.msra.gmra.mxu1 %vm610_vm2, %v537_v52 }
 0x1d9   : > { %2272 = vmatprep.mubr.msk.bf16.mxu1 %vm2505_vm1, %v2504_v4 }
 0x1de   : > { %v2892_v14 = vpop.permute.xlu0 %1414 }
 0x1e6   : > { %v2888_v11 = vpop.permute.xlu1 %1470 }
 0x1ea   : > { %v2890_v13 = vpop.permute.xlu1 %1356 }
 0x1ee   : > { %v2894_v15 = vpop.permute.xlu1 %1468 }
 0x1f2   : > { %v1307_v17 = vpop.permute.xlu1 %1306  ;;  %v2896_v18 = vpop.permute.xlu0 %1526 }
 0x1f3   : > { %2265 = vmatpush3.bf16.msra.mxu1 %v1307_v17 }
 0x1f4   : > { %2266 = vmatprep.subr.bf16.mxu1 %v2504_v4 }
 0x1f6   : > { %v1301_v19 = vpop.permute.xlu0 %1300  ;;  %v2912_v26 = vpop.permute.xlu1 %1418 }
 0x1fa   : > { %v2899_v20 = vpop.permute.xlu0 %1412  ;;  %v2919_v32 = vpop.permute.xlu1 %1474 }
 0x1fe   : > { %v2901_v21 = vpop.permute.xlu0 %1524  ;;  %v2929_v39 = vpop.permute.xlu1 %1586 }
 0x202   : > { %v2903_v22 = vpop.permute.xlu0 %1362  ;;  %v1361_v51 = vpop.permute.xlu1 %1360 }
 0x206   : > { %v2905_v23 = vpop.permute.xlu0 %1530  ;;  %v2942_v54 = vpop.permute.xlu1 %1584 }
 0x20a   : > { %v2907_v24 = vpop.permute.xlu0 %1642 }
 0x20e   : > { %v1305_v25 = vpop.permute.xlu0 %1304 }
 0x20f   : > { %2267 = vmatpush3.bf16.msra.mxu1 %v1305_v25 }
 0x210   : > { %2268 = vmatprep.subr.bf16.mxu1 %v2504_v4 }
 0x212   : > { %v2936_v48 = vpop.permute.xlu0 %1416 }
 0x213   : > { %2269 = vmatpush3.bf16.msra.mxu1 %v1303_v12 }
 0x214   : > { %2270 = vmatprep.subr.bf16.mxu1 %v2504_v4 }
 0x216   : > { %v2940_v52 = vpop.permute.xlu0 %1472 }
 0x217   : > { %2271 = vmatpush3.bf16.msra.mxu1 %v1301_v19 }
 0x218   : > { %2288 = vmatprep.subr.bf16.mxu1 %v2504_v4 }
 0x21a   : > { %v2944_v55 = vpop.permute.xlu0 %1528 }
 0x238   : > { %v716_v27 = vpop.f32.mrf.mxu1 }
 0x239   : > { %v2915_v28 = vadd.f32 %v716_v27, %v2857_v59 }
 0x23a   : > { %v2178_v29 = vpop.f32.mrf.mxu1 }
 0x23b   : > { %v1066_v30 = vsel %vm1059_vm3, %v2915_v28, -inf }
 0x23c   : > { %v719_v31 = vpop.f32.mrf.mxu1  ;;  %1067 = vmax.xlane.f32.xlu0 %v1066_v30 }
 0x23d   : > { %v2922_v33 = vadd.f32 %v719_v31, %v2866_v0 }
 0x23e   : > { %v2179_v34 = vpop.f32.mrf.mxu1 }
 0x23f   : > { %v1069_v35 = vsel %vm1059_vm3, %v2922_v33, -inf }
 0x240   : > { %1070 = vmax.xlane.f32.xlu1 %v1069_v35 }
 0x241   : > { %v772_v36 = vpop.f32.mrf.mxu0 }
 0x242   : > { %v2927_v37 = vadd.f32 %v772_v36, %v2857_v59 }
 0x243   : > { %v2190_v40 = vpop.f32.mrf.mxu0 }
 0x244   : > { %v1072_v44 = vsel %vm1059_vm3, %v2927_v37, -inf }
 0x245   : > { %v775_v45 = vpop.f32.mrf.mxu0  ;;  %1073 = vmax.xlane.f32.xlu0 %v1072_v44 }
 0x246   : > { %v2934_v46 = vadd.f32 %v775_v45, %v2866_v0 }
 0x247   : > { %v2191_v49 = vpop.f32.mrf.mxu0 }
 0x248   : > { %v1075_v50 = vsel %vm1059_vm3, %v2934_v46, -inf }
 0x249   : > { %1076 = vmax.xlane.f32.xlu1 %v1075_v50 }
 0x253   : > { %v1062_v57 = vpop.xlane.xlu1 %1061 }
 0x254   : > { %v1108_v58 = vsub.f32 %v2863_v63, %v1062_v57 }
 0x256   : > { %v1124_v60 = vmul.f32 1.442695, %v1108_v58 }
 0x257   : > { %v1065_v61 = vpop.xlane.xlu0 %1064 }
 0x258   : > { %v1109_v62 = vsub.f32 %v2873_v6, %v1065_v61  ;;  %v828_v1 = vpop.f32.mrf.mxu1  ;;  %2432 = vpow2.f32 %v1124_v60 }
 0x259   : > { %v2949_v2 = vadd.f32 %v828_v1, %v2857_v59 }
 0x25a   : > { %v1126_v3 = vmul.f32 1.442695, %v1109_v62  ;;  %v2202_v5 = vpop.f32.mrf.mxu1 }
 0x25b   : > { %v1078_v7 = vsel %vm1059_vm3, %v2949_v2, -inf }
 0x25c   : > { %2434 = vpow2.f32 %v1126_v3  ;;  %v831_v8 = vpop.f32.mrf.mxu1  ;;  %1079 = vmax.xlane.f32.xlu0 %v1078_v7 }
 0x25d   : > { %v2957_v6 = vadd.f32 %v831_v8, %v2866_v0 }
 0x25e   : > { %v2203_v9 = vpop.f32.mrf.mxu1 }
 0x25f   : > { %v1081_v34 = vsel %vm1059_vm3, %v2957_v6, -inf }
 0x261   : > { %v884_v12 = vpop.f32.mrf.mxu0 }
 0x262   : > { %v2954_v63 = vadd.f32 %v884_v12, %v2857_v59 }
 0x263   : > { %v2214_v17 = vpop.f32.mrf.mxu0 }
 0x264   : > { %v1084_v19 = vsel %vm1059_vm3, %v2954_v63, -inf }
 0x265   : > { %v887_v25 = vpop.f32.mrf.mxu0  ;;  %1085 = vmax.xlane.f32.xlu1 %v1084_v19  ;;  %v2433_v29 = vpop.eup %2432 }
 0x266   : > { %v2962_v27 = vadd.f32 %v887_v25, %v2866_v0  ;;  %v2969_v36 = vmul.f32 %v2433_v29, %v2847_v53 }
 0x267   : > { %v2215_v30 = vpop.f32.mrf.mxu0 }
 0x268   : > { %v1087_v31 = vsel %vm1059_vm3, %v2962_v27, -inf }
 0x269   : > { %v2435_v35 = vpop.eup %2434  ;;  %1088 = vmax.xlane.f32.xlu0 %v1087_v31  ;;  %1082 = vmax.xlane.f32.xlu1 %v1081_v34 }
 0x26a   : > { %v2972_v40 = vmul.f32 %v2435_v35, %v2850_v56 }
 0x26c   : > { %v1236_v44 = vpack.c.bf16 %v2972_v40, %v2969_v36 }
 0x26e   : > { %2261 = vmatmul.mubr.msk.bf16.vlgmr.msra.gmra.mxu0 %vm1059_vm3, %v1236_v44 }
 0x26f   : > { %2277 = vmatpush3.bf16.msra.mxu0 %v2903_v22  ;;  %2284 = vmatprep.mubr.msk.bf16.mxu0 %vm2505_vm1, %v2504_v4 }
 0x270   : > { %2278 = vmatprep.subr.bf16.mxu0 %v2504_v4 }
 0x273   : > { %2279 = vmatpush3.bf16.msra.mxu0 %v1361_v51 }
 0x274   : > { %2280 = vmatprep.subr.bf16.mxu0 %v2504_v4 }
 0x277   : > { %2281 = vmatpush3.bf16.msra.mxu0 %v2886_v10 }
 0x278   : > { %v940_v45 = vpop.f32.mrf.mxu1  ;;  %2282 = vmatprep.subr.bf16.mxu0 %v2504_v4 }
 0x279   : > { %v2985_v49 = vadd.f32 %v940_v45, %v2857_v59 }
 0x27a   : > { %1582 = vrot.lane.b32.xlu1 %v2809_v38, %s2513_s12  ;;  %v2226_v22 = vpop.f32.mrf.mxu1 }
 0x27b   : > { %2283 = vmatpush3.bf16.msra.mxu0 %v2890_v13  ;;  %v1090_v50 = vsel %vm1059_vm3, %v2985_v49, -inf }
 0x27c   : > { %v943_v51 = vpop.f32.mrf.mxu1  ;;  %1091 = vmax.xlane.f32.xlu0 %v1090_v50  ;;  %2300 = vmatprep.subr.bf16.mxu0 %v2504_v4 }
 0x27d   : > { %v2996_v38 = vadd.f32 %v943_v51, %v2866_v0 }
 0x27e   : > { %v2227_v10 = vpop.f32.mrf.mxu1 }
 0x27f   : > { %v1093_v5 = vsel %vm1059_vm3, %v2996_v38, -inf }
 0x281   : > { %v996_v57 = vpop.f32.mrf.mxu0 }
 0x282   : > { %v3016_v19 = vadd.f32 %v996_v57, %v2857_v59 }
 0x283   : > { %v2238_v58 = vpop.f32.mrf.mxu0 }
 0x284   : > { %v1096_v25 = vsel %vm1059_vm3, %v3016_v19, -inf }
 0x285   : > { %v999_v60 = vpop.f32.mrf.mxu0 }
 0x286   : > { %v2999_v3 = vadd.f32 %v999_v60, %v2866_v0 }
 0x287   : > { %v2239_v61 = vpop.f32.mrf.mxu0 }
 0x292   : > { %1640 = vrot.lane.b32.xlu0 %v2819_v41, %s2513_s12  ;;  %v1099_v41 = vsel %vm1059_vm3, %v2999_v3, -inf }
 0x298   : > { %v1052_v62 = vpop.f32.mrf.mxu1 }
 0x299   : > { %v3004_v8 = vadd.f32 %v1052_v62, %v2857_v59 }
 0x29a   : > { %v2250_v13 = vpop.f32.mrf.mxu1 }
 0x29b   : > { %v1102_v12 = vsel %vm1059_vm3, %v3004_v8, -inf }
 0x29c   : > { %v1055_v1 = vpop.f32.mrf.mxu1 }
 0x29d   : > { %v3009_v9 = vadd.f32 %v1055_v1, %v2866_v0 }
 0x29e   : > { %1094 = vmax.xlane.f32.xlu1 %v1093_v5  ;;  %v2251_v7 = vpop.f32.mrf.mxu1 }
 0x29f   : > { %v1105_v17 = vsel %vm1059_vm3, %v3009_v9, -inf }
 0x2a2   : > { %1100 = vmax.xlane.f32.xlu1 %v1099_v41 }
 0x2a6   : > { %1103 = vmax.xlane.f32.xlu1 %v1102_v12 }
 0x2aa   : > { %1106 = vmax.xlane.f32.xlu1 %v1105_v17 }
 0x2b1   : > { %1097 = vmax.xlane.f32.xlu0 %v1096_v25 }
 0x2bb   : > { %1580 = vrot.lane.b32.xlu1 %v2824_v42, %s2513_s12 }
 0x2c5   : > { %v1068_v0 = vpop.xlane.xlu0 %1067 }
 0x2c6   : > { %v1110_v29 = vsub.f32 %v2915_v28, %v1068_v0 }
 0x2c7   : > { %1638 = vrot.lane.b32.xlu0 %v2827_v43, %s2513_s12 }
 0x2c8   : > { %v1128_v30 = vmul.f32 1.442695, %v1110_v29 }
 0x2c9   : > { %v1071_v31 = vpop.xlane.xlu1 %1070 }
 0x2ca   : > { %2436 = vpow2.f32 %v1128_v30  ;;  %v1111_v34 = vsub.f32 %v2922_v33, %v1071_v31 }
 0x2cb   : > { %1636 = vrot.lane.b32.xlu0 %v2834_v47, %s2513_s12  ;;  %s2519_s12 = smov 28  }
 0x2cc   : > { %v1130_v59 = vmul.f32 1.442695, %v1111_v34 }
 0x2ce   : > { %2438 = vpow2.f32 %v1130_v59  ;;  %v1074_v35 = vpop.xlane.xlu0 %1073 }
 0x2cf   : > { %v1112_v44 = vsub.f32 %v2927_v37, %v1074_v35 }
 0x2d1   : > { %v1132_v42 = vmul.f32 1.442695, %v1112_v44 }
 0x2d2   : > { %v1077_v45 = vpop.xlane.xlu1 %1076 }
 0x2d3   : > { %v1113_v28 = vsub.f32 %v2934_v46, %v1077_v45  ;;  %2440 = vpow2.f32 %v1132_v42 }
 0x2d5   : > { %v1134_v22 = vmul.f32 1.442695, %v1113_v28 }
 0x2d7   : > { %v2437_v43 = vpop.eup %2436  ;;  %2442 = vpow2.f32 %v1134_v22 }
 0x2d8   : > { %v1158_v50 = vmul.f32 %v2437_v43, %v2847_v53 }
 0x2da   : > { %v1178_v47 = vsel %vm1059_vm3, %v1158_v50, 0.0 }
 0x2db   : > { %v2439_v51 = vpop.eup %2438 }
 0x2dc   : > { %v1159_v33 = vmul.f32 %v2439_v51, %v2850_v56 }
 0x2de   : > { %v1237_v10 = vpack.c.bf16 %v1159_v33, %v1158_v50 }
 0x2df   : > { %1179 = vadd.xlane.f32.xlu1 %v1178_v47 }
 0x2e0   : > { %2273 = vmatmul.mubr.msk.bf16.vlgmr.msra.gmra.mxu1 %vm1059_vm3, %v1237_v10  ;;  %v2441_v37 = vpop.eup %2440 }
 0x2e1   : > { %2289 = vmatpush3.bf16.msra.mxu1 %v2912_v26  ;;  %2296 = vmatprep.mubr.msk.bf16.mxu1 %vm2505_vm1, %v2504_v4  ;;  %v1160_v58 = vmul.f32 %v2441_v37, %v2847_v53 }
 0x2e2   : > { %2290 = vmatprep.subr.bf16.mxu1 %v2504_v4 }
 0x2e4   : > { %v2443_v46 = vpop.eup %2442 }
 0x2e5   : > { %2291 = vmatpush3.bf16.msra.mxu1 %v2936_v48  ;;  %v1080_v57 = vpop.xlane.xlu0 %1079  ;;  %v1161_v60 = vmul.f32 %v2443_v46, %v2850_v56  ;;  %v1184_v48 = vsel %vm1059_vm3, %v1160_v58, 0.0 }
 0x2e6   : > { %v1114_v61 = vsub.f32 %v2949_v2, %v1080_v57  ;;  %2292 = vmatprep.subr.bf16.mxu1 %v2504_v4  ;;  %v1181_v2 = vsel %vm1059_vm3, %v1159_v33, 0.0 }
 0x2e7   : > { %v1187_v26 = vsel %vm1059_vm3, %v1161_v60, 0.0  ;;  %v1238_v62 = vpack.c.bf16 %v1161_v60, %v1160_v58 }
 0x2e8   : > { %v1136_v13 = vmul.f32 1.442695, %v1114_v61  ;;  %1188 = vadd.xlane.f32.xlu1 %v1187_v26 }
 0x2e9   : > { %2285 = vmatmul.mubr.msk.bf16.vlgmr.msra.gmra.mxu0 %vm1059_vm3, %v1238_v62  ;;  %2293 = vmatpush3.bf16.msra.mxu1 %v2892_v14 }
 0x2ea   : > { %2444 = vpow2.f32 %v1136_v13  ;;  %2301 = vmatpush3.bf16.msra.mxu0 %v2919_v32  ;;  %1185 = vadd.xlane.f32.xlu0 %v1184_v48 }
 0x2eb   : > { %2294 = vmatprep.subr.bf16.mxu1 %v2504_v4  ;;  %2302 = vmatprep.subr.bf16.mxu0 %v2504_v4 }
 0x2ec   : > { %2308 = vmatprep.mubr.msk.bf16.mxu0 %vm2505_vm1, %v2504_v4 }
 0x2ed   : > { %2295 = vmatpush3.bf16.msra.mxu1 %v2899_v20 }
 0x2ee   : > { %2303 = vmatpush3.bf16.msra.mxu0 %v2940_v52  ;;  %v1086_v14 = vpop.xlane.xlu1 %1085  ;;  %1182 = vadd.xlane.f32.xlu0 %v1181_v2 }
 0x2ef   : > { %v1116_v1 = vsub.f32 %v2954_v63, %v1086_v14  ;;  %2304 = vmatprep.subr.bf16.mxu0 %v2504_v4  ;;  %2312 = vmatprep.subr.bf16.mxu1 %v2504_v4 }
 0x2f1   : > { %v1140_v32 = vmul.f32 1.442695, %v1116_v1 }
 0x2f2   : > { %2305 = vmatpush3.bf16.msra.mxu0 %v2888_v11  ;;  %v1089_v5 = vpop.xlane.xlu0 %1088  ;;  %v1083_v7 = vpop.xlane.xlu1 %1082 }
 0x2f3   : > { %2446 = vpow2.f32 %v1140_v32  ;;  %v1117_v20 = vsub.f32 %v2962_v27, %v1089_v5  ;;  %v1115_v41 = vsub.f32 %v2957_v6, %v1083_v7  ;;  %2306 = vmatprep.subr.bf16.mxu0 %v2504_v4 }
 0x2f5   : > { %v1142_v52 = vmul.f32 1.442695, %v1117_v20  ;;  %v1138_v12 = vmul.f32 1.442695, %v1115_v41 }
 0x2f6   : > { %2307 = vmatpush3.bf16.msra.mxu0 %v2894_v15 }
 0x2f7   : > { %v2445_v63 = vpop.eup %2444  ;;  %2448 = vpow2.f32 %v1142_v52  ;;  %2324 = vmatprep.subr.bf16.mxu0 %v2504_v4 }
 0x2f8   : > { %2450 = vpow2.f32 %v1138_v12  ;;  %v1162_v11 = vmul.f32 %v2445_v63, %v2847_v53  ;;  %v1175_v63 = vsel %vm1059_vm3, %v2972_v40, 0.0 }
 0x2fa   : > { %v1190_v17 = vsel %vm1059_vm3, %v1162_v11, 0.0 }
 0x2fb   : > { %1191 = vadd.xlane.f32.xlu0 %v1190_v17 }
 0x300   : > { %v2447_v25 = vpop.eup %2446 }
 0x301   : > { %v1164_v27 = vmul.f32 %v2447_v25, %v2847_v53 }
 0x303   : > { %v1196_v6 = vsel %vm1059_vm3, %v1164_v27, 0.0 }
 0x304   : > { %v2449_v0 = vpop.eup %2448  ;;  %1197 = vadd.xlane.f32.xlu0 %v1196_v6 }
 0x305   : > { %v2451_v29 = vpop.eup %2450  ;;  %v1165_v15 = vmul.f32 %v2449_v0, %v2850_v56  ;;  %v1092_v30 = vpop.xlane.xlu0 %1091 }
 0x306   : > { %v1118_v31 = vsub.f32 %v2985_v49, %v1092_v30  ;;  %v1163_v34 = vmul.f32 %v2451_v29, %v2850_v56 }
 0x307   : > { %v1240_v59 = vpack.c.bf16 %v1165_v15, %v1164_v27  ;;  %v1199_v49 = vsel %vm1059_vm3, %v1165_v15, 0.0 }
 0x308   : > { %v1144_v35 = vmul.f32 1.442695, %v1118_v31  ;;  %v1193_v44 = vsel %vm1059_vm3, %v1163_v34, 0.0  ;;  %v1239_v42 = vpack.c.bf16 %v1163_v34, %v1162_v11 }
 0x309   : > { %1194 = vadd.xlane.f32.xlu1 %v1193_v44  ;;  %2309 = vmatmul.mubr.msk.bf16.vlgmr.msra.gmra.mxu0 %vm1059_vm3, %v1240_v59 }
 0x30a   : > { %2452 = vpow2.f32 %v1144_v35  ;;  %2297 = vmatmul.mubr.msk.bf16.vlgmr.msra.gmra.mxu1 %vm1059_vm3, %v1239_v42  ;;  %2325 = vmatpush3.bf16.msra.mxu0 %v2929_v39 }
 0x30b   : > { %2313 = vmatpush3.bf16.msra.mxu1 %v2905_v23  ;;  %2326 = vmatprep.subr.bf16.mxu0 %v2504_v4  ;;  %v1583_v23 = vpop.permute.xlu1 %1582 }
 0x30c   : > { %2314 = vmatprep.subr.bf16.mxu1 %v2504_v4  ;;  %2320 = vmatprep.mubr.msk.bf16.mxu1 %vm2505_vm1, %v2504_v4 }
 0x30d   : > { %1200 = vadd.xlane.f32.xlu1 %v1199_v49  ;;  %2332 = vmatprep.mubr.msk.bf16.mxu0 %vm2505_vm1, %v2504_v4 }
 0x30e   : > { %2327 = vmatpush3.bf16.msra.mxu0 %v2942_v54 }
 0x30f   : > { %2315 = vmatpush3.bf16.msra.mxu1 %v2944_v55  ;;  %2328 = vmatprep.subr.bf16.mxu0 %v2504_v4 }
 0x310   : > { %2316 = vmatprep.subr.bf16.mxu1 %v2504_v4 }
 0x312   : > { %2329 = vmatpush3.bf16.msra.mxu0 %v1583_v23 }
 0x313   : > { %2317 = vmatpush3.bf16.msra.mxu1 %v2896_v18  ;;  %2330 = vmatprep.subr.bf16.mxu0 %v2504_v4 }
 0x314   : > { %2318 = vmatprep.subr.bf16.mxu1 %v2504_v4 }
 0x317   : > { %v2453_v39 = vpop.eup %2452  ;;  %2319 = vmatpush3.bf16.msra.mxu1 %v2901_v21 }
 0x318   : > { %v1166_v45 = vmul.f32 %v2453_v39, %v2847_v53  ;;  %2336 = vmatprep.subr.bf16.mxu1 %v2504_v4 }
 0x31a   : > { %v1202_v54 = vsel %vm1059_vm3, %v1166_v45, 0.0 }
 0x31b   : > { %1203 = vadd.xlane.f32.xlu0 %v1202_v54 }
 0x327   : > { %v1095_v55 = vpop.xlane.xlu1 %1094 }
 0x328   : > { %v1119_v28 = vsub.f32 %v2996_v38, %v1095_v55  ;;  %v1641_v38 = vpop.permute.xlu0 %1640 }
 0x32a   : > { %v1146_v22 = vmul.f32 1.442695, %v1119_v28 }
 0x32b   : > { %v1101_v43 = vpop.xlane.xlu1 %1100 }
 0x32c   : > { %2454 = vpow2.f32 %v1146_v22  ;;  %v1121_v18 = vsub.f32 %v2999_v3, %v1101_v43 }
 0x32e   : > { %v1150_v50 = vmul.f32 1.442695, %v1121_v18  ;;  %v3096_v51 = vpop.f32.mrf.mxu0 }
 0x32f   : > { %v1104_v33 = vpop.xlane.xlu1 %1103 }
 0x330   : > { %2456 = vpow2.f32 %v1150_v50  ;;  %v2262_v21 = vpop.f32.mrf.mxu0  ;;  %v1122_v47 = vsub.f32 %v3004_v8, %v1104_v33 }
 0x332   : > { %v3099_v10 = vpop.f32.mrf.mxu0  ;;  %v1152_v58 = vmul.f32 1.442695, %v1122_v47 }
 0x333   : > { %v1107_v37 = vpop.xlane.xlu1 %1106 }
 0x334   : > { %v1123_v46 = vsub.f32 %v3009_v9, %v1107_v37  ;;  %v2263_v57 = vpop.f32.mrf.mxu0 }
 0x336   : > { %v1154_v60 = vmul.f32 1.442695, %v1123_v46 }
 0x337   : > { %v1581_v61 = vpop.permute.xlu1 %1580 }
 0x338   : > { %2458 = vpow2.f32 %v1154_v60  ;;  %2331 = vmatpush3.bf16.msra.mxu0 %v1581_v61 }
 0x339   : > { %v2455_v3 = vpop.eup %2454  ;;  %2348 = vmatprep.subr.bf16.mxu0 %v2504_v4  ;;  %2460 = vpow2.f32 %v1152_v58 }
 0x33a   : > { %v1098_v26 = vpop.xlane.xlu0 %1097  ;;  %v1167_v62 = vmul.f32 %v2455_v3, %v2850_v56 }
 0x33b   : > { %v1120_v8 = vsub.f32 %v3016_v19, %v1098_v26 }
 0x33c   : > { %v1205_v13 = vsel %vm1059_vm3, %v1167_v62, 0.0  ;;  %v1241_v48 = vpack.c.bf16 %v1167_v62, %v1166_v45 }
 0x33d   : > { %v2457_v9 = vpop.eup %2456  ;;  %v1148_v2 = vmul.f32 1.442695, %v1120_v8  ;;  %1206 = vadd.xlane.f32.xlu1 %v1205_v13 }
 0x33e   : > { %2321 = vmatmul.mubr.msk.bf16.vlgmr.msra.gmra.mxu1 %vm1059_vm3, %v1241_v48  ;;  %v1169_v14 = vmul.f32 %v2457_v9, %v2850_v56  ;;  %v1639_v1 = vpop.permute.xlu0 %1638 }
 0x33f   : > { %2462 = vpow2.f32 %v1148_v2  ;;  %2337 = vmatpush3.bf16.msra.mxu1 %v2907_v24  ;;  %2344 = vmatprep.mubr.msk.bf16.mxu1 %vm2505_vm1, %v2504_v4 }
 0x340   : > { %2338 = vmatprep.subr.bf16.mxu1 %v2504_v4  ;;  %v1211_v19 = vsel %vm1059_vm3, %v1169_v14, 0.0 }
 0x341   : > { %1212 = vadd.xlane.f32.xlu1 %v1211_v19 }
 0x342   : > { %v1637_v20 = vpop.permute.xlu0 %1636 }
 0x343   : > { %2339 = vmatpush3.bf16.msra.mxu1 %v1641_v38 }
 0x344   : > { %2340 = vmatprep.subr.bf16.mxu1 %v2504_v4 }
 0x345   : > { %v2459_v32 = vpop.eup %2458 }
 0x346   : > { %v1171_v5 = vmul.f32 %v2459_v32, %v2850_v56  ;;  %v2461_v7 = vpop.eup %2460 }
 0x347   : > { %2341 = vmatpush3.bf16.msra.mxu1 %v1639_v1  ;;  %v1170_v41 = vmul.f32 %v2461_v7, %v2847_v53 }
 0x348   : > { %2342 = vmatprep.subr.bf16.mxu1 %v2504_v4  ;;  %v1217_v24 = vsel %vm1059_vm3, %v1171_v5, 0.0 }
 0x349   : > { %1218 = vadd.xlane.f32.xlu1 %v1217_v24  ;;  %v1243_v12 = vpack.c.bf16 %v1171_v5, %v1170_v41  ;;  %v1214_v40 = vsel %vm1059_vm3, %v1170_v41, 0.0 }
 0x34b   : > { %2343 = vmatpush3.bf16.msra.mxu1 %v1637_v20 }
 0x34c   : > { %v2463_v52 = vpop.eup %2462  ;;  %2356 = vmatprep.subr.bf16.mxu1 %v2504_v4 }
 0x34d   : > { %1176 = vadd.xlane.f32.xlu1 %v1175_v63  ;;  %v1168_v56 = vmul.f32 %v2463_v52, %v2847_v53  ;;  %v1172_v53 = vsel %vm1059_vm3, %v2969_v36, 0.0 }
 0x34e   : > { %2345 = vmatmul.mubr.msk.bf16.vlgmr.msra.gmra.mxu1 %vm1059_vm3, %v1243_v12 }
 0x34f   : > { %v1208_v11 = vsel %vm1059_vm3, %v1168_v56, 0.0  ;;  %v1242_v17 = vpack.c.bf16 %v1169_v14, %v1168_v56  ;;  %2360 = vmatprep.mubr.msk.bf16.mxu1 %vm2505_vm1, %v2504_v4 }
 0x350   : > { %1209 = vadd.xlane.f32.xlu0 %v1208_v11 }
 0x351   : > { %2333 = vmatmul.mubr.msk.bf16.vlgmr.msra.gmra.mxu0 %vm1059_vm3, %v1242_v17 }
 0x352   : > { %2352 = vmatprep.mubr.msk.bf16.mxu0 %vm2505_vm1, %v2504_v4 }
 0x354   : > { %1215 = vadd.xlane.f32.xlu0 %v1214_v40  ;;  %v2428_v40 = vld [vmem:[%s3173_s7 + $0x8] sm:$0xff]  }
 0x355   : > { %2349 = vmatpush3.bf16.msra.mxu0 %v2428_v40 }
 0x356   : > { %2350 = vmatprep.subr.bf16.mxu0 %v2504_v4 }
 0x358   : > { %1173 = vadd.xlane.f32.xlu0 %v1172_v53 }
 0x368   : > { %v1180_v27 = vpop.xlane.xlu1 %1179 }
 0x369   : > { %v1222_v0 = vadd.f32 1e-16, %v1180_v27 }
 0x36b   : > { %2464 = vrcp.f32 %v1222_v0 }
 0x371   : > { %v1189_v15 = vpop.xlane.xlu1 %1188 }
 0x372   : > { %v1225_v30 = vadd.f32 1e-16, %v1189_v15 }
 0x373   : > { %v1186_v25 = vpop.xlane.xlu0 %1185 }
 0x374   : > { %v1224_v31 = vadd.f32 1e-16, %v1186_v25 }
 0x377   : > { %v1183_v6 = vpop.xlane.xlu0 %1182 }
 0x378   : > { %v1223_v29 = vadd.f32 1e-16, %v1183_v6  ;;  %v2465_v35 = vpop.eup %2464 }
 0x37a   : > { %2466 = vrcp.f32 %v1223_v29 }
 0x37b   : > { %2468 = vrcp.f32 %v1225_v30 }
 0x37c   : > { %2470 = vrcp.f32 %v1224_v31 }
 0x384   : > { %v1192_v47 = vpop.xlane.xlu0 %1191 }
 0x385   : > { %v1226_v57 = vadd.f32 1e-16, %v1192_v47 }
 0x387   : > { %v2467_v44 = vpop.eup %2466  ;;  %2472 = vrcp.f32 %v1226_v57 }
 0x388   : > { %v2469_v55 = vpop.eup %2468 }
 0x389   : > { %v2471_v28 = vpop.eup %2470 }
 0x38d   : > { %v1198_v37 = vpop.xlane.xlu0 %1197 }
 0x38e   : > { %v1228_v38 = vadd.f32 1e-16, %v1198_v37 }
 0x390   : > { %2474 = vrcp.f32 %v1228_v38 }
 0x392   : > { %v1195_v21 = vpop.xlane.xlu1 %1194 }
 0x393   : > { %v1227_v60 = vadd.f32 1e-16, %v1195_v21 }
 0x394   : > { %v2473_v26 = vpop.eup %2472 }
 0x396   : > { %v1201_v46 = vpop.xlane.xlu1 %1200 }
 0x397   : > { %v1229_v58 = vadd.f32 1e-16, %v1201_v46 }
 0x399   : > { %2476 = vrcp.f32 %v1229_v58 }
 0x39a   : > { %2478 = vrcp.f32 %v1227_v60 }
 0x39d   : > { %v2475_v8 = vpop.eup %2474 }
 0x3a0   : > { %v1349_v34 = vpop.f32.mrf.mxu1 }
 0x3a1   : > { %v1710_v49 = vmul.f32 %v2465_v35, %v1349_v34 }
 0x3a2   : > { %v2274_v59 = vpop.f32.mrf.mxu1 }
 0x3a4   : > { %v1352_v42 = vpop.f32.mrf.mxu1  ;;  %v1204_v52 = vpop.xlane.xlu0 %1203 }
 0x3a5   : > { %v1711_v36 = vmul.f32 %v2467_v44, %v1352_v42  ;;  %v1230_v63 = vadd.f32 1e-16, %v1204_v52 }
 0x3a6   : > { %v2275_v23 = vpop.f32.mrf.mxu1  ;;  %v2477_v48 = vpop.eup %2476 }
 0x3a7   : > { %v2389_v39 = vpack.i.bf16 %v1711_v36, %v1710_v49  ;;  %v2479_v2 = vpop.eup %2478  ;;  %2480 = vrcp.f32 %v1230_v63  ;;  %v2429_v36 = vld [vmem:[%s3173_s7] sm:$0xff]   ;;  %v2430_v23 = vld [vmem:[%s3172_s6 + $0x8] sm:$0xff]  }
 0x3a8   : > { %2351 = vmatpush3.bf16.msra.mxu0 %v2429_v36  ;;  %2357 = vmatpush3.bf16.msra.mxu1 %v2430_v23 }
 0x3a9   : > { %v1405_v45 = vpop.f32.mrf.mxu0  ;;  %2390 = vrot.lane.b32.xlu0 %v2389_v39, %s2514_s18  ;;  %2358 = vmatprep.subr.bf16.mxu1 %v2504_v4 }
 0x3aa   : > { %v1712_v43 = vmul.f32 %v2471_v28, %v1405_v45  ;;  %v2431_v28 = vld [vmem:[%s3172_s6] sm:$0xff]  }
 0x3ab   : > { %v2286_v54 = vpop.f32.mrf.mxu0  ;;  %2353 = vmatmul.mubr.msk.bf16.vlgmr.msra.gmra.mxu0 %vm377_vm0, %v2621_v16 }
 0x3ac   : > { %2359 = vmatpush3.bf16.msra.mxu1 %v2431_v28  ;;  %v2034_v28 = vld [vmem:[%s3174_s8] ss:$0 sm:$0xff] }
 0x3ad   : > { %v1408_v22 = vpop.f32.mrf.mxu0 }
 0x3ae   : > { %v1713_v18 = vmul.f32 %v2469_v55, %v1408_v22 }
 0x3af   : > { %v2287_v50 = vpop.f32.mrf.mxu0 }
 0x3b0   : > { %v2394_v33 = vpack.i.bf16 %v1713_v18, %v1712_v43 }
 0x3b2   : > { %2395 = vrot.lane.b32.xlu1 %v2394_v33, %s2515_s19  ;;  %s334_s19 = scalar_lea.vmem %s3175_s9, %s1997_s16 }
 0x3b4   : > { %v2481_v29 = vpop.eup %2480 }
 0x3c6   : > { %v1207_v12 = vpop.xlane.xlu1 %1206 }
 0x3c7   : > { %v1231_v56 = vadd.f32 1e-16, %v1207_v12 }
 0x3c9   : > { %v1517_v61 = vpop.f32.mrf.mxu0  ;;  %2482 = vrcp.f32 %v1231_v56 }
 0x3ca   : > { %v1461_v3 = vpop.f32.mrf.mxu1  ;;  %v1716_v14 = vmul.f32 %v2475_v8, %v1517_v61  ;;  %v1213_v17 = vpop.xlane.xlu1 %1212 }
 0x3cb   : > { %v2310_v62 = vpop.f32.mrf.mxu0  ;;  %v1714_v32 = vmul.f32 %v2473_v26, %v1461_v3  ;;  %v1233_v34 = vadd.f32 1e-16, %v1213_v17 }
 0x3cc   : > { %v2298_v13 = vpop.f32.mrf.mxu1 }
 0x3cd   : > { %v1520_v9 = vpop.f32.mrf.mxu0 }
 0x3ce   : > { %v1464_v19 = vpop.f32.mrf.mxu1  ;;  %v1717_v1 = vmul.f32 %v2477_v48, %v1520_v9 }
 0x3cf   : > { %v1715_v5 = vmul.f32 %v2479_v2, %v1464_v19  ;;  %v2311_v7 = vpop.f32.mrf.mxu0 }
 0x3d0   : > { %v2404_v24 = vpack.i.bf16 %v1717_v1, %v1716_v14  ;;  %v2299_v20 = vpop.f32.mrf.mxu1 }
 0x3d1   : > { %v2399_v41 = vpack.i.bf16 %v1715_v5, %v1714_v32 }
 0x3d2   : > { %2405 = vrot.lane.b32.xlu0 %v2404_v24, %s2516_s20  ;;  %v1219_v53 = vpop.xlane.xlu1 %1218 }
 0x3d3   : > { %2400 = vrot.lane.b32.xlu1 %v2399_v41, %s2517_s21  ;;  %v1235_v6 = vadd.f32 1e-16, %v1219_v53 }
 0x3d5   : > { %2484 = vrcp.f32 %v1235_v6 }
 0x3d6   : > { %v2483_v30 = vpop.eup %2482  ;;  %v1177_v60 = vpop.xlane.xlu1 %1176 }
 0x3d7   : > { %v1221_v3 = vadd.f32 1e-16, %v1177_v60 }
 0x3d9   : > { %v1210_v11 = vpop.xlane.xlu0 %1209 }
 0x3da   : > { %v1232_v44 = vadd.f32 1e-16, %v1210_v11 }
 0x3dd   : > { %v1216_v25 = vpop.xlane.xlu0 %1215 }
 0x3de   : > { %v1234_v15 = vadd.f32 1e-16, %v1216_v25 }
 0x3e0   : > { %2486 = vrcp.f32 %v1234_v15 }
 0x3e1   : > { %2488 = vrcp.f32 %v1233_v34  ;;  %v1174_v61 = vpop.xlane.xlu0 %1173 }
 0x3e2   : > { %2490 = vrcp.f32 %v1232_v44  ;;  %v2485_v54 = vpop.eup %2484  ;;  %v1220_v26 = vadd.f32 1e-16, %v1174_v61 }
 0x3e3   : > { %2492 = vrcp.f32 %v1221_v3 }
 0x3e4   : > { %2494 = vrcp.f32 %v1220_v26 }
 0x3ed   : > { %v2487_v22 = vpop.eup %2486 }
 0x3ee   : > { %v2489_v21 = vpop.eup %2488 }
 0x3ef   : > { %v2491_v4 = vpop.eup %2490 }
 0x3f0   : > { %v2493_v13 = vpop.eup %2492 }
 0x3f1   : > { %v2495_v48 = vpop.eup %2494  ;;  %v1709_v5 = vmul.f32 %v2493_v13, %v3099_v10 }
 0x3f2   : > { %v1708_v32 = vmul.f32 %v2495_v48, %v3096_v51 }
 0x3fe   : > { %v1573_v27 = vpop.f32.mrf.mxu1 }
 0x3ff   : > { %v1718_v59 = vmul.f32 %v2481_v29, %v1573_v27 }
 0x400   : > { %v2322_v0 = vpop.f32.mrf.mxu1 }
 0x402   : > { %v1576_v31 = vpop.f32.mrf.mxu1 }
 0x403   : > { %v1719_v35 = vmul.f32 %v2483_v30, %v1576_v31 }
 0x404   : > { %v2323_v42 = vpop.f32.mrf.mxu1 }
 0x405   : > { %v2409_v49 = vpack.i.bf16 %v1719_v35, %v1718_v59 }
 0x407   : > { %2410 = vrot.lane.b32.xlu1 %v2409_v49, %s2518_s24 }
 0x40e   : > { %v1685_v39 = vpop.f32.mrf.mxu1 }
 0x40f   : > { %v1722_v18 = vmul.f32 %v2487_v22, %v1685_v39 }
 0x410   : > { %v2346_v45 = vpop.f32.mrf.mxu1 }
 0x411   : > { %v1629_v55 = vpop.f32.mrf.mxu0 }
 0x412   : > { %v1688_v43 = vpop.f32.mrf.mxu1  ;;  %v1720_v57 = vmul.f32 %v2491_v4, %v1629_v55 }
 0x413   : > { %v1723_v50 = vmul.f32 %v2485_v54, %v1688_v43  ;;  %v2334_v33 = vpop.f32.mrf.mxu0 }
 0x414   : > { %v2347_v47 = vpop.f32.mrf.mxu1 }
 0x415   : > { %v2419_v37 = vpack.i.bf16 %v1723_v50, %v1722_v18  ;;  %v1632_v46 = vpop.f32.mrf.mxu0 }
 0x416   : > { %v1721_v16 = vmul.f32 %v2489_v21, %v1632_v46 }
 0x417   : > { %2420 = vrot.lane.b32.xlu1 %v2419_v37, %s2519_s12  ;;  %v2335_v38 = vpop.f32.mrf.mxu0 }
 0x418   : > { %v2414_v58 = vpack.i.bf16 %v1721_v16, %v1720_v57 }
 0x41a   : > { %2415 = vrot.lane.b32.xlu0 %v2414_v58, %s2520_s10 }
 0x41b   : > { %v2391_v8 = vpop.permute.xlu0 %2390 }
 0x41c   : > { %v2393_v2 = vunpack.i.h.bf16 %v2391_v8  ;;  %v2392_v14 = vunpack.i.l.bf16 %v2391_v8 }
 0x41e   : > { %v1780_v52 = vsel %vm610_vm2, %v1708_v32, %v2392_v14  ;;  %v1781_v12 = vsel %vm610_vm2, %v1709_v5, %v2393_v2 }
 0x424   : > { %v2396_v62 = vpop.permute.xlu1 %2395 }
 0x425   : > { %v2398_v19 = vunpack.i.h.bf16 %v2396_v62  ;;  %v2397_v1 = vunpack.i.l.bf16 %v2396_v62 }
 0x427   : > { %v1784_v63 = vsel %vm1782_vm4, %v1781_v12, %v2398_v19  ;;  %v1783_v56 = vsel %vm1782_vm4, %v1780_v52, %v2397_v1 }
 0x444   : > { %v2406_v7 = vpop.permute.xlu0 %2405 }
 0x445   : > { %v2401_v9 = vpop.permute.xlu1 %2400  ;;  %v2408_v11 = vunpack.i.h.bf16 %v2406_v7  ;;  %v2407_v17 = vunpack.i.l.bf16 %v2406_v7 }
 0x446   : > { %v2403_v24 = vunpack.i.h.bf16 %v2401_v9  ;;  %v2402_v20 = vunpack.i.l.bf16 %v2401_v9 }
 0x448   : > { %v1786_v40 = vsel %vm1785_vm5, %v1783_v56, %v2402_v20  ;;  %v1787_v53 = vsel %vm1785_vm5, %v1784_v63, %v2403_v24 }
 0x449   : > { %v1789_v6 = vsel %vm1788_vm6, %v1786_v40, %v2407_v17  ;;  %v1790_v0 = vsel %vm1788_vm6, %v1787_v53, %v2408_v11 }
 0x46b   : > { %v1855_v23 = vpop.f32.mrf.mxu0 }
 0x46d   : > { %v2354_v39 = vpop.f32.mrf.mxu0 }
 0x46f   : > { %v1858_v45 = vpop.f32.mrf.mxu0 }
 0x471   : > { %v2355_v54 = vpop.f32.mrf.mxu0 }
 0x479   : > { %v2411_v41 = vpop.permute.xlu1 %2410 }
 0x47a   : > { %v2413_v25 = vunpack.i.h.bf16 %v2411_v41  ;;  %v2412_v51 = vunpack.i.l.bf16 %v2411_v41 }
 0x47c   : > { %v1792_v30 = vsel %vm1791_vm7, %v1789_v6, %v2412_v51  ;;  %v1793_v31 = vsel %vm1791_vm7, %v1790_v0, %v2413_v25 }
 0x489   : > { %v2421_v10 = vpop.permute.xlu1 %2420 }
 0x48a   : > { %v2423_v34 = vunpack.i.h.bf16 %v2421_v10  ;;  %v2422_v59 = vunpack.i.l.bf16 %v2421_v10 }
 0x48c   : > { %v2416_v27 = vpop.permute.xlu0 %2415 }
 0x48d   : > { %v2418_v29 = vunpack.i.h.bf16 %v2416_v27  ;;  %v2417_v15 = vunpack.i.l.bf16 %v2416_v27 }
 0x48f   : > { %v1795_v35 = vsel %vm1794_vm8, %v1792_v30, %v2417_v15  ;;  %v1796_v44 = vsel %vm1794_vm8, %v1793_v31, %v2418_v29 }
 0x490   : > { %v1798_v42 = vsel %vm1797_vm9, %v1795_v35, %v2422_v59  ;;  %v1799_v49 = vsel %vm1797_vm9, %v1796_v44, %v2423_v34 }
 0x491   : > { %v1800_v36 = vpack.c.bf16 %v1799_v49, %v1798_v42 }
 0x493   : > { %2361 = vmatmul.mubr.msk.bf16.vlgmr.msra.gmra.mxu1 %vm377_vm0, %v1800_v36 }
 0x553   : > { %v1911_v55 = vpop.f32.mrf.mxu1 }
 0x554   : > { %v1912_v22 = vadd.f32 %v1911_v55, %v1855_v23 }
 0x555   : > { %v2362_v43 = vpop.f32.mrf.mxu1 }
 0x556   : > { %v1925_v18 = vadd.f32 %v2034_v28, %v1912_v22 }
 0x557   : > { %v1914_v50 = vpop.f32.mrf.mxu1 }
 0x558   : > { %v1927_v33 = vmax.f32 %v1925_v18, 0.0  ;;  %v1915_v21 = vadd.f32 %v1914_v50, %v1858_v45 }
 0x559   : > { %v2363_v47 = vpop.f32.mrf.mxu1 }
 0x55a   : > { %1929 = vst.msk [vmem:[%s334_s19] sm:$0xff] %vm377_vm0, %v1927_v33  ;;  %v1926_v4 = vadd.f32 %v2034_v28, %v1915_v21 }
 0x55c   : > { %v1928_v37 = vmax.f32 %v1926_v4, 0.0 }
 0x55e   : > { %1930 = vst.msk [vmem:[%s334_s19 + $0x8] sm:$0xff] %vm377_vm0, %v1928_v37 }
 0x55f PF: > { %s19_s30 = sadd.s32 1, %s2502_s30  }
 0x560   : > { %p16_p5 = scmp.ge.s32.totalorder %s19_s30, 4  }
 0x562   :  { %18 = sbr.rel (!%p16_p5) target bundleno = 1 (0x1), region = 87 }

</bundles_post_ra>
